<compile_context>
chip_gen: v6e
topology: v6e:2x2x1
jax: 0.10.0
libtpu: 0.0.40
codegen_flags: <defaults>
</compile_context>

<pallas_src>
import functools

import jax
import jax.numpy as jnp
from jax.experimental import pallas as pl
from jax.experimental.pallas import tpu as pltpu


def _down_block_kernel(x_ref, w_ref, b_ref, o_ref, pad_ref, acc_ref,
                       *, pk, hp, wp, cin, cout):
    """Per-sample block.
    x_ref  : (1, hp*pk, wp*pk, cin)  ceil-padded NHWC input rows for this sample
    w_ref  : (9, cin, cout)          BN-folded conv weights, tap-major (kh*3+kw)
    b_ref  : (1, cout)               BN-folded bias
    o_ref  : (1, hp, wp, cout)       NHWC output tile
    pad_ref: VMEM (hp+2, wp+2, cin)  zero-halo conv input
    acc_ref: VMEM (hp*wp, cout) f32  conv accumulator
    """
    # ---- MaxPool2d(kernel=stride=pk, ceil_mode=True) ----
    # W direction: strided sublane loads; H direction: free major-dim reshape + max.
    # (ceil_mode handled by -inf padding in glue; max ignores -inf.)
    colmax = x_ref[:, :, pl.ds(0, wp, pk), :]                  # (1, hp*pk, wp, cin)
    for j in range(1, pk):
        colmax = jnp.maximum(colmax, x_ref[:, :, pl.ds(j, wp, pk), :])
    pooled = jnp.max(colmax.reshape(hp, pk, wp, cin), axis=1)  # (hp, wp, cin)

    # ---- zero-pad by 1 for the 3x3 conv: halo-only zero writes + one interior write
    zrow = jnp.zeros((1, wp + 2, cin), jnp.float32)
    zcol = jnp.zeros((hp + 2, 1, cin), jnp.float32)
    pad_ref[0:1, :, :] = zrow
    pad_ref[hp + 1:hp + 2, :, :] = zrow
    pad_ref[:, 0:1, :] = zcol
    pad_ref[:, wp + 1:wp + 2, :] = zcol
    pad_ref[1:hp + 1, 1:wp + 1, :] = pooled

    # ---- 3x3 conv (cross-correlation, BN folded) as 9 per-tap MXU matmuls ----
    for t in range(9):
        kh, kw = divmod(t, 3)
        patch = pad_ref[kh:kh + hp, kw:kw + wp, :].reshape(hp * wp, cin)
        contrib = jnp.dot(patch, w_ref[t],
                          preferred_element_type=jnp.float32,
                          precision=jax.lax.Precision.HIGHEST)
        if t == 0:
            acc_ref[...] = contrib
        else:
            acc_ref[...] += contrib

    # ---- bias + ReLU; Attention(None) is identity ----
    res = jnp.maximum(acc_ref[...] + b_ref[...], 0.0)
    o_ref[...] = res.reshape(1, hp, wp, cout).astype(o_ref.dtype)


def down_block_forward(x_nchw, conv_w, bn_gamma, bn_beta, bn_mean, bn_var,
                       *, pool_k, eps=1e-5):
    """Forward of DownBlock. x_nchw: (N, Cin, H, W); conv_w: (Cout, Cin, 3, 3)."""
    n, cin, h, w = x_nchw.shape
    cout = conv_w.shape[0]
    hp = -(-h // pool_k)
    wp = -(-w // pool_k)

    # --- glue: NCHW -> NHWC + ceil_mode -inf padding (only remaining XLA data movement)
    x = jnp.transpose(x_nchw, (0, 2, 3, 1)).astype(jnp.float32)        # (N, H, W, Cin)
    x = jnp.pad(x, ((0, 0), (0, hp * pool_k - h), (0, wp * pool_k - w), (0, 0)),
                constant_values=-jnp.inf)

    # --- glue: fold inference-mode BatchNorm into conv weight / bias
    scale = bn_gamma / jnp.sqrt(bn_var + eps)                          # (Cout,)
    w_f = (jnp.transpose(conv_w, (2, 3, 1, 0)) * scale)                # (3, 3, Cin, Cout)
    w_f = w_f.reshape(9, cin, cout).astype(jnp.float32)                # tap-major
    b_f = (bn_beta - bn_mean * scale).reshape(1, cout).astype(jnp.float32)

    kernel = functools.partial(_down_block_kernel,
                               pk=pool_k, hp=hp, wp=wp, cin=cin, cout=cout)
    out_nhwc = pl.pallas_call(
        kernel,
        out_shape=jax.ShapeDtypeStruct((n, hp, wp, cout), jnp.float32),
        grid=(n,),
        in_specs=[
            pl.BlockSpec((1, hp * pool_k, wp * pool_k, cin), lambda i: (i, 0, 0, 0)),
            pl.BlockSpec((9, cin, cout), lambda i: (0, 0, 0)),
            pl.BlockSpec((1, cout), lambda i: (0, 0)),
        ],
        out_specs=pl.BlockSpec((1, hp, wp, cout), lambda i: (i, 0, 0, 0)),
        scratch_shapes=[
            pltpu.VMEM((hp + 2, wp + 2, cin), jnp.float32),   # zero-halo conv input
            pltpu.VMEM((hp * wp, cout), jnp.float32),         # f32 conv accumulator
        ],
        compiler_params=pltpu.CompilerParams(
            dimension_semantics=("parallel",),                # 2 TCs on v7x shard batch
            vmem_limit_bytes=32 * 1024 * 1024,                # fits v7x's 64 MiB physical VMEM
        ),
    )(x, w_f, b_f)

    # attention_type=None -> identity; return NCHW like the PyTorch module
    return jnp.transpose(out_nhwc, (0, 3, 1, 2))


def _reference(x_nchw, conv_w, gamma, beta, mean, var, pool_k, eps=1e-5):
    """Pure-JAX reference of the same forward (for verification)."""
    x = x_nchw.astype(jnp.float32)
    _, _, h, w = x.shape
    hp = -(-h // pool_k)
    wp = -(-w // pool_k)
    xp = jnp.pad(x, ((0, 0), (0, 0), (0, hp * pool_k - h), (0, wp * pool_k - w)),
                 constant_values=-jnp.inf)
    pooled = jax.lax.reduce_window(xp, -jnp.inf, jax.lax.max,
                                   (1, 1, pool_k, pool_k), (1, 1, pool_k, pool_k), "VALID")
    y = jax.lax.conv_general_dilated(pooled, conv_w, (1, 1), ((1, 1), (1, 1)),
                                     dimension_numbers=("NCHW", "OIHW", "NCHW"))
    s = (gamma / jnp.sqrt(var + eps))[None, :, None, None]
    b = (beta - mean * gamma / jnp.sqrt(var + eps))[None, :, None, None]
    return jnp.maximum(y * s + b, 0.0)


if __name__ == "__main__":
    N, CIN, COUT, H, W, PK = 2, 4, 8, 16, 16, 2

    key = jax.random.PRNGKey(0)
    k1, k2, k3, k4, k5, k6 = jax.random.split(key, 6)
    x = jax.random.normal(k1, (N, CIN, H, W), jnp.float32)
    conv_w = 0.1 * jax.random.normal(k2, (COUT, CIN, 3, 3), jnp.float32)
    bn_gamma = 1.0 + 0.1 * jax.random.normal(k3, (COUT,), jnp.float32)
    bn_beta = 0.1 * jax.random.normal(k4, (COUT,), jnp.float32)
    bn_mean = 0.1 * jax.random.normal(k5, (COUT,), jnp.float32)
    bn_var = jnp.abs(jax.random.normal(k6, (COUT,), jnp.float32)) + 0.5

    out = down_block_forward(x, conv_w, bn_gamma, bn_beta, bn_mean, bn_var, pool_k=PK)
    out = jax.block_until_ready(out)

    ref = _reference(x, conv_w, bn_gamma, bn_beta, bn_mean, bn_var, PK)
    assert out.shape == (N, COUT, H // PK, W // PK), out.shape
    # Tolerance covers possible reduced-precision MXU passes; with
    # Precision.HIGHEST the observed error is ~1e-6 (real bugs are >> 1e-2).
    assert jnp.allclose(out, ref, atol=1e-2, rtol=1e-2), float(jnp.max(jnp.abs(out - ref)))
    print("KERNEL_OK")
</pallas_src>

<mosaic_0001>
module attributes {stable_mosaic.version = 11 : i64} {
  func.func @_down_block_kernel(%arg0: i32, %arg1: memref<1x16x16x4xf32, #tpu.memory_space<vmem>>, %arg2: memref<9x4x8xf32, #tpu.memory_space<vmem>>, %arg3: memref<1x8xf32, #tpu.memory_space<vmem>>, %arg4: memref<1x8x8x8xf32, #tpu.memory_space<vmem>>, %arg5: memref<10x10x4xf32, #tpu.memory_space<vmem>>, %arg6: memref<64x8xf32, #tpu.memory_space<vmem>>) attributes {dimension_semantics = [#tpu.dimension_semantics<parallel>], iteration_bounds = array<i64: 2>, scalar_prefetch = 0 : i64, scratch_operands = 2 : i64, tpu.core_type = #tpu.core_type<tc>, window_params = [{transform_indices = @transform_0, window_bounds = array<i64: 1, 16, 16, 4>}, {pipeline_mode = #tpu.pipeline_mode<synchronous>, transform_indices = @transform_1, window_bounds = array<i64: 9, 4, 8>}, {pipeline_mode = #tpu.pipeline_mode<synchronous>, transform_indices = @transform_2, window_bounds = array<i64: 1, 8>}, {transform_indices = @transform_3, window_bounds = array<i64: 1, 8, 8, 8>}]} {
    %c0 = arith.constant 0 : index
    %c0_0 = arith.constant 0 : index
    %c0_1 = arith.constant 0 : index
    %c0_2 = arith.constant 0 : index
    %0 = tpu.strided_load %arg1[%c0, %c0_0, %c0_1, %c0_2] {strides = array<i32: 1, 1, 2, 1>} : memref<1x16x16x4xf32, #tpu.memory_space<vmem>>, vector<1x16x8x4xf32>
    %c0_3 = arith.constant 0 : index
    %c0_4 = arith.constant 0 : index
    %c1 = arith.constant 1 : index
    %c0_5 = arith.constant 0 : index
    %1 = tpu.strided_load %arg1[%c0_3, %c0_4, %c1, %c0_5] {strides = array<i32: 1, 1, 2, 1>} : memref<1x16x16x4xf32, #tpu.memory_space<vmem>>, vector<1x16x8x4xf32>
    %2 = arith.maximumf %0, %1 : vector<1x16x8x4xf32>
    %3 = vector.shape_cast %2 : vector<1x16x8x4xf32> to vector<8x2x8x4xf32>
    %cst = arith.constant dense<0xFF800000> : vector<8x8x4xf32>
    %4 = vector.multi_reduction <maximumf>, %3, %cst [1] : vector<8x2x8x4xf32> to vector<8x8x4xf32>
    %cst_6 = arith.constant 0.000000e+00 : f32
    %5 = vector.broadcast %cst_6 : f32 to vector<1x10x4xf32>
    %cst_7 = arith.constant 0.000000e+00 : f32
    %6 = vector.broadcast %cst_7 : f32 to vector<10x1x4xf32>
    %c0_8 = arith.constant 0 : index
    %c0_9 = arith.constant 0 : index
    %c0_10 = arith.constant 0 : index
    %7 = vector.load %arg5[%c0_8, %c0_9, %c0_10] : memref<10x10x4xf32, #tpu.memory_space<vmem>>, vector<1x10x4xf32>
    tpu.vector_store %arg5[%c0_8, %c0_9, %c0_10], %5 {strides = array<i32>} : memref<10x10x4xf32, #tpu.memory_space<vmem>>, vector<1x10x4xf32>,
    %c9 = arith.constant 9 : index
    %c0_11 = arith.constant 0 : index
    %c0_12 = arith.constant 0 : index
    %8 = vector.load %arg5[%c9, %c0_11, %c0_12] : memref<10x10x4xf32, #tpu.memory_space<vmem>>, vector<1x10x4xf32>
    tpu.vector_store %arg5[%c9, %c0_11, %c0_12], %5 {strides = array<i32>} : memref<10x10x4xf32, #tpu.memory_space<vmem>>, vector<1x10x4xf32>,
    %c0_13 = arith.constant 0 : index
    %c0_14 = arith.constant 0 : index
    %c0_15 = arith.constant 0 : index
    %9 = vector.load %arg5[%c0_13, %c0_14, %c0_15] : memref<10x10x4xf32, #tpu.memory_space<vmem>>, vector<10x1x4xf32>
    tpu.vector_store %arg5[%c0_13, %c0_14, %c0_15], %6 {strides = array<i32>} : memref<10x10x4xf32, #tpu.memory_space<vmem>>, vector<10x1x4xf32>,
    %c0_16 = arith.constant 0 : index
    %c9_17 = arith.constant 9 : index
    %c0_18 = arith.constant 0 : index
    %10 = vector.load %arg5[%c0_16, %c9_17, %c0_18] : memref<10x10x4xf32, #tpu.memory_space<vmem>>, vector<10x1x4xf32>
    tpu.vector_store %arg5[%c0_16, %c9_17, %c0_18], %6 {strides = array<i32>} : memref<10x10x4xf32, #tpu.memory_space<vmem>>, vector<10x1x4xf32>,
    %c1_19 = arith.constant 1 : index
    %c1_20 = arith.constant 1 : index
    %c0_21 = arith.constant 0 : index
    %11 = vector.load %arg5[%c1_19, %c1_20, %c0_21] : memref<10x10x4xf32, #tpu.memory_space<vmem>>, vector<8x8x4xf32>
    tpu.vector_store %arg5[%c1_19, %c1_20, %c0_21], %4 {strides = array<i32>} : memref<10x10x4xf32, #tpu.memory_space<vmem>>, vector<8x8x4xf32>,
    %c0_22 = arith.constant 0 : index
    %c0_23 = arith.constant 0 : index
    %c0_24 = arith.constant 0 : index
    %12 = vector.load %arg5[%c0_22, %c0_23, %c0_24] : memref<10x10x4xf32, #tpu.memory_space<vmem>>, vector<8x8x4xf32>
    %13 = vector.shape_cast %12 : vector<8x8x4xf32> to vector<64x4xf32>
    %c0_25 = arith.constant 0 : index
    %c0_26 = arith.constant 0 : index
    %c0_27 = arith.constant 0 : index
    %14 = vector.load %arg2[%c0_25, %c0_26, %c0_27] : memref<9x4x8xf32, #tpu.memory_space<vmem>>, vector<1x4x8xf32>
    %15 = vector.shape_cast %14 : vector<1x4x8xf32> to vector<4x8xf32>
    %cst_28 = arith.constant dense<0.000000e+00> : vector<64x8xf32>
    %16 = tpu.matmul %13, %15, %cst_28 {dimension_numbers = #tpu.dot_dimension_numbers<[1], [0], [0], [1], [0, 0, 1, 1], [], []>, precision = #tpu.contract_precision<fp32>} : vector<64x4xf32>, vector<4x8xf32>, vector<64x8xf32> -> vector<64x8xf32>
    %c0_29 = arith.constant 0 : index
    %c0_30 = arith.constant 0 : index
    %17 = vector.load %arg6[%c0_29, %c0_30] : memref<64x8xf32, #tpu.memory_space<vmem>>, vector<64x8xf32>
    tpu.vector_store %arg6[%c0_29, %c0_30], %16 {strides = array<i32>} : memref<64x8xf32, #tpu.memory_space<vmem>>, vector<64x8xf32>,
    %c0_31 = arith.constant 0 : index
    %c1_32 = arith.constant 1 : index
    %c0_33 = arith.constant 0 : index
    %18 = vector.load %arg5[%c0_31, %c1_32, %c0_33] : memref<10x10x4xf32, #tpu.memory_space<vmem>>, vector<8x8x4xf32>
    %19 = vector.shape_cast %18 : vector<8x8x4xf32> to vector<64x4xf32>
    %c1_34 = arith.constant 1 : index
    %c0_35 = arith.constant 0 : index
    %c0_36 = arith.constant 0 : index
    %20 = vector.load %arg2[%c1_34, %c0_35, %c0_36] : memref<9x4x8xf32, #tpu.memory_space<vmem>>, vector<1x4x8xf32>
    %21 = vector.shape_cast %20 : vector<1x4x8xf32> to vector<4x8xf32>
    %cst_37 = arith.constant dense<0.000000e+00> : vector<64x8xf32>
    %22 = tpu.matmul %19, %21, %cst_37 {dimension_numbers = #tpu.dot_dimension_numbers<[1], [0], [0], [1], [0, 0, 1, 1], [], []>, precision = #tpu.contract_precision<fp32>} : vector<64x4xf32>, vector<4x8xf32>, vector<64x8xf32> -> vector<64x8xf32>
    %c0_38 = arith.constant 0 : index
    %c0_39 = arith.constant 0 : index
    %23 = vector.load %arg6[%c0_38, %c0_39] : memref<64x8xf32, #tpu.memory_space<vmem>>, vector<64x8xf32>
    %24 = arith.addf %23, %22 : vector<64x8xf32>
    %c0_40 = arith.constant 0 : index
    %c0_41 = arith.constant 0 : index
    %25 = vector.load %arg6[%c0_40, %c0_41] : memref<64x8xf32, #tpu.memory_space<vmem>>, vector<64x8xf32>
    tpu.vector_store %arg6[%c0_40, %c0_41], %24 {strides = array<i32>} : memref<64x8xf32, #tpu.memory_space<vmem>>, vector<64x8xf32>,
    %c0_42 = arith.constant 0 : index
    %c2 = arith.constant 2 : index
    %c0_43 = arith.constant 0 : index
    %26 = vector.load %arg5[%c0_42, %c2, %c0_43] : memref<10x10x4xf32, #tpu.memory_space<vmem>>, vector<8x8x4xf32>
    %27 = vector.shape_cast %26 : vector<8x8x4xf32> to vector<64x4xf32>
    %c2_44 = arith.constant 2 : index
    %c0_45 = arith.constant 0 : index
    %c0_46 = arith.constant 0 : index
    %28 = vector.load %arg2[%c2_44, %c0_45, %c0_46] : memref<9x4x8xf32, #tpu.memory_space<vmem>>, vector<1x4x8xf32>
    %29 = vector.shape_cast %28 : vector<1x4x8xf32> to vector<4x8xf32>
    %cst_47 = arith.constant dense<0.000000e+00> : vector<64x8xf32>
    %30 = tpu.matmul %27, %29, %cst_47 {dimension_numbers = #tpu.dot_dimension_numbers<[1], [0], [0], [1], [0, 0, 1, 1], [], []>, precision = #tpu.contract_precision<fp32>} : vector<64x4xf32>, vector<4x8xf32>, vector<64x8xf32> -> vector<64x8xf32>
    %c0_48 = arith.constant 0 : index
    %c0_49 = arith.constant 0 : index
    %31 = vector.load %arg6[%c0_48, %c0_49] : memref<64x8xf32, #tpu.memory_space<vmem>>, vector<64x8xf32>
    %32 = arith.addf %31, %30 : vector<64x8xf32>
    %c0_50 = arith.constant 0 : index
    %c0_51 = arith.constant 0 : index
    %33 = vector.load %arg6[%c0_50, %c0_51] : memref<64x8xf32, #tpu.memory_space<vmem>>, vector<64x8xf32>
    tpu.vector_store %arg6[%c0_50, %c0_51], %32 {strides = array<i32>} : memref<64x8xf32, #tpu.memory_space<vmem>>, vector<64x8xf32>,
    %c1_52 = arith.constant 1 : index
    %c0_53 = arith.constant 0 : index
    %c0_54 = arith.constant 0 : index
    %34 = vector.load %arg5[%c1_52, %c0_53, %c0_54] : memref<10x10x4xf32, #tpu.memory_space<vmem>>, vector<8x8x4xf32>
    %35 = vector.shape_cast %34 : vector<8x8x4xf32> to vector<64x4xf32>
    %c3 = arith.constant 3 : index
    %c0_55 = arith.constant 0 : index
    %c0_56 = arith.constant 0 : index
    %36 = vector.load %arg2[%c3, %c0_55, %c0_56] : memref<9x4x8xf32, #tpu.memory_space<vmem>>, vector<1x4x8xf32>
    %37 = vector.shape_cast %36 : vector<1x4x8xf32> to vector<4x8xf32>
    %cst_57 = arith.constant dense<0.000000e+00> : vector<64x8xf32>
    %38 = tpu.matmul %35, %37, %cst_57 {dimension_numbers = #tpu.dot_dimension_numbers<[1], [0], [0], [1], [0, 0, 1, 1], [], []>, precision = #tpu.contract_precision<fp32>} : vector<64x4xf32>, vector<4x8xf32>, vector<64x8xf32> -> vector<64x8xf32>
    %c0_58 = arith.constant 0 : index
    %c0_59 = arith.constant 0 : index
    %39 = vector.load %arg6[%c0_58, %c0_59] : memref<64x8xf32, #tpu.memory_space<vmem>>, vector<64x8xf32>
    %40 = arith.addf %39, %38 : vector<64x8xf32>
    %c0_60 = arith.constant 0 : index
    %c0_61 = arith.constant 0 : index
    %41 = vector.load %arg6[%c0_60, %c0_61] : memref<64x8xf32, #tpu.memory_space<vmem>>, vector<64x8xf32>
    tpu.vector_store %arg6[%c0_60, %c0_61], %40 {strides = array<i32>} : memref<64x8xf32, #tpu.memory_space<vmem>>, vector<64x8xf32>,
    %c1_62 = arith.constant 1 : index
    %c1_63 = arith.constant 1 : index
    %c0_64 = arith.constant 0 : index
    %42 = vector.load %arg5[%c1_62, %c1_63, %c0_64] : memref<10x10x4xf32, #tpu.memory_space<vmem>>, vector<8x8x4xf32>
    %43 = vector.shape_cast %42 : vector<8x8x4xf32> to vector<64x4xf32>
    %c4 = arith.constant 4 : index
    %c0_65 = arith.constant 0 : index
    %c0_66 = arith.constant 0 : index
    %44 = vector.load %arg2[%c4, %c0_65, %c0_66] : memref<9x4x8xf32, #tpu.memory_space<vmem>>, vector<1x4x8xf32>
    %45 = vector.shape_cast %44 : vector<1x4x8xf32> to vector<4x8xf32>
    %cst_67 = arith.constant dense<0.000000e+00> : vector<64x8xf32>
    %46 = tpu.matmul %43, %45, %cst_67 {dimension_numbers = #tpu.dot_dimension_numbers<[1], [0], [0], [1], [0, 0, 1, 1], [], []>, precision = #tpu.contract_precision<fp32>} : vector<64x4xf32>, vector<4x8xf32>, vector<64x8xf32> -> vector<64x8xf32>
    %c0_68 = arith.constant 0 : index
    %c0_69 = arith.constant 0 : index
    %47 = vector.load %arg6[%c0_68, %c0_69] : memref<64x8xf32, #tpu.memory_space<vmem>>, vector<64x8xf32>
    %48 = arith.addf %47, %46 : vector<64x8xf32>
    %c0_70 = arith.constant 0 : index
    %c0_71 = arith.constant 0 : index
    %49 = vector.load %arg6[%c0_70, %c0_71] : memref<64x8xf32, #tpu.memory_space<vmem>>, vector<64x8xf32>
    tpu.vector_store %arg6[%c0_70, %c0_71], %48 {strides = array<i32>} : memref<64x8xf32, #tpu.memory_space<vmem>>, vector<64x8xf32>,
    %c1_72 = arith.constant 1 : index
    %c2_73 = arith.constant 2 : index
    %c0_74 = arith.constant 0 : index
    %50 = vector.load %arg5[%c1_72, %c2_73, %c0_74] : memref<10x10x4xf32, #tpu.memory_space<vmem>>, vector<8x8x4xf32>
    %51 = vector.shape_cast %50 : vector<8x8x4xf32> to vector<64x4xf32>
    %c5 = arith.constant 5 : index
    %c0_75 = arith.constant 0 : index
    %c0_76 = arith.constant 0 : index
    %52 = vector.load %arg2[%c5, %c0_75, %c0_76] : memref<9x4x8xf32, #tpu.memory_space<vmem>>, vector<1x4x8xf32>
    %53 = vector.shape_cast %52 : vector<1x4x8xf32> to vector<4x8xf32>
    %cst_77 = arith.constant dense<0.000000e+00> : vector<64x8xf32>
    %54 = tpu.matmul %51, %53, %cst_77 {dimension_numbers = #tpu.dot_dimension_numbers<[1], [0], [0], [1], [0, 0, 1, 1], [], []>, precision = #tpu.contract_precision<fp32>} : vector<64x4xf32>, vector<4x8xf32>, vector<64x8xf32> -> vector<64x8xf32>
    %c0_78 = arith.constant 0 : index
    %c0_79 = arith.constant 0 : index
    %55 = vector.load %arg6[%c0_78, %c0_79] : memref<64x8xf32, #tpu.memory_space<vmem>>, vector<64x8xf32>
    %56 = arith.addf %55, %54 : vector<64x8xf32>
    %c0_80 = arith.constant 0 : index
    %c0_81 = arith.constant 0 : index
    %57 = vector.load %arg6[%c0_80, %c0_81] : memref<64x8xf32, #tpu.memory_space<vmem>>, vector<64x8xf32>
    tpu.vector_store %arg6[%c0_80, %c0_81], %56 {strides = array<i32>} : memref<64x8xf32, #tpu.memory_space<vmem>>, vector<64x8xf32>,
    %c2_82 = arith.constant 2 : index
    %c0_83 = arith.constant 0 : index
    %c0_84 = arith.constant 0 : index
    %58 = vector.load %arg5[%c2_82, %c0_83, %c0_84] : memref<10x10x4xf32, #tpu.memory_space<vmem>>, vector<8x8x4xf32>
    %59 = vector.shape_cast %58 : vector<8x8x4xf32> to vector<64x4xf32>
    %c6 = arith.constant 6 : index
    %c0_85 = arith.constant 0 : index
    %c0_86 = arith.constant 0 : index
    %60 = vector.load %arg2[%c6, %c0_85, %c0_86] : memref<9x4x8xf32, #tpu.memory_space<vmem>>, vector<1x4x8xf32>
    %61 = vector.shape_cast %60 : vector<1x4x8xf32> to vector<4x8xf32>
    %cst_87 = arith.constant dense<0.000000e+00> : vector<64x8xf32>
    %62 = tpu.matmul %59, %61, %cst_87 {dimension_numbers = #tpu.dot_dimension_numbers<[1], [0], [0], [1], [0, 0, 1, 1], [], []>, precision = #tpu.contract_precision<fp32>} : vector<64x4xf32>, vector<4x8xf32>, vector<64x8xf32> -> vector<64x8xf32>
    %c0_88 = arith.constant 0 : index
    %c0_89 = arith.constant 0 : index
    %63 = vector.load %arg6[%c0_88, %c0_89] : memref<64x8xf32, #tpu.memory_space<vmem>>, vector<64x8xf32>
    %64 = arith.addf %63, %62 : vector<64x8xf32>
    %c0_90 = arith.constant 0 : index
    %c0_91 = arith.constant 0 : index
    %65 = vector.load %arg6[%c0_90, %c0_91] : memref<64x8xf32, #tpu.memory_space<vmem>>, vector<64x8xf32>
    tpu.vector_store %arg6[%c0_90, %c0_91], %64 {strides = array<i32>} : memref<64x8xf32, #tpu.memory_space<vmem>>, vector<64x8xf32>,
    %c2_92 = arith.constant 2 : index
    %c1_93 = arith.constant 1 : index
    %c0_94 = arith.constant 0 : index
    %66 = vector.load %arg5[%c2_92, %c1_93, %c0_94] : memref<10x10x4xf32, #tpu.memory_space<vmem>>, vector<8x8x4xf32>
    %67 = vector.shape_cast %66 : vector<8x8x4xf32> to vector<64x4xf32>
    %c7 = arith.constant 7 : index
    %c0_95 = arith.constant 0 : index
    %c0_96 = arith.constant 0 : index
    %68 = vector.load %arg2[%c7, %c0_95, %c0_96] : memref<9x4x8xf32, #tpu.memory_space<vmem>>, vector<1x4x8xf32>
    %69 = vector.shape_cast %68 : vector<1x4x8xf32> to vector<4x8xf32>
    %cst_97 = arith.constant dense<0.000000e+00> : vector<64x8xf32>
    %70 = tpu.matmul %67, %69, %cst_97 {dimension_numbers = #tpu.dot_dimension_numbers<[1], [0], [0], [1], [0, 0, 1, 1], [], []>, precision = #tpu.contract_precision<fp32>} : vector<64x4xf32>, vector<4x8xf32>, vector<64x8xf32> -> vector<64x8xf32>
    %c0_98 = arith.constant 0 : index
    %c0_99 = arith.constant 0 : index
    %71 = vector.load %arg6[%c0_98, %c0_99] : memref<64x8xf32, #tpu.memory_space<vmem>>, vector<64x8xf32>
    %72 = arith.addf %71, %70 : vector<64x8xf32>
    %c0_100 = arith.constant 0 : index
    %c0_101 = arith.constant 0 : index
    %73 = vector.load %arg6[%c0_100, %c0_101] : memref<64x8xf32, #tpu.memory_space<vmem>>, vector<64x8xf32>
    tpu.vector_store %arg6[%c0_100, %c0_101], %72 {strides = array<i32>} : memref<64x8xf32, #tpu.memory_space<vmem>>, vector<64x8xf32>,
    %c2_102 = arith.constant 2 : index
    %c2_103 = arith.constant 2 : index
    %c0_104 = arith.constant 0 : index
    %74 = vector.load %arg5[%c2_102, %c2_103, %c0_104] : memref<10x10x4xf32, #tpu.memory_space<vmem>>, vector<8x8x4xf32>
    %75 = vector.shape_cast %74 : vector<8x8x4xf32> to vector<64x4xf32>
    %c8 = arith.constant 8 : index
    %c0_105 = arith.constant 0 : index
    %c0_106 = arith.constant 0 : index
    %76 = vector.load %arg2[%c8, %c0_105, %c0_106] : memref<9x4x8xf32, #tpu.memory_space<vmem>>, vector<1x4x8xf32>
    %77 = vector.shape_cast %76 : vector<1x4x8xf32> to vector<4x8xf32>
    %cst_107 = arith.constant dense<0.000000e+00> : vector<64x8xf32>
    %78 = tpu.matmul %75, %77, %cst_107 {dimension_numbers = #tpu.dot_dimension_numbers<[1], [0], [0], [1], [0, 0, 1, 1], [], []>, precision = #tpu.contract_precision<fp32>} : vector<64x4xf32>, vector<4x8xf32>, vector<64x8xf32> -> vector<64x8xf32>
    %c0_108 = arith.constant 0 : index
    %c0_109 = arith.constant 0 : index
    %79 = vector.load %arg6[%c0_108, %c0_109] : memref<64x8xf32, #tpu.memory_space<vmem>>, vector<64x8xf32>
    %80 = arith.addf %79, %78 : vector<64x8xf32>
    %c0_110 = arith.constant 0 : index
    %c0_111 = arith.constant 0 : index
    %81 = vector.load %arg6[%c0_110, %c0_111] : memref<64x8xf32, #tpu.memory_space<vmem>>, vector<64x8xf32>
    tpu.vector_store %arg6[%c0_110, %c0_111], %80 {strides = array<i32>} : memref<64x8xf32, #tpu.memory_space<vmem>>, vector<64x8xf32>,
    %c0_112 = arith.constant 0 : index
    %c0_113 = arith.constant 0 : index
    %82 = vector.load %arg6[%c0_112, %c0_113] : memref<64x8xf32, #tpu.memory_space<vmem>>, vector<64x8xf32>
    %c0_114 = arith.constant 0 : index
    %c0_115 = arith.constant 0 : index
    %83 = vector.load %arg3[%c0_114, %c0_115] : memref<1x8xf32, #tpu.memory_space<vmem>>, vector<1x8xf32>
    %84 = vector.broadcast %83 : vector<1x8xf32> to vector<64x8xf32>
    %85 = arith.addf %82, %84 : vector<64x8xf32>
    %cst_116 = arith.constant 0.000000e+00 : f32
    %86 = vector.broadcast %cst_116 : f32 to vector<64x8xf32>
    %87 = arith.maximumf %85, %86 : vector<64x8xf32>
    %88 = vector.shape_cast %87 : vector<64x8xf32> to vector<1x8x8x8xf32>
    %c0_117 = arith.constant 0 : index
    %c0_118 = arith.constant 0 : index
    %c0_119 = arith.constant 0 : index
    %c0_120 = arith.constant 0 : index
    %89 = vector.load %arg4[%c0_117, %c0_118, %c0_119, %c0_120] : memref<1x8x8x8xf32, #tpu.memory_space<vmem>>, vector<1x8x8x8xf32>
    tpu.vector_store %arg4[%c0_117, %c0_118, %c0_119, %c0_120], %88 {strides = array<i32>} : memref<1x8x8x8xf32, #tpu.memory_space<vmem>>, vector<1x8x8x8xf32>,
    return
  }
  func.func @transform_0(%arg0: i32) -> (i32, i32, i32, i32) {
    %c0_i32 = arith.constant 0 : i32
    %c0_i32_0 = arith.constant 0 : i32
    %c0_i32_1 = arith.constant 0 : i32
    %c0_i32_2 = arith.constant 0 : i32
    return %arg0, %c0_i32, %c0_i32_0, %c0_i32_1 : i32, i32, i32, i32
  }
  func.func @transform_1(%arg0: i32) -> (i32, i32, i32) {
    %c0_i32 = arith.constant 0 : i32
    %c0_i32_0 = arith.constant 0 : i32
    %c0_i32_1 = arith.constant 0 : i32
    %c0_i32_2 = arith.constant 0 : i32
    return %c0_i32, %c0_i32_0, %c0_i32_1 : i32, i32, i32
  }
  func.func @transform_2(%arg0: i32) -> (i32, i32) {
    %c0_i32 = arith.constant 0 : i32
    %c0_i32_0 = arith.constant 0 : i32
    %c0_i32_1 = arith.constant 0 : i32
    return %c0_i32, %c0_i32_0 : i32, i32
  }
  func.func @transform_3(%arg0: i32) -> (i32, i32, i32, i32) {
    %c0_i32 = arith.constant 0 : i32
    %c0_i32_0 = arith.constant 0 : i32
    %c0_i32_1 = arith.constant 0 : i32
    %c0_i32_2 = arith.constant 0 : i32
    return %arg0, %c0_i32, %c0_i32_0, %c0_i32_1 : i32, i32, i32, i32
  }
}

</mosaic_0001>

<bundles_post_ra>
// kernel: tpu_custom_call.1
= control target key start
LH: loop header
LB: loop body
LE: loop exit
PB: predicated region body
PF: predicated region fallthrough
CT: control target
= control target key end

     0   :  { %8 = vsyncpa [#allocation5], 0  ;;  %s11046_s0 = inlined_call_operand.vmem [shape: f32[2,16,16,4], index: 0, kind: input, shape index: {}]   ;;  %s11047_s1 = inlined_call_operand.vmem [shape: f32[9,4,8], index: 1, kind: input, shape index: {}]   ;;  %s11048_s2 = inlined_call_operand.vmem [shape: f32[1,8], index: 2, kind: input, shape index: {}]   ;;  %s11049_s3 = inlined_call_operand.hbm [shape: f32[2,8,8,8], index: 3, kind: output, shape index: {}]  }
   0x1   :  { %10 = vsyncpa [#allocation5 + $0x1], 0  ;;  %s9106_s12 = smov 0   ;;  %s9108_s13 = smov 0  }
   0x2   :  { %s9110_s14 = smov 0   ;;  %s9112_s15 = smov 0  }
   0x3 LB: > { %s9127_s16 = sadd.s32 4294967295, %s9080_s15   ;;  %s7682_s17 = sadd.s32 4294967294, %s9080_s15   ;;  %s9080_s15 = sphi %s9112_s15, %s11218_s15   ;;  %s9076_s14 = sphi %s9110_s14, %s11217_s14   ;;  %s9072_s13 = sphi %s9108_s13, %s11216_s13   ;;  %s9068_s12 = sphi %s9106_s12, %s11215_s12  }
   0x4   : > { %s9131_s18 = sadd.s32 1, %s9080_s15   ;;  %s91_s19 = sadd.s32 1, %s9076_s14 }
   0x5   : > { %s88_s20 = ssub.s32 %s9080_s15, %s9131_s18  ;;  %p101_p0 = scmp.ne.s32.totalorder %s9076_s14, %s9072_s13 }
   0x6   : > { %p89_p1 = scmp.eq.s32.totalorder %s88_s20, 0  ;;  %p102_p2 = scmp.eq.s32.totalorder %s9127_s16, 1 }
   0x7   : > { %p107_p3 = scmp.ne.s32.totalorder %s9072_s13, %s9068_s12  ;;  %p108_p4 = scmp.eq.s32.totalorder %s7682_s17, 1 }
   0x8   : > { %s9142_s21 = scalar_select %p89_p1, %s9076_s14, %s91_s19  }
   0x9   : > { %p9144_p5 = por %p102_p2, %p101_p0  ;;  %p9148_p6 = por %p108_p4, %p107_p3 }
   0xa   : > { %p7685_p7 = scmp.ge.s32.totalorder %s9080_s15, 1  ;;  %p140_p8 = scmp.lt.s32.totalorder %s9080_s15, 3 }
   0xc   : > { %p141_p9 = pnand %p7685_p7, %p140_p8 }
   0xe   : > { %144 = sbr.rel (%p141_p9) target bundleno = 711 (0x2c7), region = 32 }
  0x13   : > { %v317_v0 = vld [vmem:[%s11047_s1] sm:$0xf]  ;;  %vm342_vm0 = vcmask 1043456   ;;  %vm248_vm1 = vcmask 31744   ;;  %vm279_vm2 = vcmask 24576   ;;  %v9082_v2 = vmov 0.0  }
  0x14   : > { %v344_v1 = vsel %vm342_vm0, %v317_v0, 0  ;;  %273 = vst.msk [vmem:[#allocation2] sm:$0xff] %vm248_vm1, %v9082_v2  ;;  %277 = vst.msk [vmem:[#allocation2 + $0x90] sm:$0xff] %vm248_vm1, %v9082_v2  ;;  %p164_p10 = scmp.lt.s32.totalorder %s9127_s16, 1  ;;  %vm274_vm3 = vcmask 25600   ;;  %vm1093_vm4 = vcmask 64512  }
  0x15   : > { %281 = vst.msk [vmem:[#allocation2 + $0x10] sm:$0x1] %vm279_vm2, %v9082_v2  ;;  %282 = vst.msk [vmem:[#allocation2 + $0x20] sm:$0x1] %vm279_vm2, %v9082_v2  ;;  %v9177_v3 = vand.u32 4294901760, %v344_v1  ;;  %s161_s29 = sand.u32 1, %s9072_s13  }
  0x16   : > { %283 = vst.msk [vmem:[#allocation2 + $0x30] sm:$0x1] %vm279_vm2, %v9082_v2  ;;  %284 = vst.msk [vmem:[#allocation2 + $0x40] sm:$0x1] %vm279_vm2, %v9082_v2  ;;  %s165_s26 = scalar_select %p164_p10, %s9127_s16, 1 }
  0x17   : > { %285 = vst.msk [vmem:[#allocation2 + $0x50] sm:$0x1] %vm279_vm2, %v9082_v2  ;;  %286 = vst.msk [vmem:[#allocation2 + $0x60] sm:$0x1] %vm279_vm2, %v9082_v2  ;;  %8222 = vmatprep.subr.mxu0 %v9177_v3  ;;  %v9186_v4 = vsub.f32 %v344_v1, %v9177_v3  ;;  %v7720_v53 = vld [vmem:[%s11047_s1 + $0x4] sm:$0xf] }
  0x18   : > { %287 = vst.msk [vmem:[#allocation2 + $0x70] sm:$0x1] %vm279_vm2, %v9082_v2  ;;  %288 = vst.msk [vmem:[#allocation2 + $0x80] sm:$0x1] %vm279_vm2, %v9082_v2  ;;  %8223 = vmatpush3.msra.mxu0 %v9177_v3  ;;  %s7734_s27 = sshll.u32 %s165_s26, 8  ;;  %s7686_s5 = sshll.u32 %s161_s29, 6 }
  0x19   : > { %291 = vst.msk [vmem:[#allocation2 + $0x19] sm:$0x1] %vm279_vm2, %v9082_v2  ;;  %292 = vst.msk [vmem:[#allocation2 + $0x29] sm:$0x1] %vm279_vm2, %v9082_v2  ;;  %v9190_v5 = vand.u32 4294901760, %v9186_v4  ;;  %8250 = vmatprep.subr.mxu0 %v9186_v4  ;;  %s9196_s30 = scalar_lea.vmem %s11046_s0, %s7734_s27  ;;  %s163_s6 = scalar_lea.vmem [#allocation4], %s7686_s5 }
  0x1a   : > { %293 = vst.msk [vmem:[#allocation2 + $0x39] sm:$0x1] %vm279_vm2, %v9082_v2  ;;  %294 = vst.msk [vmem:[#allocation2 + $0x49] sm:$0x1] %vm279_vm2, %v9082_v2  ;;  %v169_v6 = vld [vmem:[%s9196_s30] ss:$2 sm:$0xff] }
  0x1b   : > { %295 = vst.msk [vmem:[#allocation2 + $0x59] sm:$0x1] %vm279_vm2, %v9082_v2  ;;  %296 = vst.msk [vmem:[#allocation2 + $0x69] sm:$0x1] %vm279_vm2, %v9082_v2  ;;  %v7689_v7 = vld [vmem:[%s9196_s30 + $0x10] ss:$2 sm:$0xff]  ;;  %v526_v9 = vsub.f32 %v9186_v4, %v9190_v5 }
  0x1c   : > { %297 = vst.msk [vmem:[#allocation2 + $0x79] sm:$0x1] %vm279_vm2, %v9082_v2  ;;  %298 = vst.msk [vmem:[#allocation2 + $0x89] sm:$0x1] %vm279_vm2, %v9082_v2  ;;  %v7704_v8 = vld [vmem:[%s9196_s30 + $0x1] ss:$2 sm:$0xff] }
  0x1d   : > { %280 = vst.msk [vmem:[#allocation2] sm:$0x1] %vm279_vm2, %v9082_v2  ;;  %289 = vst.msk [vmem:[#allocation2 + $0x90] sm:$0x1] %vm279_vm2, %v9082_v2  ;;  %v7705_v10 = vld [vmem:[%s9196_s30 + $0x11] ss:$2 sm:$0xff]  ;;  %v232_v11 = vmax.f32 %v169_v6, %v7704_v8 }
  0x1e   : > { %275 = vst.msk [vmem:[#allocation2 + $0x8] sm:$0x3] %vm274_vm3, %v9082_v2  ;;  %278 = vst.msk [vmem:[#allocation2 + $0x98] sm:$0x3] %vm274_vm3, %v9082_v2  ;;  %v7690_v12 = vld [vmem:[%s9196_s30 + $0x20] ss:$2 sm:$0xff]  ;;  %v233_v15 = vmax.f32 %v7689_v7, %v7705_v10 }
  0x1f   : > { %290 = vst.msk [vmem:[#allocation2 + $0x9] sm:$0x1] %vm279_vm2, %v9082_v2  ;;  %299 = vst.msk [vmem:[#allocation2 + $0x99] sm:$0x1] %vm279_vm2, %v9082_v2  ;;  %v7691_v13 = vld [vmem:[%s9196_s30 + $0x30] ss:$2 sm:$0xff] }
  0x20   : > { %v7706_v16 = vld [vmem:[%s9196_s30 + $0x21] ss:$2 sm:$0xff]  ;;  %v7707_v17 = vld [vmem:[%s9196_s30 + $0x31] ss:$2 sm:$0xff]  ;;  %v527_v18 = vand.u32 4294901760, %v526_v9  ;;  %v249_v20 = vsel %vm248_vm1, %v232_v11, -inf }
  0x21   : > { %v234_v21 = vmax.f32 %v7690_v12, %v7706_v16  ;;  %v7692_v22 = vld [vmem:[%s9196_s30 + $0x40] ss:$2 sm:$0xff]  ;;  %v250_v24 = vsel %vm248_vm1, %v233_v15, -inf  ;;  %v235_v25 = vmax.f32 %v7691_v13, %v7707_v17  ;;  %v7693_v26 = vld [vmem:[%s9196_s30 + $0x50] ss:$2 sm:$0xff]  ;;  %v1137_v15 = vsel %vm342_vm0, %v7720_v53, 0 }
  0x22   : > { %v7708_v27 = vld [vmem:[%s9196_s30 + $0x41] ss:$2 sm:$0xff]  ;;  %8236 = vmatprep.subr.mxu1 %v527_v18  ;;  %v251_v28 = vmax.f32 %v249_v20, %v250_v24  ;;  %v7709_v30 = vld [vmem:[%s9196_s30 + $0x51] ss:$2 sm:$0xff]  ;;  %v7694_v32 = vld [vmem:[%s9196_s30 + $0x60] ss:$2 sm:$0xff] }
  0x23   : > { %v252_v29 = vsel %vm248_vm1, %v234_v21, -inf  ;;  %v236_v31 = vmax.f32 %v7692_v22, %v7708_v27  ;;  %8237 = vmatpush3.msra.mxu1 %v527_v18  ;;  %v253_v34 = vsel %vm248_vm1, %v235_v25, -inf  ;;  %v237_v35 = vmax.f32 %v7693_v26, %v7709_v30  ;;  %v7695_v36 = vld [vmem:[%s9196_s30 + $0x70] ss:$2 sm:$0xff]  ;;  %v7710_v37 = vld [vmem:[%s9196_s30 + $0x61] ss:$2 sm:$0xff] }
  0x24   : > { %v309_v14 = vld [vmem:[#allocation2] sm:$0xff]  ;;  %301 = vst.msk [vmem:[#allocation2 + $0x11] sm:$0xff] %vm248_vm1, %v251_v28  ;;  %8264 = vmatprep.subr.mxu1 %v9177_v3  ;;  %v254_v38 = vmax.f32 %v252_v29, %v253_v34  ;;  %v7711_v40 = vld [vmem:[%s9196_s30 + $0x71] ss:$2 sm:$0xff]  ;;  %v238_v41 = vmax.f32 %v7694_v32, %v7710_v37  ;;  %v7697_v46 = vld [vmem:[%s9196_s30 + $0x90] ss:$2 sm:$0xff] }
  0x25   : > { %v319_v19 = vsel %vm248_vm1, %v309_v14, 0  ;;  %v255_v39 = vsel %vm248_vm1, %v236_v31, -inf  ;;  %v7696_v42 = vld [vmem:[%s9196_s30 + $0x80] ss:$2 sm:$0xff]  ;;  %v256_v44 = vsel %vm248_vm1, %v237_v35, -inf  ;;  %v239_v45 = vmax.f32 %v7695_v36, %v7711_v40  ;;  %s7735_s7 = sshll.u32 %s9127_s16, 10 }
  0x26   : > { %v9211_v23 = vand.u32 4294901760, %v319_v19  ;;  %v7712_v47 = vld [vmem:[%s9196_s30 + $0x81] ss:$2 sm:$0xff]  ;;  %302 = vst.msk [vmem:[#allocation2 + $0x21] sm:$0xff] %vm248_vm1, %v254_v38  ;;  %v257_v48 = vmax.f32 %v255_v39, %v256_v44  ;;  %v258_v49 = vsel %vm248_vm1, %v238_v41, -inf  ;;  %v9268_v25 = vand.u32 4294901760, %v1137_v15  ;;  %s10998_s11 = scalar_lea.hbm %s11049_s3, %s7735_s7 }
  0x27   : > { %v7713_v50 = vld [vmem:[%s9196_s30 + $0x91] ss:$2 sm:$0xff]  ;;  %v240_v51 = vmax.f32 %v7696_v42, %v7712_v47  ;;  %v7698_v52 = vld [vmem:[%s9196_s30 + $0xa0] ss:$2 sm:$0xff]  ;;  %v259_v55 = vsel %vm248_vm1, %v239_v45, -inf  ;;  %s7620_s8 = sshll.u32 %s163_s6, 4  ;;  %s11000_s8 = int_to_ptr.vmem [resolvable:$true] %s7620_s8 }
  0x28   : > { %v9220_v33 = vsub.f32 %v319_v19, %v9211_v23  ;;  %8238 = vmatprep.mubr.f32.mxu1 %v9211_v23  ;;  %v241_v56 = vmax.f32 %v7697_v46, %v7713_v50  ;;  %v7699_v57 = vld [vmem:[%s9196_s30 + $0xb0] ss:$2 sm:$0xff]  ;;  %v7714_v58 = vld [vmem:[%s9196_s30 + $0xa1] ss:$2 sm:$0xff]  ;;  %303 = vst.msk [vmem:[#allocation2 + $0x31] sm:$0xff] %vm248_vm1, %v257_v48  ;;  %v260_v59 = vmax.f32 %v258_v49, %v259_v55  ;;  %s11006_s16 = scalar_lea.sflag [#allocation5], %s161_s29 }
  0x29   : > { %v261_v60 = vsel %vm248_vm1, %v240_v51, -inf  ;;  %v7715_v61 = vld [vmem:[%s9196_s30 + $0xb1] ss:$2 sm:$0xff]  ;;  %v242_v62 = vmax.f32 %v7698_v52, %v7714_v58  ;;  %v7700_v63 = vld [vmem:[%s9196_s30 + $0xc0] ss:$2 sm:$0xff]  ;;  %v9291_v36 = vsub.f32 %v1137_v15, %v9268_v25  ;;  %s9020_s17 = scalar_lea.vmem %s11000_s8, 1024 }
  0x2a   : > { %v414_v43 = vand.u32 4294901760, %v9220_v33  ;;  %v262_v1 = vsel %vm248_vm1, %v241_v56, -inf  ;;  %v243_v2 = vmax.f32 %v7699_v57, %v7715_v61  ;;  %v7701_v6 = vld [vmem:[%s9196_s30 + $0xd0] ss:$2 sm:$0xff]  ;;  %v7716_v7 = vld [vmem:[%s9196_s30 + $0xc1] ss:$2 sm:$0xff]  ;;  %p9021_p11 = scmp.ne.s32.totalorder %s11000_s8, %s9020_s17 }
  0x2b   : > { %304 = vst.msk [vmem:[#allocation2 + $0x41] sm:$0xff] %vm248_vm1, %v260_v59  ;;  %v263_v8 = vmax.f32 %v261_v60, %v262_v1  ;;  %v264_v9 = vsel %vm248_vm1, %v242_v62, -inf  ;;  %v7717_v10 = vld [vmem:[%s9196_s30 + $0xd1] ss:$2 sm:$0xff]  ;;  %v244_v11 = vmax.f32 %v7700_v63, %v7716_v7  ;;  %v9320_v51 = vand.u32 4294901760, %v9291_v36  ;;  %s9083_s19 = smov [#allocation4]  }
  0x2c   : > { %v415_v54 = vsub.f32 %v9220_v33, %v414_v43  ;;  %v310_v12 = vld [vmem:[#allocation2 + $0x10] sm:$0xff]  ;;  %v265_v13 = vsel %vm248_vm1, %v243_v2, -inf  ;;  %v245_v14 = vmax.f32 %v7701_v6, %v7717_v10  ;;  %p9022_p12 = pnand %p9021_p11, %p9144_p5  ;;  %s9024_s20 = sshll.u32 %s9083_s19, 4  ;;  %s9025_s20 = int_to_ptr.vmem [resolvable:$false] %s9024_s20 }
  0x2d   : > { %v322_v16 = vsel %vm248_vm1, %v310_v12, 0  ;;  %305 = vst.msk [vmem:[#allocation2 + $0x51] sm:$0xff] %vm248_vm1, %v263_v8  ;;  %v266_v17 = vmax.f32 %v264_v9, %v265_v13  ;;  %v267_v18 = vsel %vm248_vm1, %v244_v11, -inf  ;;  %v311_v20 = vld [vmem:[#allocation2 + $0x20] sm:$0xff]  ;;  %v1319_v63 = vsub.f32 %v9291_v36, %v9320_v51  ;;  %v7719_v15 = vld [vmem:[%s9196_s30 + $0xf1] ss:$2 sm:$0xff]  ;;  %p9027_p0 = scmp.lt.s32.totalorder %s11000_s8, %s9025_s20 }
  0x2e   : > { %v416_v0 = vand.u32 4294901760, %v415_v54  ;;  %v9263_v19 = vand.u32 4294901760, %v322_v16  ;;  %v268_v21 = vsel %vm248_vm1, %v245_v14, -inf  ;;  %v325_v22 = vsel %vm248_vm1, %v311_v20, 0  ;;  %v7718_v14 = vld [vmem:[%s9196_s30 + $0xe1] ss:$2 sm:$0xff]  ;;  %p9023_p13 = pneg %p9022_p12 }
  0x2f   : > { %306 = vst.msk [vmem:[#allocation2 + $0x61] sm:$0xff] %vm248_vm1, %v266_v17  ;;  %v269_v24 = vmax.f32 %v267_v18, %v268_v21  ;;  %v9274_v27 = vand.u32 4294901760, %v325_v22  ;;  %v312_v28 = vld [vmem:[#allocation2 + $0x30] sm:$0xff]  ;;  %v1320_v10 = vand.u32 4294901760, %v1319_v63  ;;  %v7721_v63 = vld [vmem:[%s11047_s1 + $0x8] sm:$0xf] }
  0x30   : > { %8224 = vmatprep.mubr.f32.mxu0 %v416_v0  ;;  %v9271_v26 = vsub.f32 %v322_v16, %v9263_v19  ;;  %8239 = vmatmul.mubr.f32.vlgmr.msra.gmra.mxu1 %v9263_v19  ;;  %v328_v29 = vsel %vm248_vm1, %v312_v28, 0  ;;  %v1102_v16 = vld [vmem:[#allocation2 + $0x1] sm:$0xff]  ;;  %v1103_v20 = vld [vmem:[#allocation2 + $0x11] sm:$0xff]  ;;  %s9026_s24 = scalar_lea.vmem %s9025_s20, 2048 }
  0x31   : > { %8265 = vmatpush3.msra.mxu1 %v9177_v3  ;;  %307 = vst.msk [vmem:[#allocation2 + $0x71] sm:$0xff] %vm248_vm1, %v269_v24  ;;  %v9283_v31 = vsub.f32 %v325_v22, %v9274_v27  ;;  %8241 = vmatprep.mubr.f32.mxu1 %v9274_v27  ;;  %v9286_v32 = vand.u32 4294901760, %v328_v29  ;;  %v1104_v22 = vld [vmem:[#allocation2 + $0x21] sm:$0xff]  ;;  %p9028_p1 = scmp.lt.s32.totalorder %s9026_s24, %s9020_s17 }
  0x32   : > { %v9280_v30 = vand.u32 4294901760, %v9271_v26  ;;  %v313_v34 = vld [vmem:[#allocation2 + $0x40] sm:$0xff]  ;;  %8292 = vmatprep.subr.mxu1 %v9177_v3 }
  0x33   : > { %v331_v35 = vsel %vm248_vm1, %v313_v34, 0  ;;  %v9296_v38 = vand.u32 4294901760, %v9283_v31  ;;  %v9299_v39 = vsub.f32 %v328_v29, %v9286_v32  ;;  %v1116_v29 = vsel %vm248_vm1, %v1103_v20, 0  ;;  %p9029_p2 = por %p9028_p1, %p9027_p0 }
  0x34   : > { %v425_v37 = vsub.f32 %v9271_v26, %v9280_v30  ;;  %8242 = vmatmul.mubr.f32.gmra.mxu1 %v9286_v32  ;;  %v9302_v40 = vand.u32 4294901760, %v331_v35  ;;  %v314_v41 = vld [vmem:[#allocation2 + $0x50] sm:$0xff]  ;;  %v1119_v34 = vsel %vm248_vm1, %v1104_v22, 0 }
  0x35   : > { %v334_v42 = vsel %vm248_vm1, %v314_v41, 0  ;;  %v435_v45 = vsub.f32 %v9283_v31, %v9296_v38  ;;  %v9310_v46 = vand.u32 4294901760, %v9299_v39  ;;  %p9030_p3 = pnand %p9029_p2, %p9023_p13 }
  0x36   : > { %v9305_v44 = vand.u32 4294901760, %v425_v37  ;;  %v9313_v47 = vsub.f32 %v331_v35, %v9302_v40  ;;  %8244 = vmatprep.mubr.f32.mxu1 %v9302_v40  ;;  %v315_v48 = vld [vmem:[#allocation2 + $0x60] sm:$0xff]  ;;  %v9316_v49 = vand.u32 4294901760, %v334_v42  ;;  %v1105_v35 = vld [vmem:[#allocation2 + $0x31] sm:$0xff] }
  0x37   : > { %v337_v50 = vsel %vm248_vm1, %v315_v48, 0  ;;  %v9323_v52 = vand.u32 4294901760, %v435_v45  ;;  %v445_v53 = vsub.f32 %v9299_v39, %v9310_v46  ;;  %v1106_v37 = vld [vmem:[#allocation2 + $0x41] sm:$0xff]  ;;  %v9428_v45 = vand.u32 4294901760, %v1119_v34 }
  0x38   : > { %8225 = vmatmul.mubr.f32.vlgmr.msra.gmra.mxu0 %v9305_v44  ;;  %v9328_v54 = vand.u32 4294901760, %v9313_v47  ;;  %v9330_v55 = vand.u32 4294901760, %v337_v50  ;;  %v316_v56 = vld [vmem:[#allocation2 + $0x70] sm:$0xff]  ;;  %v9334_v57 = vsub.f32 %v334_v42, %v9316_v49  ;;  %8245 = vmatmul.mubr.f32.gmra.mxu1 %v9316_v49  ;;  %v9424_v42 = vand.u32 4294901760, %v1116_v29 }
  0x39   : > { %8251 = vmatpush3.msra.mxu0 %v9186_v4  ;;  %v340_v58 = vsel %vm248_vm1, %v316_v56, 0  ;;  %8227 = vmatprep.mubr.f32.mxu0 %v9323_v52  ;;  %v9339_v59 = vand.u32 4294901760, %v445_v53  ;;  %11116 = vst [vmem:[#allocation11_spill] sm:$0xff] %v9428_v45  ;;  %v1122_v48 = vsel %vm248_vm1, %v1105_v35, 0  ;;  %v1107_v53 = vld [vmem:[#allocation2 + $0x51] sm:$0xff]  ;;  %v1108_v56 = vld [vmem:[#allocation2 + $0x61] sm:$0xff] }
  0x3a   : > { %11112 = vst [vmem:[#allocation7_spill] sm:$0xff] %v9334_v57  ;;  %v455_v60 = vsub.f32 %v9313_v47, %v9328_v54  ;;  %v9344_v61 = vsub.f32 %v337_v50, %v9330_v55  ;;  %8247 = vmatprep.mubr.f32.mxu1 %v9330_v55  ;;  %v9347_v4 = vand.u32 4294901760, %v340_v58  ;;  %v9350_v62 = vand.u32 4294901760, %v9334_v57  ;;  %8278 = vmatprep.subr.mxu0 %v9190_v5 }
  0x3b   : > { %11115 = vst [vmem:[#allocation10_spill] sm:$0xff] %v9424_v42  ;;  %v1125_v50 = vsel %vm248_vm1, %v1106_v37, 0 }
  0x3c   : > { %11113 = vst [vmem:[#allocation8_spill] sm:$0xff] %v9344_v61  ;;  %8228 = vmatmul.mubr.f32.gmra.mxu0 %v9339_v59  ;;  %v9356_v0 = vand.u32 4294901760, %v455_v60  ;;  %v9359_v1 = vand.u32 4294901760, %v9344_v61  ;;  %v9362_v2 = vsub.f32 %v340_v58, %v9347_v4  ;;  %v465_v6 = vsub.f32 %v9334_v57, %v9350_v62  ;;  %8248 = vmatmul.mubr.f32.gmra.mxu1 %v9347_v4 }
  0x3d   : > { %8266 = vmatprep.mubr.f32.mxu1 %v414_v43  ;;  %v7702_v43 = vld [vmem:[%s9196_s30 + $0xe0] ss:$2 sm:$0xff]  ;;  %v9436_v60 = vsub.f32 %v1116_v29, %v9424_v42 }
  0x3e   : > { %11114 = vst [vmem:[#allocation9_spill] sm:$0xff] %v9362_v2  ;;  %8230 = vmatprep.mubr.f32.mxu0 %v9356_v0  ;;  %v475_v7 = vsub.f32 %v9344_v61, %v9359_v1  ;;  %v9371_v8 = vand.u32 4294901760, %v9362_v2  ;;  %v9375_v9 = vand.u32 4294901760, %v465_v6  ;;  %v9446_v6 = vsub.f32 %v1119_v34, %v9428_v45 }
  0x3f   : > { %11117 = vst [vmem:[#allocation12_spill] sm:$0xff] %v9436_v60 }
  0x40   : > { %v9377_v11 = vand.u32 4294901760, %v475_v7  ;;  %v485_v12 = vsub.f32 %v9362_v2, %v9371_v8  ;;  %8231 = vmatmul.mubr.f32.gmra.mxu0 %v9375_v9  ;;  %8267 = vmatmul.mubr.f32.vlgmr.msra.gmra.mxu1 %v9280_v30  ;;  %11119 = vst [vmem:[#allocation14_spill] sm:$0xff] %v9446_v6  ;;  %v9448_v7 = vand.u32 4294901760, %v1125_v50 }
  0x41   : > { %8293 = vmatpush3.msra.mxu1 %v9177_v3  ;;  %8269 = vmatprep.mubr.f32.mxu1 %v9296_v38  ;;  %v7703_v3 = vld [vmem:[%s9196_s30 + $0xf0] ss:$2 sm:$0xff] }
  0x42   : > { %8233 = vmatprep.mubr.f32.mxu0 %v9377_v11  ;;  %v9384_v13 = vand.u32 4294901760, %v485_v12  ;;  %8320 = vmatprep.subr.mxu1 %v1320_v10  ;;  %v247_v17 = vmax.f32 %v7703_v3, %v7719_v15  ;;  %11120 = vst [vmem:[#allocation15_spill] sm:$0xff] %v9448_v7  ;;  %v1131_v12 = vsel %vm248_vm1, %v1108_v56, 0  ;;  %v9461_v15 = vand.u32 4294901760, %v9436_v60 }
  0x44   : > { %8234 = vmatmul.mubr.f32.gmra.mxu0 %v9384_v13  ;;  %8270 = vmatmul.mubr.f32.gmra.mxu1 %v9310_v46  ;;  %v271_v21 = vsel %vm248_vm1, %v247_v17, -inf  ;;  %11121 = vst [vmem:[#allocation16_spill] sm:$0xff] %v9461_v15  ;;  %v9471_v17 = vand.u32 4294901760, %v9446_v6  ;;  %v1218_v22 = vsub.f32 %v9436_v60, %v9461_v15 }
  0x45   : > { %8252 = vmatprep.mubr.f32.mxu0 %v9220_v33  ;;  %8272 = vmatprep.mubr.f32.mxu1 %v9328_v54  ;;  %v246_v33 = vmax.f32 %v7702_v43, %v7718_v14  ;;  %v1109_v43 = vld [vmem:[#allocation2 + $0x71] sm:$0xff]  ;;  %v1945_v14 = vsel %vm342_vm0, %v7721_v63, 0 }
  0x46   : > { %11124 = vst [vmem:[#allocation19_spill] sm:$0xff] %v9471_v17  ;;  %v1134_v20 = vsel %vm248_vm1, %v1109_v43, 0  ;;  %v1228_v37 = vsub.f32 %v9446_v6, %v9471_v17  ;;  %v9509_v56 = vand.u32 4294901760, %v1218_v22 }
  0x47   : > { %v270_v18 = vsel %vm248_vm1, %v246_v33, -inf  ;;  %v9491_v34 = vand.u32 4294901760, %v1134_v20 }
  0x48   : > { %8253 = vmatmul.mubr.f32.vlgmr.msra.gmra.mxu0 %v9271_v26  ;;  %8273 = vmatmul.mubr.f32.gmra.mxu1 %v9350_v62  ;;  %v272_v24 = vmax.f32 %v270_v18, %v271_v21  ;;  %v9476_v18 = vand.u32 4294901760, %v1131_v12  ;;  %v9479_v21 = vand.u32 4294901760, %v1945_v14  ;;  %11132 = vst [vmem:[#allocation27_spill] sm:$0xff] %v9509_v56  ;;  %v9520_v43 = vand.u32 4294901760, %v1228_v37 }
  0x49   : > { %8279 = vmatpush3.msra.mxu0 %v9190_v5  ;;  %8255 = vmatprep.mubr.f32.mxu0 %v9283_v31  ;;  %v1113_v5 = vsel %vm248_vm1, %v1102_v16, 0  ;;  %11129 = vst [vmem:[#allocation24_spill] sm:$0xff] %v9491_v34 }
  0x4a   : > { %8275 = vmatprep.mubr.f32.mxu1 %v9359_v1  ;;  %8306 = vmatprep.subr.mxu0 %v9268_v25  ;;  %v9411_v28 = vand.u32 4294901760, %v1113_v5  ;;  %308 = vst.msk [vmem:[#allocation2 + $0x81] sm:$0xff] %vm248_vm1, %v272_v24  ;;  %11126 = vst [vmem:[#allocation21_spill] sm:$0xff] %v9476_v18 }
  0x4b   : > { %11135 = vst [vmem:[#allocation30_spill] sm:$0xff] %v9520_v43 }
  0x4c   : > { %8256 = vmatmul.mubr.f32.gmra.mxu0 %v9299_v39  ;;  %8276 = vmatmul.mubr.f32.gmra.mxu1 %v9371_v8  ;;  %v9422_v41 = vsub.f32 %v1113_v5, %v9411_v28  ;;  %v9474_v5 = vsub.f32 %v1125_v50, %v9448_v7  ;;  %v9501_v50 = vsub.f32 %v1131_v12, %v9476_v18 }
  0x4d   : > { %8258 = vmatprep.mubr.f32.mxu0 %v9313_v47  ;;  %8294 = vmatprep.mubr.f32.mxu1 %v9211_v23  ;;  %v9518_v12 = vsub.f32 %v1134_v20, %v9491_v34 }
  0x4e   : > { %v11050_v58 = vand.u32 4294901760, %v9422_v41  ;;  %11125 = vst [vmem:[#allocation20_spill] sm:$0xff] %v9474_v5  ;;  %11131 = vst [vmem:[#allocation26_spill] sm:$0xff] %v9501_v50 }
  0x4f   : > { %11134 = vst [vmem:[#allocation29_spill] sm:$0xff] %v9518_v12 }
  0x50   : > { %8259 = vmatmul.mubr.f32.gmra.mxu0 %v9334_v57  ;;  %8295 = vmatmul.mubr.f32.vlgmr.msra.gmra.mxu1 %v9263_v19  ;;  %v1208_v3 = vsub.f32 %v9422_v41, %v11050_v58 }
  0x51   : > { %8261 = vmatprep.mubr.f32.mxu0 %v9344_v61  ;;  %8321 = vmatpush3.msra.mxu1 %v1320_v10  ;;  %v1128_v10 = vsel %vm248_vm1, %v1107_v53, 0  ;;  %v9506_v53 = vsub.f32 %v1945_v14, %v9479_v21 }
  0x52   : > { %8297 = vmatprep.mubr.f32.mxu1 %v9274_v27  ;;  %8348 = vmatprep.subr.mxu1 %v9268_v25  ;;  %v9466_v33 = vand.u32 4294901760, %v1128_v10  ;;  %v1209_v35 = vand.u32 4294901760, %v1208_v3  ;;  %v9526_v3 = vand.u32 4294901760, %v9501_v50 }
  0x53   : > { %v9529_v22 = vand.u32 4294901760, %v9506_v53 }
  0x54   : > { %8262 = vmatmul.mubr.f32.gmra.mxu0 %v9362_v2  ;;  %8298 = vmatmul.mubr.f32.gmra.mxu1 %v9286_v32  ;;  %11123 = vst [vmem:[#allocation18_spill] sm:$0xff] %v9466_v33  ;;  %v9489_v29 = vsub.f32 %v1128_v10, %v9466_v33  ;;  %11136 = vst [vmem:[#allocation31_spill] sm:$0xff] %v9526_v3  ;;  %v1268_v2 = vsub.f32 %v9501_v50, %v9526_v3 }
  0x55   : > { %8280 = vmatprep.mubr.f32.mxu0 %v9211_v23  ;;  %8300 = vmatprep.mubr.f32.mxu1 %v9302_v40  ;;  %v9438_v23 = vand.u32 4294901760, %v1122_v48 }
  0x56   : > { %11128 = vst [vmem:[#allocation23_spill] sm:$0xff] %v9489_v29  ;;  %v9515_v10 = vand.u32 4294901760, %v9489_v29 }
  0x57   : > { %11118 = vst [vmem:[#allocation13_spill] sm:$0xff] %v9438_v23  ;;  %v9464_v16 = vsub.f32 %v1122_v48, %v9438_v23  ;;  %v9498_v48 = vand.u32 4294901760, %v9474_v5 }
  0x58   : > { %8281 = vmatmul.mubr.f32.vlgmr.msra.gmra.mxu0 %v9263_v19  ;;  %8301 = vmatmul.mubr.f32.gmra.mxu1 %v9316_v49  ;;  %11133 = vst [vmem:[#allocation28_spill] sm:$0xff] %v9515_v10  ;;  %v1258_v20 = vsub.f32 %v9489_v29, %v9515_v10 }
  0x59   : > { %8307 = vmatpush3.msra.mxu0 %v9268_v25  ;;  %8283 = vmatprep.mubr.f32.mxu0 %v9274_v27  ;;  %11122 = vst [vmem:[#allocation17_spill] sm:$0xff] %v9464_v16  ;;  %v9486_v24 = vand.u32 4294901760, %v9464_v16  ;;  %11130 = vst [vmem:[#allocation25_spill] sm:$0xff] %v9498_v48  ;;  %v1248_v14 = vsub.f32 %v9474_v5, %v9498_v48 }
  0x5a   : > { %8303 = vmatprep.mubr.f32.mxu1 %v9330_v55  ;;  %8334 = vmatprep.subr.mxu0 %v9291_v36 }
  0x5b   : > { %11127 = vst [vmem:[#allocation22_spill] sm:$0xff] %v9486_v24  ;;  %v1238_v63 = vsub.f32 %v9464_v16, %v9486_v24  ;;  %v9542_v37 = vand.u32 4294901760, %v1248_v14  ;;  %v9557_v14 = vand.u32 4294901760, %v1268_v2 }
  0x5c   : > { %8284 = vmatmul.mubr.f32.gmra.mxu0 %v9286_v32  ;;  %8304 = vmatmul.mubr.f32.gmra.mxu1 %v9347_v4 }
  0x5d   : > { %8286 = vmatprep.mubr.f32.mxu0 %v9302_v40  ;;  %8322 = vmatprep.mubr.f32.mxu1 %v9411_v28  ;;  %v9532_v58 = vand.u32 4294901760, %v1238_v63  ;;  %11139 = vst [vmem:[#allocation34_spill] sm:$0xff] %v9542_v37  ;;  %v2127_v63 = vsub.f32 %v9506_v53, %v9529_v22  ;;  %11141 = vst [vmem:[#allocation36_spill] sm:$0xff] %v9557_v14 }
  0x5f   : > { %11137 = vst [vmem:[#allocation32_spill] sm:$0xff] %v9532_v58  ;;  %v2128_v61 = vand.u32 4294901760, %v2127_v63 }
  0x60   : > { %8287 = vmatmul.mubr.f32.gmra.mxu0 %v9316_v49  ;;  %8323 = vmatmul.mubr.f32.vlgmr.msra.gmra.mxu1 %v9424_v42 }
  0x61   : > { %8289 = vmatprep.mubr.f32.mxu0 %v9330_v55  ;;  %8349 = vmatpush3.msra.mxu1 %v9268_v25 }
  0x62   : > { %8325 = vmatprep.mubr.f32.mxu1 %v9428_v45  ;;  %8376 = vmatprep.subr.mxu1 %v9268_v25 }
  0x64   : > { %8290 = vmatmul.mubr.f32.gmra.mxu0 %v9347_v4  ;;  %8326 = vmatmul.mubr.f32.gmra.mxu1 %v9438_v23 }
  0x65   : > { %8308 = vmatprep.mubr.f32.mxu0 %v1209_v35  ;;  %8328 = vmatprep.mubr.f32.mxu1 %v9448_v7  ;;  %v9538_v35 = vand.u32 4294901760, %v9518_v12 }
  0x67   : > { %11138 = vst [vmem:[#allocation33_spill] sm:$0xff] %v9538_v35 }
  0x68   : > { %8309 = vmatmul.mubr.f32.vlgmr.msra.gmra.mxu0 %v9509_v56  ;;  %8329 = vmatmul.mubr.f32.gmra.mxu1 %v9466_v33  ;;  %v9551_v56 = vand.u32 4294901760, %v1258_v20 }
  0x69   : > { %8335 = vmatpush3.msra.mxu0 %v9291_v36  ;;  %8311 = vmatprep.mubr.f32.mxu0 %v9520_v43  ;;  %v1278_v36 = vsub.f32 %v9518_v12, %v9538_v35  ;;  %v11142_v43 = vand.u32 4294901760, %v9422_v41 }
  0x6a   : > { %8331 = vmatprep.mubr.f32.mxu1 %v9476_v18  ;;  %8362 = vmatprep.subr.mxu0 %v9320_v51  ;;  %11140 = vst [vmem:[#allocation35_spill] sm:$0xff] %v9551_v56 }
  0x6b   : > { %v9562_v57 = vand.u32 4294901760, %v1278_v36  ;;  %v1913_v36 = vld [vmem:[#allocation2 + $0x32] sm:$0xff] }
  0x6c   : > { %8312 = vmatmul.mubr.f32.gmra.mxu0 %v9532_v58  ;;  %8332 = vmatmul.mubr.f32.gmra.mxu1 %v9491_v34 }
  0x6d   : > { %8314 = vmatprep.mubr.f32.mxu0 %v9542_v37  ;;  %8350 = vmatprep.mubr.f32.mxu1 %v11142_v43  ;;  %11143 = vst [vmem:[#allocation37_spill] sm:$0xff] %v9562_v57  ;;  %v1912_v43 = vld [vmem:[#allocation2 + $0x22] sm:$0xff] }
  0x6e   : > { %v1927_v63 = vsel %vm248_vm1, %v1912_v43, 0 }
  0x70   : > { %8315 = vmatmul.mubr.f32.gmra.mxu0 %v9551_v56  ;;  %8351 = vmatmul.mubr.f32.vlgmr.msra.gmra.mxu1 %v9461_v15 }
  0x71   : > { %8317 = vmatprep.mubr.f32.mxu0 %v9557_v14  ;;  %8377 = vmatpush3.msra.mxu1 %v9268_v25  ;;  %v1910_v25 = vld [vmem:[#allocation2 + $0x2] sm:$0xff] }
  0x72   : > { %8353 = vmatprep.mubr.f32.mxu1 %v9471_v17  ;;  %8404 = vmatprep.subr.mxu1 %v2128_v61  ;;  %v1921_v2 = vsel %vm248_vm1, %v1910_v25, 0  ;;  %v1914_v25 = vld [vmem:[#allocation2 + $0x42] sm:$0xff] }
  0x73   : > { %v1933_v43 = vsel %vm248_vm1, %v1914_v25, 0 }
  0x74   : > { %8318 = vmatmul.mubr.f32.gmra.mxu0 %v9562_v57  ;;  %8354 = vmatmul.mubr.f32.gmra.mxu1 %v9486_v24  ;;  %v9621_v25 = vand.u32 4294901760, %v1933_v43 }
  0x75   : > { %8336 = vmatprep.mubr.f32.mxu0 %v9422_v41  ;;  %8356 = vmatprep.mubr.f32.mxu1 %v9498_v48  ;;  %v1911_v41 = vld [vmem:[#allocation2 + $0x12] sm:$0xff] }
  0x76   : > { %v1924_v20 = vsel %vm248_vm1, %v1911_v41, 0  ;;  %v1930_v41 = vsel %vm248_vm1, %v1913_v36, 0 }
  0x78   : > { %8337 = vmatmul.mubr.f32.vlgmr.msra.gmra.mxu0 %v9436_v60  ;;  %8357 = vmatmul.mubr.f32.gmra.mxu1 %v9515_v10 }
  0x79   : > { %8363 = vmatpush3.msra.mxu0 %v9320_v51  ;;  %8339 = vmatprep.mubr.f32.mxu0 %v9446_v6  ;;  %v9585_v51 = vand.u32 4294901760, %v1921_v2 }
  0x7a   : > { %8359 = vmatprep.mubr.f32.mxu1 %v9526_v3  ;;  %8390 = vmatprep.subr.mxu0 %v9479_v21  ;;  %v1917_v3 = vld [vmem:[#allocation2 + $0x72] sm:$0xff] }
  0x7c   : > { %8340 = vmatmul.mubr.f32.gmra.mxu0 %v9464_v16  ;;  %8360 = vmatmul.mubr.f32.gmra.mxu1 %v9538_v35  ;;  %v1916_v35 = vld [vmem:[#allocation2 + $0x62] sm:$0xff]  ;;  %v7722_v16 = vld [vmem:[%s11047_s1 + $0xc] sm:$0xf] }
  0x7d   : > { %8342 = vmatprep.mubr.f32.mxu0 %v9474_v5  ;;  %8378 = vmatprep.mubr.f32.mxu1 %v9411_v28  ;;  %v9597_v5 = vand.u32 4294901760, %v1924_v20  ;;  %v2753_v6 = vsel %vm342_vm0, %v7722_v16, 0 }
  0x7e   : > { %v9652_v57 = vand.u32 4294901760, %v2753_v6 }
  0x80   : > { %8343 = vmatmul.mubr.f32.gmra.mxu0 %v9489_v29  ;;  %8379 = vmatmul.mubr.f32.vlgmr.msra.gmra.mxu1 %v9424_v42  ;;  %v9595_v29 = vsub.f32 %v1921_v2, %v9585_v51 }
  0x81   : > { %8345 = vmatprep.mubr.f32.mxu0 %v9501_v50  ;;  %8405 = vmatpush3.msra.mxu1 %v2128_v61  ;;  %v9601_v61 = vand.u32 4294901760, %v1927_v63  ;;  %v1915_v50 = vld [vmem:[#allocation2 + $0x52] sm:$0xff] }
  0x82   : > { %8381 = vmatprep.mubr.f32.mxu1 %v9428_v45  ;;  %8432 = vmatprep.subr.mxu1 %v9479_v21  ;;  %v1936_v2 = vsel %vm248_vm1, %v1915_v50, 0 }
  0x83   : > { %v9619_v36 = vsub.f32 %v1927_v63, %v9601_v61  ;;  %v11146_v63 = vand.u32 4294901760, %v9595_v29  ;;  %v9639_v48 = vand.u32 4294901760, %v1936_v2 }
  0x84   : > { %8346 = vmatmul.mubr.f32.gmra.mxu0 %v9518_v12  ;;  %8382 = vmatmul.mubr.f32.gmra.mxu1 %v9438_v23  ;;  %v9609_v12 = vsub.f32 %v1924_v20, %v9597_v5  ;;  %v1939_v20 = vsel %vm248_vm1, %v1916_v35, 0  ;;  %v9647_v35 = vsub.f32 %v1933_v43, %v9621_v25 }
  0x85   : > { %8364 = vmatprep.mubr.f32.mxu0 %v9411_v28  ;;  %8384 = vmatprep.mubr.f32.mxu1 %v9448_v7  ;;  %v9611_v28 = vand.u32 4294901760, %v1930_v41  ;;  %11145 = vst [vmem:[#allocation39_spill] sm:$0xff] %v9619_v36  ;;  %v2016_v10 = vsub.f32 %v9595_v29, %v11146_v63  ;;  %v9644_v16 = vand.u32 4294901760, %v9619_v36  ;;  %v9649_v24 = vand.u32 4294901760, %v1939_v20 }
  0x86   : > { %11144 = vst [vmem:[#allocation38_spill] sm:$0xff] %v9609_v12  ;;  %v9634_v60 = vand.u32 4294901760, %v9609_v12  ;;  %11148 = vst [vmem:[#allocation41_spill] sm:$0xff] %v9647_v35  ;;  %v1942_v63 = vsel %vm248_vm1, %v1917_v3, 0  ;;  %v9662_v14 = vsub.f32 %v1936_v2, %v9639_v48  ;;  %v9671_v56 = vand.u32 4294901760, %v9647_v35 }
  0x87   : > { %v9637_v50 = vsub.f32 %v1930_v41, %v9611_v28  ;;  %v9664_v43 = vand.u32 4294901760, %v1942_v63  ;;  %v2017_v3 = vand.u32 4294901760, %v2016_v10  ;;  %v2036_v15 = vsub.f32 %v9619_v36, %v9644_v16 }
  0x88   : > { %8365 = vmatmul.mubr.f32.vlgmr.msra.gmra.mxu0 %v9424_v42  ;;  %8385 = vmatmul.mubr.f32.gmra.mxu1 %v9466_v33  ;;  %v2026_v41 = vsub.f32 %v9609_v12, %v9634_v60  ;;  %11150 = vst [vmem:[#allocation43_spill] sm:$0xff] %v9662_v14  ;;  %11151 = vst [vmem:[#allocation44_spill] sm:$0xff] %v9671_v56  ;;  %v9674_v37 = vsub.f32 %v1939_v20, %v9649_v24 }
  0x89   : > { %8391 = vmatpush3.msra.mxu0 %v9479_v21  ;;  %8367 = vmatprep.mubr.f32.mxu0 %v9428_v45  ;;  %11147 = vst [vmem:[#allocation40_spill] sm:$0xff] %v9637_v50  ;;  %v9659_v17 = vand.u32 4294901760, %v9637_v50  ;;  %v9679_v2 = vsub.f32 %v2753_v6, %v9652_v57  ;;  %v9691_v20 = vsub.f32 %v1942_v63, %v9664_v43 }
  0x8a   : > { %8387 = vmatprep.mubr.f32.mxu1 %v9476_v18  ;;  %8418 = vmatprep.subr.mxu0 %v9506_v53  ;;  %11152 = vst [vmem:[#allocation45_spill] sm:$0xff] %v9674_v37  ;;  %v9682_v10 = vand.u32 4294901760, %v2026_v41  ;;  %v2056_v6 = vsub.f32 %v9647_v35, %v9671_v56  ;;  %v9699_v41 = vand.u32 4294901760, %v9674_v37 }
  0x8b   : > { %11149 = vst [vmem:[#allocation42_spill] sm:$0xff] %v9659_v17  ;;  %v2046_v58 = vsub.f32 %v9637_v50, %v9659_v17  ;;  %11155 = vst [vmem:[#allocation48_spill] sm:$0xff] %v9691_v20 }
  0x8c   : > { %8368 = vmatmul.mubr.f32.gmra.mxu0 %v9438_v23  ;;  %8388 = vmatmul.mubr.f32.gmra.mxu1 %v9491_v34  ;;  %11153 = vst [vmem:[#allocation46_spill] sm:$0xff] %v9682_v10  ;;  %11157 = vst [vmem:[#allocation50_spill] sm:$0xff] %v9699_v41  ;;  %v2076_v23 = vsub.f32 %v9674_v37, %v9699_v41 }
  0x8d   : > { %8370 = vmatprep.mubr.f32.mxu0 %v9448_v7  ;;  %8406 = vmatprep.mubr.f32.mxu1 %v9585_v51  ;;  %v9705_v7 = vand.u32 4294901760, %v2046_v58 }
  0x90   : > { %8371 = vmatmul.mubr.f32.gmra.mxu0 %v9466_v33  ;;  %8407 = vmatmul.mubr.f32.vlgmr.msra.gmra.mxu1 %v9597_v5  ;;  %v9693_v33 = vand.u32 4294901760, %v2036_v15  ;;  %v9711_v15 = vand.u32 4294901760, %v9691_v20 }
  0x91   : > { %8373 = vmatprep.mubr.f32.mxu0 %v9476_v18  ;;  %8433 = vmatpush3.msra.mxu1 %v9479_v21  ;;  %v9688_v18 = vand.u32 4294901760, %v9662_v14 }
  0x92   : > { %8409 = vmatprep.mubr.f32.mxu1 %v9601_v61  ;;  %8460 = vmatprep.subr.mxu1 %v9479_v21  ;;  %11156 = vst [vmem:[#allocation49_spill] sm:$0xff] %v9693_v33  ;;  %11158 = vst [vmem:[#allocation51_spill] sm:$0xff] %v9711_v15 }
  0x93   : > { %11154 = vst [vmem:[#allocation47_spill] sm:$0xff] %v9688_v18  ;;  %v2066_v63 = vsub.f32 %v9662_v14, %v9688_v18 }
  0x94   : > { %8374 = vmatmul.mubr.f32.gmra.mxu0 %v9491_v34  ;;  %8410 = vmatmul.mubr.f32.gmra.mxu1 %v9611_v28  ;;  %v9702_v34 = vand.u32 4294901760, %v9679_v2 }
  0x95   : > { %8392 = vmatprep.mubr.f32.mxu0 %v2017_v3  ;;  %8412 = vmatprep.mubr.f32.mxu1 %v9621_v25  ;;  %v9715_v3 = vand.u32 4294901760, %v2056_v6  ;;  %v9730_v6 = vand.u32 4294901760, %v2076_v23  ;;  %v2725_v23 = vld [vmem:[#allocation2 + $0x80] sm:$0xff] }
  0x96   : > { %v2935_v58 = vsub.f32 %v9679_v2, %v9702_v34 }
  0x98   : > { %8393 = vmatmul.mubr.f32.vlgmr.msra.gmra.mxu0 %v9682_v10  ;;  %8413 = vmatmul.mubr.f32.gmra.mxu1 %v9639_v48  ;;  %v9724_v10 = vand.u32 4294901760, %v2066_v63  ;;  %v2936_v45 = vand.u32 4294901760, %v2935_v58 }
  0x99   : > { %8419 = vmatpush3.msra.mxu0 %v9506_v53  ;;  %8395 = vmatprep.mubr.f32.mxu0 %v9693_v33  ;;  %v2086_v53 = vsub.f32 %v9691_v20, %v9711_v15  ;;  %v11159_v33 = vand.u32 4294901760, %v9595_v29 }
  0x9a   : > { %8415 = vmatprep.mubr.f32.mxu1 %v9649_v24  ;;  %8446 = vmatprep.subr.mxu0 %v9529_v22 }
  0x9b   : > { %v9735_v42 = vand.u32 4294901760, %v2086_v53 }
  0x9c   : > { %8396 = vmatmul.mubr.f32.gmra.mxu0 %v9705_v7  ;;  %8416 = vmatmul.mubr.f32.gmra.mxu1 %v9664_v43 }
  0x9d   : > { %8398 = vmatprep.mubr.f32.mxu0 %v9715_v3  ;;  %8434 = vmatprep.mubr.f32.mxu1 %v11159_v33  ;;  %11160 = vst [vmem:[#allocation52_spill] sm:$0xff] %v9735_v42 }
  0xa0   : > { %8399 = vmatmul.mubr.f32.gmra.mxu0 %v9724_v10  ;;  %8435 = vmatmul.mubr.f32.vlgmr.msra.gmra.mxu1 %v9634_v60 }
  0xa1   : > { %8401 = vmatprep.mubr.f32.mxu0 %v9730_v6  ;;  %8461 = vmatpush3.msra.mxu1 %v9479_v21  ;;  %v2750_v21 = vsel %vm248_vm1, %v2725_v23, 0  ;;  %v11171_v23 = vld [vmem:[#allocation21_spill] sm:$0xff] }
  0xa2   : > { %8437 = vmatprep.mubr.f32.mxu1 %v9644_v16  ;;  %8488 = vmatprep.subr.mxu1 %v2936_v45 }
  0xa4   : > { %8402 = vmatmul.mubr.f32.gmra.mxu0 %v9735_v42  ;;  %8438 = vmatmul.mubr.f32.gmra.mxu1 %v9659_v17 }
  0xa5   : > { %8420 = vmatprep.mubr.f32.mxu0 %v9595_v29  ;;  %8440 = vmatprep.mubr.f32.mxu1 %v9671_v56 }
  0xa8   : > { %8421 = vmatmul.mubr.f32.vlgmr.msra.gmra.mxu0 %v9609_v12  ;;  %8441 = vmatmul.mubr.f32.gmra.mxu1 %v9688_v18  ;;  %v11190_v18 = vld [vmem:[#allocation26_spill] sm:$0xff] }
  0xa9   : > { %8447 = vmatpush3.msra.mxu0 %v9529_v22  ;;  %8423 = vmatprep.mubr.f32.mxu0 %v9619_v36  ;;  %v9783_v22 = vand.u32 4294901760, %v2750_v21 }
  0xaa   : > { %8443 = vmatprep.mubr.f32.mxu1 %v9699_v41  ;;  %8474 = vmatprep.subr.mxu0 %v9652_v57  ;;  %v11188_v41 = vld [vmem:[#allocation20_spill] sm:$0xff] }
  0xab   : > { %v2892_v63 = vsub.f32 %v2750_v21, %v9783_v22 }
  0xac   : > { %8424 = vmatmul.mubr.f32.gmra.mxu0 %v9637_v50  ;;  %8444 = vmatmul.mubr.f32.gmra.mxu1 %v9711_v15  ;;  %v11185_v15 = vld [vmem:[#allocation31_spill] sm:$0xff] }
  0xad   : > { %8426 = vmatprep.mubr.f32.mxu0 %v9647_v35  ;;  %8462 = vmatprep.mubr.f32.mxu1 %v9585_v51  ;;  %v2893_v53 = vand.u32 4294901760, %v2892_v63  ;;  %v11184_v35 = vld [vmem:[#allocation14_spill] sm:$0xff] }
  0xb0   : > { %8427 = vmatmul.mubr.f32.gmra.mxu0 %v9662_v14  ;;  %8463 = vmatmul.mubr.f32.vlgmr.msra.gmra.mxu1 %v9597_v5 }
  0xb1   : > { %8429 = vmatprep.mubr.f32.mxu0 %v9674_v37  ;;  %8489 = vmatpush3.msra.mxu1 %v2936_v45  ;;  %v7723_v45 = vld [vmem:[%s11047_s1 + $0x10] sm:$0xf]  ;;  %v11180_v37 = vld [vmem:[#allocation22_spill] sm:$0xff] }
  0xb2   : > { %8465 = vmatprep.mubr.f32.mxu1 %v9601_v61  ;;  %8516 = vmatprep.subr.mxu1 %v9652_v57  ;;  %v3561_v33 = vsel %vm342_vm0, %v7723_v45, 0  ;;  %v2894_v45 = vsub.f32 %v2892_v63, %v2893_v53 }
  0xb3   : > { %v9779_v29 = vand.u32 4294901760, %v3561_v33 }
  0xb4   : > { %8430 = vmatmul.mubr.f32.gmra.mxu0 %v9691_v20  ;;  %8466 = vmatmul.mubr.f32.gmra.mxu1 %v9611_v28 }
  0xb5   : > { %8448 = vmatprep.mubr.f32.mxu0 %v9585_v51  ;;  %8468 = vmatprep.mubr.f32.mxu1 %v9621_v25  ;;  %v9790_v51 = vsub.f32 %v3561_v33, %v9779_v29 }
  0xb7   : > { %v9798_v58 = vand.u32 4294901760, %v9790_v51 }
  0xb8   : > { %8449 = vmatmul.mubr.f32.vlgmr.msra.gmra.mxu0 %v9597_v5  ;;  %8469 = vmatmul.mubr.f32.gmra.mxu1 %v9639_v48 }
  0xb9   : > { %8475 = vmatpush3.msra.mxu0 %v9652_v57  ;;  %8451 = vmatprep.mubr.f32.mxu0 %v9601_v61 }
  0xba   : > { %8471 = vmatprep.mubr.f32.mxu1 %v9649_v24  ;;  %8502 = vmatprep.subr.mxu0 %v9679_v2 }
  0xbc   : > { %8452 = vmatmul.mubr.f32.gmra.mxu0 %v9611_v28  ;;  %8472 = vmatmul.mubr.f32.gmra.mxu1 %v9664_v43 }
  0xbd   : > { %8454 = vmatprep.mubr.f32.mxu0 %v9621_v25  ;;  %8490 = vmatprep.mubr.f32.mxu1 %v9263_v19 }
  0xc0   : > { %8455 = vmatmul.mubr.f32.gmra.mxu0 %v9639_v48  ;;  %8491 = vmatmul.mubr.f32.vlgmr.msra.gmra.mxu1 %v9274_v27 }
  0xc1   : > { %8457 = vmatprep.mubr.f32.mxu0 %v9649_v24  ;;  %8517 = vmatpush3.msra.mxu1 %v9652_v57 }
  0xc2   : > { %8493 = vmatprep.mubr.f32.mxu1 %v9286_v32  ;;  %8544 = vmatprep.subr.mxu1 %v9652_v57 }
  0xc4   : > { %8458 = vmatmul.mubr.f32.gmra.mxu0 %v9664_v43  ;;  %8494 = vmatmul.mubr.f32.gmra.mxu1 %v9302_v40 }
  0xc5   : > { %8476 = vmatprep.mubr.f32.mxu0 %v9305_v44  ;;  %8496 = vmatprep.mubr.f32.mxu1 %v9316_v49  ;;  %v3743_v44 = vsub.f32 %v9790_v51, %v9798_v58 }
  0xc8   : > { %8477 = vmatmul.mubr.f32.vlgmr.msra.gmra.mxu0 %v9323_v52  ;;  %8497 = vmatmul.mubr.f32.gmra.mxu1 %v9330_v55  ;;  %v3744_v52 = vand.u32 4294901760, %v3743_v44 }
  0xc9   : > { %8503 = vmatpush3.msra.mxu0 %v9679_v2  ;;  %8479 = vmatprep.mubr.f32.mxu0 %v9339_v59  ;;  %v2895_v59 = vand.u32 4294901760, %v2894_v45 }
  0xca   : > { %8499 = vmatprep.mubr.f32.mxu1 %v9347_v4  ;;  %8530 = vmatprep.subr.mxu0 %v9702_v34 }
  0xcc   : > { %8480 = vmatmul.mubr.f32.gmra.mxu0 %v9356_v0  ;;  %8500 = vmatmul.mubr.f32.gmra.mxu1 %v9783_v22 }
  0xcd   : > { %8482 = vmatprep.mubr.f32.mxu0 %v9375_v9  ;;  %8518 = vmatprep.mubr.f32.mxu1 %v9280_v30  ;;  %v11161_v30 = vld [vmem:[#allocation7_spill] sm:$0xff]  ;;  %v11169_v9 = vld [vmem:[#allocation18_spill] sm:$0xff] }
  0xd0   : > { %8483 = vmatmul.mubr.f32.gmra.mxu0 %v9377_v11  ;;  %8519 = vmatmul.mubr.f32.vlgmr.msra.gmra.mxu1 %v9296_v38  ;;  %v7724_v38 = vld [vmem:[%s11047_s1 + $0x14] sm:$0xf] }
  0xd1   : > { %8485 = vmatprep.mubr.f32.mxu0 %v9384_v13  ;;  %8545 = vmatpush3.msra.mxu1 %v9652_v57 }
  0xd2   : > { %8521 = vmatprep.mubr.f32.mxu1 %v9310_v46  ;;  %8572 = vmatprep.subr.mxu1 %v3744_v52 }
  0xd4   : > { %8486 = vmatmul.mubr.f32.gmra.mxu0 %v2895_v59  ;;  %8522 = vmatmul.mubr.f32.gmra.mxu1 %v9328_v54  ;;  %v11165_v54 = vld [vmem:[#allocation11_spill] sm:$0xff] }
  0xd5   : > { %8504 = vmatprep.mubr.f32.mxu0 %v9271_v26  ;;  %8524 = vmatprep.mubr.f32.mxu1 %v9350_v62  ;;  %v11162_v26 = vld [vmem:[#allocation8_spill] sm:$0xff] }
  0xd8   : > { %8505 = vmatmul.mubr.f32.vlgmr.msra.gmra.mxu0 %v9283_v31  ;;  %8525 = vmatmul.mubr.f32.gmra.mxu1 %v9359_v1  ;;  %v11163_v31 = vld [vmem:[#allocation9_spill] sm:$0xff] }
  0xd9   : > { %8531 = vmatpush3.msra.mxu0 %v9702_v34  ;;  %8507 = vmatprep.mubr.f32.mxu0 %v9299_v39  ;;  %v3533_v39 = vld [vmem:[#allocation2 + $0x81] sm:$0xff]  ;;  %v11170_v34 = vld [vmem:[#allocation30_spill] sm:$0xff] }
  0xda   : > { %8527 = vmatprep.mubr.f32.mxu1 %v9371_v8  ;;  %8558 = vmatprep.subr.mxu0 %v9779_v29  ;;  %v3558_v46 = vsel %vm248_vm1, %v3533_v39, 0 }
  0xdb   : > { %v9858_v57 = vand.u32 4294901760, %v3558_v46 }
  0xdc   : > { %8508 = vmatmul.mubr.f32.gmra.mxu0 %v9313_v47  ;;  %8528 = vmatmul.mubr.f32.gmra.mxu1 %v2893_v53  ;;  %v11173_v53 = vld [vmem:[#allocation24_spill] sm:$0xff] }
  0xdd   : > { %8510 = vmatprep.mubr.f32.mxu0 %v11161_v30  ;;  %8546 = vmatprep.mubr.f32.mxu1 %v9263_v19  ;;  %v9874_v1 = vsub.f32 %v3558_v46, %v9858_v57  ;;  %v11177_v46 = vld [vmem:[#allocation36_spill] sm:$0xff] }
  0xdf   : > { %v3701_v33 = vand.u32 4294901760, %v9874_v1 }
  0xe0   : > { %8511 = vmatmul.mubr.f32.gmra.mxu0 %v11162_v26  ;;  %8547 = vmatmul.mubr.f32.vlgmr.msra.gmra.mxu1 %v9274_v27  ;;  %v11175_v26 = vld [vmem:[#allocation35_spill] sm:$0xff] }
  0xe1   : > { %8513 = vmatprep.mubr.f32.mxu0 %v11163_v31  ;;  %8573 = vmatpush3.msra.mxu1 %v3744_v52  ;;  %v11174_v52 = vld [vmem:[#allocation34_spill] sm:$0xff]  ;;  %v11176_v31 = vld [vmem:[#allocation16_spill] sm:$0xff] }
  0xe2   : > { %8549 = vmatprep.mubr.f32.mxu1 %v9286_v32  ;;  %8600 = vmatprep.subr.mxu1 %v9779_v29 }
  0xe4   : > { %8514 = vmatmul.mubr.f32.gmra.mxu0 %v2892_v63  ;;  %8550 = vmatmul.mubr.f32.gmra.mxu1 %v9302_v40 }
  0xe5   : > { %8532 = vmatprep.mubr.f32.mxu0 %v9263_v19  ;;  %8552 = vmatprep.mubr.f32.mxu1 %v9316_v49  ;;  %v4369_v19 = vsel %vm342_vm0, %v7724_v38, 0 }
  0xe6   : > { %v9852_v47 = vand.u32 4294901760, %v4369_v19 }
  0xe8   : > { %8533 = vmatmul.mubr.f32.vlgmr.msra.gmra.mxu0 %v9274_v27  ;;  %8553 = vmatmul.mubr.f32.gmra.mxu1 %v9330_v55  ;;  %v11164_v27 = vld [vmem:[#allocation10_spill] sm:$0xff]  ;;  %v9867_v62 = vsub.f32 %v4369_v19, %v9852_v47 }
  0xe9   : > { %8559 = vmatpush3.msra.mxu0 %v9779_v29  ;;  %8535 = vmatprep.mubr.f32.mxu0 %v9286_v32 }
  0xea   : > { %8555 = vmatprep.mubr.f32.mxu1 %v9347_v4  ;;  %8586 = vmatprep.subr.mxu0 %v9790_v51  ;;  %v9881_v11 = vand.u32 4294901760, %v9867_v62 }
  0xec   : > { %8536 = vmatmul.mubr.f32.gmra.mxu0 %v9302_v40  ;;  %8556 = vmatmul.mubr.f32.gmra.mxu1 %v9783_v22  ;;  %v4551_v44 = vsub.f32 %v9867_v62, %v9881_v11 }
  0xed   : > { %8538 = vmatprep.mubr.f32.mxu0 %v9316_v49  ;;  %8574 = vmatprep.mubr.f32.mxu1 %v11164_v27  ;;  %v11166_v49 = vld [vmem:[#allocation13_spill] sm:$0xff] }
  0xee   : > { %v4552_v39 = vand.u32 4294901760, %v4551_v44 }
  0xf0   : > { %v9854_v32 = vpop.f32.mrf.mxu1  ;;  %8539 = vmatmul.mubr.f32.gmra.mxu0 %v9330_v55  ;;  %8575 = vmatmul.mubr.f32.vlgmr.msra.gmra.mxu1 %v11165_v54  ;;  %v11167_v55 = vld [vmem:[#allocation15_spill] sm:$0xff] }
  0xf1   : > { %8541 = vmatprep.mubr.f32.mxu0 %v9347_v4  ;;  %8601 = vmatpush3.msra.mxu1 %v9779_v29  ;;  %v11168_v4 = vld [vmem:[#allocation27_spill] sm:$0xff] }
  0xf2   : > { %v9861_v40 = vpop.f32.mrf.mxu1  ;;  %8577 = vmatprep.mubr.f32.mxu1 %v11166_v49  ;;  %8628 = vmatprep.subr.mxu1 %v9779_v29 }
  0xf4   : > { %v9869_v0 = vpop.f32.mrf.mxu1  ;;  %8542 = vmatmul.mubr.f32.gmra.mxu0 %v9783_v22  ;;  %8578 = vmatmul.mubr.f32.gmra.mxu1 %v11167_v55  ;;  %v11172_v22 = vld [vmem:[#allocation32_spill] sm:$0xff] }
  0xf5   : > { %8560 = vmatprep.mubr.f32.mxu0 %v11168_v4  ;;  %8580 = vmatprep.mubr.f32.mxu1 %v11169_v9 }
  0xf6   : > { %v9877_v8 = vpop.f32.mrf.mxu1 }
  0xf8   : > { %v9883_v13 = vpop.f32.mrf.mxu0  ;;  %8561 = vmatmul.mubr.f32.vlgmr.msra.gmra.mxu0 %v11170_v34  ;;  %v9886_v2 = vpop.f32.mrf.mxu1  ;;  %8581 = vmatmul.mubr.f32.gmra.mxu1 %v11171_v23 }
  0xf9   : > { %8587 = vmatpush3.msra.mxu0 %v9790_v51  ;;  %8563 = vmatprep.mubr.f32.mxu0 %v11172_v22  ;;  %v3702_v51 = vsub.f32 %v9874_v1, %v3701_v33  ;;  %v11178_v22 = vld [vmem:[#allocation19_spill] sm:$0xff] }
  0xfa   : > { %v9891_v21 = vpop.f32.mrf.mxu0  ;;  %v9894_v63 = vpop.f32.mrf.mxu1  ;;  %8583 = vmatprep.mubr.f32.mxu1 %v11173_v53  ;;  %8614 = vmatprep.subr.mxu0 %v9798_v58 }
  0xfb   : > { %v3703_v4 = vand.u32 4294901760, %v3702_v51  ;;  %v11182_v51 = vld [vmem:[#allocation12_spill] sm:$0xff] }
  0xfc   : > { %v9900_v45 = vpop.f32.mrf.mxu0  ;;  %8564 = vmatmul.mubr.f32.gmra.mxu0 %v11174_v52  ;;  %v9903_v59 = vpop.f32.mrf.mxu1  ;;  %8584 = vmatmul.mubr.f32.gmra.mxu1 %v9858_v57  ;;  %v11179_v52 = vld [vmem:[#allocation37_spill] sm:$0xff] }
  0xfd   : > { %8566 = vmatprep.mubr.f32.mxu0 %v11175_v26  ;;  %8602 = vmatprep.mubr.f32.mxu1 %v11176_v31 }
  0xfe   : > { %v9907_v30 = vpop.f32.mrf.mxu0  ;;  %v9911_v38 = vpop.f32.mrf.mxu1 }
 0x100   : > { %v9913_v19 = vpop.f32.mrf.mxu0  ;;  %8567 = vmatmul.mubr.f32.gmra.mxu0 %v11177_v46  ;;  %v8268_v34 = vpop.f32.mrf.mxu1  ;;  %8603 = vmatmul.mubr.f32.vlgmr.msra.gmra.mxu1 %v11178_v22  ;;  %v11181_v46 = vld [vmem:[#allocation25_spill] sm:$0xff]  ;;  %v11183_v22 = vld [vmem:[#allocation28_spill] sm:$0xff] }
 0x101   : > { %8569 = vmatprep.mubr.f32.mxu0 %v11179_v52  ;;  %8629 = vmatpush3.msra.mxu1 %v9779_v29 }
 0x102   : > { %v9919_v20 = vpop.f32.mrf.mxu0  ;;  %v803_v26 = vpop.f32.mrf.mxu1  ;;  %8605 = vmatprep.mubr.f32.mxu1 %v11180_v37  ;;  %8656 = vmatprep.subr.mxu1 %v4552_v39 }
 0x104   : > { %v9922_v31 = vpop.f32.mrf.mxu0  ;;  %8570 = vmatmul.mubr.f32.gmra.mxu0 %v3703_v4  ;;  %v9924_v44 = vpop.f32.mrf.mxu1  ;;  %8606 = vmatmul.mubr.f32.gmra.mxu1 %v11181_v46  ;;  %v11186_v4 = vld [vmem:[#allocation17_spill] sm:$0xff] }
 0x105   : > { %8588 = vmatprep.mubr.f32.mxu0 %v11182_v51  ;;  %8608 = vmatprep.mubr.f32.mxu1 %v11183_v22  ;;  %v11187_v51 = vld [vmem:[#allocation33_spill] sm:$0xff] }
 0x106   : > { %v9929_v52 = vpop.f32.mrf.mxu0  ;;  %v9931_v29 = vpop.f32.mrf.mxu1 }
 0x108   : > { %v8254_v14 = vpop.f32.mrf.mxu0  ;;  %8589 = vmatmul.mubr.f32.vlgmr.msra.gmra.mxu0 %v11184_v35  ;;  %v9934_v37 = vpop.f32.mrf.mxu1  ;;  %8609 = vmatmul.mubr.f32.gmra.mxu1 %v11185_v15  ;;  %v11189_v35 = vld [vmem:[#allocation23_spill] sm:$0xff] }
 0x109   : > { %8615 = vmatpush3.msra.mxu0 %v9798_v58  ;;  %8591 = vmatprep.mubr.f32.mxu0 %v11186_v4 }
 0x10a   : > { %v680_v46 = vpop.f32.mrf.mxu0  ;;  %v9939_v50 = vpop.f32.mrf.mxu1  ;;  %8611 = vmatprep.mubr.f32.mxu1 %v11187_v51  ;;  %8642 = vmatprep.subr.mxu0 %v9852_v47  ;;  %v571_v51 = vadd.f32 %v9854_v32, %v9883_v13  ;;  %v583_v32 = vadd.f32 %v9869_v0, %v9900_v45 }
 0x10c   : > { %v8257_v22 = vpop.f32.mrf.mxu0  ;;  %8592 = vmatmul.mubr.f32.gmra.mxu0 %v11188_v41  ;;  %v9944_v36 = vpop.f32.mrf.mxu1  ;;  %8612 = vmatmul.mubr.f32.gmra.mxu1 %v3701_v33  ;;  %v11191_v41 = vld [vmem:[#allocation29_spill] sm:$0xff]  ;;  %v688_v17 = vadd.f32 %v8254_v14, %v571_v51  ;;  %v595_v51 = vadd.f32 %v9886_v2, %v9913_v19 }
 0x10d   : > { %8594 = vmatprep.mubr.f32.mxu0 %v11189_v35  ;;  %8630 = vmatprep.mubr.f32.mxu1 %v11164_v27  ;;  %v565_v35 = vadd.f32 %v9861_v40, %v9891_v21  ;;  %v577_v40 = vadd.f32 %v9877_v8, %v9907_v30  ;;  %v702_v21 = vadd.f32 %v8257_v22, %v583_v32 }
 0x10e   : > { %v694_v15 = vpop.f32.mrf.mxu0  ;;  %v9948_v58 = vpop.f32.mrf.mxu1  ;;  %v812_v14 = vadd.f32 %v8268_v34, %v688_v17  ;;  %v589_v17 = vadd.f32 %v9894_v63, %v9919_v20 }
 0x10f   : > { %v681_v13 = vadd.f32 %v680_v46, %v565_v35  ;;  %v695_v46 = vadd.f32 %v694_v15, %v577_v40  ;;  %v828_v19 = vadd.f32 %v9924_v44, %v702_v21 }
 0x110   : > { %v8260_v4 = vpop.f32.mrf.mxu0  ;;  %8595 = vmatmul.mubr.f32.gmra.mxu0 %v11190_v18  ;;  %v8296_v12 = vpop.f32.mrf.mxu1  ;;  %8631 = vmatmul.mubr.f32.vlgmr.msra.gmra.mxu1 %v11165_v54 }
 0x111   : > { %8597 = vmatprep.mubr.f32.mxu0 %v11191_v41  ;;  %8657 = vmatpush3.msra.mxu1 %v4552_v39  ;;  %v804_v45 = vadd.f32 %v803_v26, %v681_v13  ;;  %v716_v34 = vadd.f32 %v8260_v4, %v595_v51  ;;  %v820_v32 = vadd.f32 %v9931_v29, %v695_v46 }
 0x112   : > { %v708_v33 = vpop.f32.mrf.mxu0  ;;  %v1047_v56 = vpop.f32.mrf.mxu1  ;;  %8633 = vmatprep.mubr.f32.mxu1 %v11166_v49  ;;  %8684 = vmatprep.subr.mxu1 %v9852_v47 }
 0x113   : > { %v709_v15 = vadd.f32 %v708_v33, %v589_v17  ;;  %v844_v4 = vadd.f32 %v9934_v37, %v716_v34 }
 0x114   : > { %v8263_v18 = vpop.f32.mrf.mxu0  ;;  %8598 = vmatmul.mubr.f32.gmra.mxu0 %v9874_v1  ;;  %v8299_v42 = vpop.f32.mrf.mxu1  ;;  %8634 = vmatmul.mubr.f32.gmra.mxu1 %v11167_v55  ;;  %v7725_v1 = vld [vmem:[%s11047_s1 + $0x18] sm:$0xf] }
 0x115   : > { %8616 = vmatprep.mubr.f32.mxu0 %v11164_v27  ;;  %8636 = vmatprep.mubr.f32.mxu1 %v11169_v9  ;;  %v5178_v2 = vsel %vm342_vm0, %v7725_v1, 0 }
 0x116   : > { %v722_v39 = vpop.f32.mrf.mxu0  ;;  %v1059_v41 = vpop.f32.mrf.mxu1  ;;  %v9993_v44 = vand.u32 4294901760, %v5178_v2 }
 0x118   : > { %v8282_v0 = vpop.f32.mrf.mxu0  ;;  %8617 = vmatmul.mubr.f32.vlgmr.msra.gmra.mxu0 %v11165_v54  ;;  %v8302_v27 = vpop.f32.mrf.mxu1  ;;  %8637 = vmatmul.mubr.f32.gmra.mxu1 %v11171_v23  ;;  %v4341_v54 = vld [vmem:[#allocation2 + $0x82] sm:$0xff] }
 0x119   : > { %v940_v35 = vadd.f32 %v8282_v0, %v812_v14  ;;  %8643 = vmatpush3.msra.mxu0 %v9852_v47  ;;  %8619 = vmatprep.mubr.f32.mxu0 %v11166_v49  ;;  %v607_v49 = vadd.f32 %v9903_v59, %v9922_v31  ;;  %v601_v59 = vadd.f32 %v9911_v38, %v9929_v52 }
 0x11a   : > { %v933_v8 = vpop.f32.mrf.mxu0  ;;  %v1071_v30 = vpop.f32.mrf.mxu1  ;;  %8639 = vmatprep.mubr.f32.mxu1 %v11173_v53  ;;  %8670 = vmatprep.subr.mxu0 %v9867_v62 }
 0x11b   : > { %v1054_v26 = vadd.f32 %v8296_v12, %v940_v35  ;;  %v934_v22 = vadd.f32 %v933_v8, %v804_v45  ;;  %v4366_v12 = vsel %vm248_vm1, %v4341_v54, 0  ;;  %v730_v29 = vadd.f32 %v8263_v18, %v607_v49  ;;  %v11192_v35 = vld [vmem:[#allocation46_spill] sm:$0xff] }
 0x11c   : > { %v8285_v20 = vpop.f32.mrf.mxu0  ;;  %8620 = vmatmul.mubr.f32.gmra.mxu0 %v11167_v55  ;;  %v8305_v63 = vpop.f32.mrf.mxu1  ;;  %8640 = vmatmul.mubr.f32.gmra.mxu1 %v9858_v57  ;;  %v10002_v38 = vand.u32 4294901760, %v4366_v12  ;;  %v723_v52 = vadd.f32 %v722_v39, %v601_v59  ;;  %v11195_v59 = vld [vmem:[#allocation42_spill] sm:$0xff] }
 0x11d   : > { %1095 = vst.msk [vmem:[#allocation3 + $0x8] sm:$0xff] %vm1093_vm4, %v1054_v26  ;;  %v1048_v13 = vadd.f32 %v1047_v56, %v934_v22  ;;  %v952_v40 = vadd.f32 %v8285_v20, %v828_v19  ;;  %8622 = vmatprep.mubr.f32.mxu0 %v11169_v9  ;;  %8658 = vmatprep.mubr.f32.mxu1 %v9597_v5 }
 0x11e   : > { %v945_v31 = vpop.f32.mrf.mxu0  ;;  %v1083_v55 = vpop.f32.mrf.mxu1  ;;  %v836_v9 = vadd.f32 %v9939_v50, %v709_v15  ;;  %v860_v39 = vadd.f32 %v9944_v36, %v730_v29  ;;  %v10021_v0 = vsub.f32 %v4366_v12, %v10002_v38  ;;  %v852_v45 = vadd.f32 %v9948_v58, %v723_v52  ;;  %v11193_v58 = vld [vmem:[#allocation49_spill] sm:$0xff]  ;;  %v11194_v12 = vld [vmem:[#allocation52_spill] sm:$0xff]  ;;  %v11198_v29 = vld [vmem:[#allocation47_spill] sm:$0xff] }
 0x11f   : > { %1094 = vst.msk [vmem:[#allocation3] sm:$0xff] %vm1093_vm4, %v1048_v13  ;;  %v1066_v56 = vadd.f32 %v8299_v42, %v952_v40  ;;  %v946_v33 = vadd.f32 %v945_v31, %v820_v32 }
 0x120   : > { %v8288_v14 = vpop.f32.mrf.mxu0  ;;  %8623 = vmatmul.mubr.f32.gmra.mxu0 %v11171_v23  ;;  %v9999_v21 = vpop.f32.mrf.mxu1  ;;  %8659 = vmatmul.mubr.f32.vlgmr.msra.gmra.mxu1 %v9601_v61  ;;  %v10012_v23 = vsub.f32 %v5178_v2, %v9993_v44  ;;  %v4509_v19 = vand.u32 4294901760, %v10021_v0 }
 0x121   : > { %1097 = vst.msk [vmem:[#allocation3 + $0x18] sm:$0xff] %vm1093_vm4, %v1066_v56  ;;  %v1060_v37 = vadd.f32 %v1059_v41, %v946_v33  ;;  %v964_v18 = vadd.f32 %v8288_v14, %v844_v4  ;;  %8625 = vmatprep.mubr.f32.mxu0 %v11173_v53  ;;  %8685 = vmatpush3.msra.mxu1 %v9852_v47  ;;  %v5143_v4 = vld [vmem:[#allocation2 + $0x20] sm:$0xff] }
 0x122   : > { %v957_v42 = vpop.f32.mrf.mxu0  ;;  %v10007_v50 = vpop.f32.mrf.mxu1  ;;  %8661 = vmatprep.mubr.f32.mxu1 %v9611_v28  ;;  %8712 = vmatprep.subr.mxu1 %v9852_v47  ;;  %v5154_v14 = vsel %vm248_vm1, %v5143_v4, 0  ;;  %v11205_v4 = vld [vmem:[#allocation45_spill] sm:$0xff] }
 0x123   : > { %1096 = vst.msk [vmem:[#allocation3 + $0x10] sm:$0xff] %vm1093_vm4, %v1060_v37  ;;  %v1078_v41 = vadd.f32 %v8302_v27, %v964_v18  ;;  %v958_v1 = vadd.f32 %v957_v42, %v836_v9  ;;  %v5145_v9 = vld [vmem:[#allocation2 + $0x40] sm:$0xff]  ;;  %v11200_v42 = vld [vmem:[#allocation50_spill] sm:$0xff] }
 0x124   : > { %v8291_v51 = vpop.f32.mrf.mxu0  ;;  %8626 = vmatmul.mubr.f32.gmra.mxu0 %v9858_v57  ;;  %v10017_v53 = vpop.f32.mrf.mxu1  ;;  %8662 = vmatmul.mubr.f32.gmra.mxu1 %v9621_v25  ;;  %v10030_v57 = vand.u32 4294901760, %v10012_v23  ;;  %v11199_v37 = vld [vmem:[#allocation39_spill] sm:$0xff] }
 0x125   : > { %1099 = vst.msk [vmem:[#allocation3 + $0x28] sm:$0xff] %vm1093_vm4, %v1078_v41  ;;  %v1072_v46 = vadd.f32 %v1071_v30, %v958_v1  ;;  %v976_v36 = vadd.f32 %v8291_v51, %v860_v39  ;;  %8644 = vmatprep.mubr.f32.mxu0 %v11192_v35  ;;  %8664 = vmatprep.mubr.f32.mxu1 %v9639_v48  ;;  %v11201_v41 = vld [vmem:[#allocation40_spill] sm:$0xff]  ;;  %v5160_v1 = vsel %vm248_vm1, %v5145_v9, 0 }
 0x126   : > { %v969_v27 = vpop.f32.mrf.mxu0  ;;  %v10027_v17 = vpop.f32.mrf.mxu1  ;;  %v5360_v49 = vsub.f32 %v10012_v23, %v10030_v57 }
 0x127   : > { %1098 = vst.msk [vmem:[#allocation3 + $0x20] sm:$0xff] %vm1093_vm4, %v1072_v46  ;;  %v1090_v8 = vadd.f32 %v8305_v63, %v976_v36  ;;  %v970_v54 = vadd.f32 %v969_v27, %v852_v45  ;;  %v11202_v46 = vld [vmem:[#allocation51_spill] sm:$0xff]  ;;  %v10102_v36 = vand.u32 4294901760, %v5154_v14 }
 0x128   : > { %v10033_v2 = vpop.f32.mrf.mxu0  ;;  %8645 = vmatmul.mubr.f32.vlgmr.msra.gmra.mxu0 %v11193_v58  ;;  %v10036_v30 = vpop.f32.mrf.mxu1  ;;  %8665 = vmatmul.mubr.f32.gmra.mxu1 %v9649_v24  ;;  %v5361_v32 = vand.u32 4294901760, %v5360_v49  ;;  %v5146_v58 = vld [vmem:[#allocation2 + $0x50] sm:$0xff] }
 0x129   : > { %1101 = vst.msk [vmem:[#allocation3 + $0x38] sm:$0xff] %vm1093_vm4, %v1090_v8  ;;  %v1084_v34 = vadd.f32 %v1083_v55, %v970_v54  ;;  %8671 = vmatpush3.msra.mxu0 %v9867_v62  ;;  %8647 = vmatprep.mubr.f32.mxu0 %v9705_v7  ;;  %v4510_v7 = vsub.f32 %v10021_v0, %v4509_v19  ;;  %v11196_v55 = vld [vmem:[#allocation44_spill] sm:$0xff]  ;;  %v11203_v8 = vld [vmem:[#allocation41_spill] sm:$0xff] }
 0x12a   : > { %v10043_v26 = vpop.f32.mrf.mxu0  ;;  %v10045_v22 = vpop.f32.mrf.mxu1  ;;  %8667 = vmatprep.mubr.f32.mxu1 %v9664_v43  ;;  %8698 = vmatprep.subr.mxu0 %v9881_v11  ;;  %v1364_v9 = vadd.f32 %v9999_v21, %v10033_v2 }
 0x12b   : > { %1100 = vst.msk [vmem:[#allocation3 + $0x30] sm:$0xff] %vm1093_vm4, %v1084_v34  ;;  %v11204_v34 = vld [vmem:[#allocation43_spill] sm:$0xff] }
 0x12c   : > { %v10052_v15 = vpop.f32.mrf.mxu0  ;;  %8648 = vmatmul.mubr.f32.gmra.mxu0 %v9715_v3  ;;  %v10055_v62 = vpop.f32.mrf.mxu1  ;;  %8668 = vmatmul.mubr.f32.gmra.mxu1 %v10002_v38  ;;  %v4511_v3 = vand.u32 4294901760, %v4510_v7 }
 0x12d   : > { %8650 = vmatprep.mubr.f32.mxu0 %v9724_v10  ;;  %8686 = vmatprep.mubr.f32.mxu1 %v9634_v60 }
 0x12e   : > { %v10061_v20 = vpop.f32.mrf.mxu0  ;;  %v10063_v63 = vpop.f32.mrf.mxu1 }
 0x130   : > { %v10065_v13 = vpop.f32.mrf.mxu0  ;;  %8651 = vmatmul.mubr.f32.gmra.mxu0 %v9730_v6  ;;  %v10068_v40 = vpop.f32.mrf.mxu1  ;;  %8687 = vmatmul.mubr.f32.vlgmr.msra.gmra.mxu1 %v9644_v16  ;;  %v11197_v16 = vld [vmem:[#allocation38_spill] sm:$0xff] }
 0x131   : > { %8653 = vmatprep.mubr.f32.mxu0 %v11194_v12  ;;  %8713 = vmatpush3.msra.mxu1 %v9852_v47  ;;  %v5144_v47 = vld [vmem:[#allocation2 + $0x30] sm:$0xff] }
 0x132   : > { %v10073_v10 = vpop.f32.mrf.mxu0  ;;  %v10075_v60 = vpop.f32.mrf.mxu1  ;;  %8689 = vmatprep.mubr.f32.mxu1 %v11195_v59  ;;  %8740 = vmatprep.subr.mxu1 %v5361_v32  ;;  %v5157_v39 = vsel %vm248_vm1, %v5144_v47, 0  ;;  %v5163_v59 = vsel %vm248_vm1, %v5146_v58, 0  ;;  %v5148_v47 = vld [vmem:[#allocation2 + $0x70] sm:$0xff] }
 0x133   : > { %v10104_v35 = vand.u32 4294901760, %v5157_v39 }
 0x134   : > { %v10078_v31 = vpop.f32.mrf.mxu0  ;;  %8654 = vmatmul.mubr.f32.gmra.mxu0 %v4511_v3  ;;  %v10080_v6 = vpop.f32.mrf.mxu1  ;;  %8690 = vmatmul.mubr.f32.gmra.mxu1 %v11196_v55  ;;  %v10116_v3 = vsub.f32 %v5154_v14, %v10102_v36  ;;  %v5147_v55 = vld [vmem:[#allocation2 + $0x60] sm:$0xff]  ;;  %v11206_v14 = vld [vmem:[#allocation48_spill] sm:$0xff] }
 0x135   : > { %8672 = vmatprep.mubr.f32.mxu0 %v11197_v16  ;;  %8692 = vmatprep.mubr.f32.mxu1 %v11198_v29  ;;  %v10119_v12 = vsub.f32 %v5157_v39, %v10104_v35 }
 0x136   : > { %v10085_v56 = vpop.f32.mrf.mxu0  ;;  %v10087_v33 = vpop.f32.mrf.mxu1  ;;  %v11106_v39 = vand.u32 4294901760, %v10116_v3 }
 0x137   : > { %v11105_v2 = vand.u32 4294901760, %v10119_v12 }
 0x138   : > { %v8338_v52 = vpop.f32.mrf.mxu0  ;;  %8673 = vmatmul.mubr.f32.vlgmr.msra.gmra.mxu0 %v11199_v37  ;;  %v10091_v18 = vpop.f32.mrf.mxu1  ;;  %8693 = vmatmul.mubr.f32.gmra.mxu1 %v11200_v42 }
 0x139   : > { %8699 = vmatpush3.msra.mxu0 %v9881_v11  ;;  %8675 = vmatprep.mubr.f32.mxu0 %v11201_v41  ;;  %v10109_v11 = vand.u32 4294901760, %v5160_v1  ;;  %v10135_v41 = vand.u32 4294901760, %v5163_v59  ;;  %v1481_v21 = vadd.f32 %v8338_v52, %v1364_v9 }
 0x13a   : > { %v1473_v51 = vpop.f32.mrf.mxu0  ;;  %v10098_v45 = vpop.f32.mrf.mxu1  ;;  %8695 = vmatprep.mubr.f32.mxu1 %v11202_v46  ;;  %8726 = vmatprep.subr.mxu0 %v9993_v44  ;;  %v1358_v46 = vadd.f32 %v10007_v50, %v10043_v26  ;;  %v1370_v26 = vadd.f32 %v10027_v17, %v10061_v20  ;;  %v10175_v17 = vsub.f32 %v10119_v12, %v11105_v2 }
 0x13b   : > { %v10125_v29 = vsub.f32 %v5160_v1, %v10109_v11  ;;  %v5166_v1 = vsel %vm248_vm1, %v5147_v55, 0  ;;  %v1376_v55 = vadd.f32 %v10017_v53, %v10052_v15  ;;  %v5149_v53 = vld [vmem:[#allocation2 + $0x80] sm:$0xff]  ;;  %v1605_v15 = vadd.f32 %v10068_v40, %v1481_v21 }
 0x13c   : > { %v8341_v27 = vpop.f32.mrf.mxu0  ;;  %8676 = vmatmul.mubr.f32.gmra.mxu0 %v11203_v8  ;;  %v10107_v54 = vpop.f32.mrf.mxu1  ;;  %8696 = vmatmul.mubr.f32.gmra.mxu1 %v4509_v19  ;;  %v10153_v50 = vand.u32 4294901760, %v5166_v1  ;;  %v1388_v20 = vadd.f32 %v10036_v30, %v10065_v13  ;;  %v5172_v13 = vsel %vm248_vm1, %v5149_v53, 0 }
 0x13d   : > { %8678 = vmatprep.mubr.f32.mxu0 %v11204_v34  ;;  %8714 = vmatprep.mubr.f32.mxu1 %v9597_v5  ;;  %v11104_v34 = vand.u32 4294901760, %v10125_v29 }
 0x13e   : > { %v1487_v49 = vpop.f32.mrf.mxu0  ;;  %v10113_v7 = vpop.f32.mrf.mxu1 }
 0x13f   : > { %v10186_v40 = vsub.f32 %v10125_v29, %v11104_v34 }
 0x140   : > { %v8344_v19 = vpop.f32.mrf.mxu0  ;;  %8679 = vmatmul.mubr.f32.gmra.mxu0 %v11205_v4  ;;  %v8380_v16 = vpop.f32.mrf.mxu1  ;;  %8715 = vmatmul.mubr.f32.vlgmr.msra.gmra.mxu1 %v9601_v61  ;;  %v1474_v4 = vadd.f32 %v1473_v51, %v1358_v46  ;;  %v10170_v51 = vsub.f32 %v10116_v3, %v11106_v39 }
 0x141   : > { %8681 = vmatprep.mubr.f32.mxu0 %v11206_v14  ;;  %8741 = vmatpush3.msra.mxu1 %v5361_v32  ;;  %v5169_v32 = vsel %vm248_vm1, %v5148_v47, 0  ;;  %v10162_v47 = vsub.f32 %v5163_v59, %v10135_v41  ;;  %v1488_v59 = vadd.f32 %v1487_v49, %v1370_v26  ;;  %v1382_v49 = vadd.f32 %v10045_v22, %v10073_v10 }
 0x142   : > { %v1501_v37 = vpop.f32.mrf.mxu0  ;;  %v10130_v42 = vpop.f32.mrf.mxu1  ;;  %8717 = vmatprep.mubr.f32.mxu1 %v9611_v28  ;;  %8768 = vmatprep.subr.mxu1 %v9993_v44  ;;  %v10164_v9 = vand.u32 4294901760, %v5169_v32  ;;  %v1597_v21 = vadd.f32 %v10075_v60, %v1474_v4  ;;  %v1400_v10 = vadd.f32 %v10055_v62, %v10078_v31  ;;  %v1394_v31 = vadd.f32 %v10063_v63, %v10085_v56 }
 0x143   : > { %v5278_v60 = vand.u32 4294901760, %v10162_v47 }
 0x144   : > { %v10142_v8 = vpop.f32.mrf.mxu0  ;;  %8682 = vmatmul.mubr.f32.gmra.mxu0 %v10021_v0  ;;  %v10145_v58 = vpop.f32.mrf.mxu1  ;;  %8718 = vmatmul.mubr.f32.gmra.mxu1 %v9621_v25 }
 0x145   : > { %8700 = vmatprep.mubr.f32.mxu0 %v9597_v5  ;;  %8720 = vmatprep.mubr.f32.mxu1 %v9639_v48  ;;  %v1495_v5 = vadd.f32 %v8341_v27, %v1376_v55  ;;  %v7726_v27 = vld [vmem:[%s11047_s1 + $0x1c] sm:$0xf]  ;;  %v1509_v55 = vadd.f32 %v8344_v19, %v1388_v20  ;;  %v1613_v19 = vadd.f32 %v10087_v33, %v1488_v59  ;;  %v1886_v33 = vld [vmem:[#allocation3] sm:$0xff] }
 0x146   : > { %v10157_v0 = vpop.f32.mrf.mxu0  ;;  %v10159_v52 = vpop.f32.mrf.mxu1  ;;  %v5986_v22 = vsel %vm342_vm0, %v7726_v27, 0  ;;  %v1502_v20 = vadd.f32 %v1501_v37, %v1382_v49 }
 0x147   : > { %v1621_v4 = vadd.f32 %v10080_v6, %v1495_v5  ;;  %v1516_v56 = vadd.f32 %v10157_v0, %v1394_v31  ;;  %v5250_v0 = vand.u32 4294901760, %v10170_v51  ;;  %v1890_v31 = vld [vmem:[#allocation3 + $0x20] sm:$0xff] }
 0x148   : > { %v8366_v14 = vpop.f32.mrf.mxu0  ;;  %8701 = vmatmul.mubr.f32.vlgmr.msra.gmra.mxu0 %v9601_v61  ;;  %v10180_v46 = vpop.f32.mrf.mxu1  ;;  %8721 = vmatmul.mubr.f32.gmra.mxu1 %v9649_v24  ;;  %v10195_v61 = vsub.f32 %v5166_v1, %v10153_v50  ;;  %v5150_v1 = vld [vmem:[#allocation2 + $0x90] sm:$0xff]  ;;  %v1629_v63 = vadd.f32 %v10098_v45, %v1502_v20  ;;  %v1891_v20 = vld [vmem:[#allocation3 + $0x28] sm:$0xff] }
 0x149   : > { %v1733_v30 = vadd.f32 %v8366_v14, %v1605_v15  ;;  %8727 = vmatpush3.msra.mxu0 %v9993_v44  ;;  %8703 = vmatprep.mubr.f32.mxu0 %v9611_v28  ;;  %v10206_v28 = vsub.f32 %v5169_v32, %v10164_v9  ;;  %v1887_v14 = vld [vmem:[#allocation3 + $0x8] sm:$0xff]  ;;  %v10217_v32 = vand.u32 4294901760, %v5172_v13  ;;  %v5175_v62 = vsel %vm248_vm1, %v5150_v1, 0 }
 0x14a   : > { %v1726_v26 = vpop.f32.mrf.mxu0  ;;  %v10200_v34 = vpop.f32.mrf.mxu1  ;;  %8723 = vmatprep.mubr.f32.mxu1 %v9664_v43  ;;  %8754 = vmatprep.subr.mxu0 %v10012_v23  ;;  %v5288_v27 = vand.u32 4294901760, %v10195_v61 }
 0x14b   : > { %v1847_v53 = vadd.f32 %v8380_v16, %v1733_v30  ;;  %v1727_v15 = vadd.f32 %v1726_v26, %v1597_v21  ;;  %v10229_v21 = vand.u32 4294901760, %v5986_v22  ;;  %v10243_v26 = vand.u32 4294901760, %v5175_v62 }
 0x14c   : > { %v8369_v2 = vpop.f32.mrf.mxu0  ;;  %8704 = vmatmul.mubr.f32.gmra.mxu0 %v9621_v25  ;;  %v10214_v39 = vpop.f32.mrf.mxu1  ;;  %8724 = vmatmul.mubr.f32.gmra.mxu1 %v10002_v38  ;;  %v1637_v25 = vadd.f32 %v10091_v18, %v1509_v55  ;;  %v1889_v18 = vld [vmem:[#allocation3 + $0x18] sm:$0xff] }
 0x14d   : > { %v1895_v6 = vadd.f32 %v1887_v14, %v1847_v53  ;;  %v1841_v16 = vadd.f32 %v10130_v42, %v1727_v15  ;;  %v1745_v5 = vadd.f32 %v8369_v2, %v1621_v4  ;;  %8706 = vmatprep.mubr.f32.mxu0 %v9639_v48  ;;  %8742 = vmatprep.mubr.f32.mxu1 %v10102_v36  ;;  %v5260_v53 = vand.u32 4294901760, %v10175_v17 }
 0x14e   : > { %v1738_v37 = vpop.f32.mrf.mxu0  ;;  %v10226_v59 = vpop.f32.mrf.mxu1  ;;  %v1523_v42 = vadd.f32 %v10142_v8, %v1400_v10  ;;  %v10241_v8 = vsub.f32 %v5172_v13, %v10217_v32  ;;  %v5270_v15 = vand.u32 4294901760, %v10186_v40  ;;  %v1645_v40 = vadd.f32 %v10113_v7, %v1516_v56 }
 0x14f   : > { %1903 = vst.msk [vmem:[#allocation3 + $0x8] sm:$0xff] %vm1093_vm4, %v1895_v6  ;;  %v1894_v48 = vadd.f32 %v1886_v33, %v1841_v16  ;;  %v1859_v2 = vadd.f32 %v10145_v58, %v1745_v5  ;;  %v1739_v30 = vadd.f32 %v1738_v37, %v1613_v19  ;;  %v10275_v16 = vsub.f32 %v5175_v62, %v10243_v26 }
 0x150   : > { %v8372_v49 = vpop.f32.mrf.mxu0  ;;  %8707 = vmatmul.mubr.f32.gmra.mxu0 %v9649_v24  ;;  %v10237_v55 = vpop.f32.mrf.mxu1  ;;  %8743 = vmatmul.mubr.f32.vlgmr.msra.gmra.mxu1 %v10104_v35  ;;  %v1888_v24 = vld [vmem:[#allocation3 + $0x10] sm:$0xff]  ;;  %v1653_v51 = vadd.f32 %v10107_v54, %v1523_v42  ;;  %v5289_v54 = vsub.f32 %v10195_v61, %v5288_v27 }
 0x151   : > { %1902 = vst.msk [vmem:[#allocation3] sm:$0xff] %vm1093_vm4, %v1894_v48  ;;  %v1897_v58 = vadd.f32 %v1889_v18, %v1859_v2  ;;  %v1853_v45 = vadd.f32 %v10159_v52, %v1739_v30  ;;  %v1757_v1 = vadd.f32 %v8372_v49, %v1637_v25  ;;  %8709 = vmatprep.mubr.f32.mxu0 %v9664_v43  ;;  %v5318_v18 = vand.u32 4294901760, %v10275_v16 }
 0x152   : > { %8769 = vmatpush3.msra.mxu1 %v9993_v44  ;;  %v1750_v4 = vpop.f32.mrf.mxu0  ;;  %v10251_v13 = vpop.f32.mrf.mxu1  ;;  %8745 = vmatprep.mubr.f32.mxu1 %v10109_v11  ;;  %v5279_v52 = vsub.f32 %v10162_v47, %v5278_v60  ;;  %v10260_v43 = vsub.f32 %v5986_v22, %v10229_v21  ;;  %v5298_v22 = vand.u32 4294901760, %v10206_v28 }
 0x153   : > { %8796 = vmatprep.subr.mxu1 %v9993_v44  ;;  %1905 = vst.msk [vmem:[#allocation3 + $0x18] sm:$0xff] %vm1093_vm4, %v1897_v58  ;;  %v1896_v17 = vadd.f32 %v1888_v24, %v1853_v45  ;;  %v1871_v10 = vadd.f32 %v10180_v46, %v1757_v1  ;;  %v1751_v19 = vadd.f32 %v1750_v4, %v1629_v63  ;;  %v5290_v58 = vand.u32 4294901760, %v5289_v54  ;;  %v1892_v1 = vld [vmem:[#allocation3 + $0x30] sm:$0xff] }
 0x154   : > { %v8375_v14 = vpop.f32.mrf.mxu0  ;;  %8710 = vmatmul.mubr.f32.gmra.mxu0 %v10002_v38  ;;  %v10267_v6 = vpop.f32.mrf.mxu1  ;;  %8746 = vmatmul.mubr.f32.gmra.mxu1 %v10135_v41  ;;  %v5308_v38 = vand.u32 4294901760, %v10241_v8  ;;  %v10284_v37 = vand.u32 4294901760, %v10260_v43  ;;  %v5280_v30 = vand.u32 4294901760, %v5279_v52  ;;  %v5299_v56 = vsub.f32 %v10206_v28, %v5298_v22 }
 0x155   : > { %1904 = vst.msk [vmem:[#allocation3 + $0x10] sm:$0xff] %vm1093_vm4, %v1896_v17  ;;  %v1899_v7 = vadd.f32 %v1891_v20, %v1871_v10  ;;  %v1865_v46 = vadd.f32 %v10200_v34, %v1751_v19  ;;  %v1769_v5 = vadd.f32 %v8375_v14, %v1653_v51  ;;  %8728 = vmatprep.mubr.f32.mxu0 %v5250_v0  ;;  %v1893_v34 = vld [vmem:[#allocation3 + $0x38] sm:$0xff]  ;;  %v11207_v17 = vand.u32 4294901760, %v10116_v3 }
 0x156   : > { %8748 = vmatprep.mubr.f32.mxu1 %v10153_v50  ;;  %v1762_v25 = vpop.f32.mrf.mxu0  ;;  %v10281_v33 = vpop.f32.mrf.mxu1  ;;  %v5309_v45 = vsub.f32 %v10241_v8, %v5308_v38  ;;  %v5319_v52 = vsub.f32 %v10275_v16, %v5318_v18 }
 0x157   : > { %1907 = vst.msk [vmem:[#allocation3 + $0x28] sm:$0xff] %vm1093_vm4, %v1899_v7  ;;  %v1898_v62 = vadd.f32 %v1890_v31, %v1865_v46  ;;  %v1883_v42 = vadd.f32 %v10214_v39, %v1769_v5  ;;  %v1763_v48 = vadd.f32 %v1762_v25, %v1645_v40  ;;  %v11208_v7 = vand.u32 4294901760, %v10119_v12 }
 0x158   : > { %v10288_v2 = vpop.f32.mrf.mxu0  ;;  %8729 = vmatmul.mubr.f32.vlgmr.msra.gmra.mxu0 %v5260_v53  ;;  %v10290_v63 = vpop.f32.mrf.mxu1  ;;  %8749 = vmatmul.mubr.f32.gmra.mxu1 %v10164_v9  ;;  %v5300_v53 = vand.u32 4294901760, %v5299_v56  ;;  %v5310_v51 = vand.u32 4294901760, %v5309_v45  ;;  %v5320_v14 = vand.u32 4294901760, %v5319_v52  ;;  %v11209_v31 = vand.u32 4294901760, %v10125_v29 }
 0x159   : > { %1906 = vst.msk [vmem:[#allocation3 + $0x20] sm:$0xff] %vm1093_vm4, %v1898_v62  ;;  %v1901_v49 = vadd.f32 %v1893_v34, %v1883_v42  ;;  %v1877_v39 = vadd.f32 %v10226_v59, %v1763_v48  ;;  %8755 = vmatpush3.msra.mxu0 %v10012_v23  ;;  %8731 = vmatprep.mubr.f32.mxu0 %v5270_v15  ;;  %v5952_v34 = vld [vmem:[#allocation2 + $0x31] sm:$0xff] }
 0x15a   : > { %v10303_v0 = vpop.f32.mrf.mxu0  ;;  %v10305_v24 = vpop.f32.mrf.mxu1  ;;  %8751 = vmatprep.mubr.f32.mxu1 %v10217_v32  ;;  %8782 = vmatprep.subr.mxu0 %v10030_v57  ;;  %v6168_v59 = vsub.f32 %v10260_v43, %v10284_v37 }
 0x15b   : > { %1909 = vst.msk [vmem:[#allocation3 + $0x38] sm:$0xff] %vm1093_vm4, %v1901_v49  ;;  %v1900_v23 = vadd.f32 %v1892_v1, %v1877_v39  ;;  %v5955_v1 = vld [vmem:[#allocation2 + $0x61] sm:$0xff] }
 0x15c   : > { %v10312_v4 = vpop.f32.mrf.mxu0  ;;  %8732 = vmatmul.mubr.f32.gmra.mxu0 %v5280_v30  ;;  %v10314_v15 = vpop.f32.mrf.mxu1  ;;  %8752 = vmatmul.mubr.f32.gmra.mxu1 %v10243_v26  ;;  %v6169_v40 = vand.u32 4294901760, %v6168_v59  ;;  %v5953_v30 = vld [vmem:[#allocation2 + $0x41] sm:$0xff]  ;;  %v5974_v52 = vsel %vm248_vm1, %v5955_v1, 0 }
 0x15d   : > { %1908 = vst.msk [vmem:[#allocation3 + $0x30] sm:$0xff] %vm1093_vm4, %v1900_v23  ;;  %8734 = vmatprep.mubr.f32.mxu0 %v5290_v58  ;;  %8770 = vmatprep.mubr.f32.mxu1 %v11207_v17  ;;  %v5954_v58 = vld [vmem:[#allocation2 + $0x51] sm:$0xff] }
 0x15e   : > { %v10323_v10 = vpop.f32.mrf.mxu0  ;;  %v10325_v19 = vpop.f32.mrf.mxu1  ;;  %v5971_v59 = vsel %vm248_vm1, %v5954_v58, 0 }
 0x15f   : > { %v10393_v17 = vand.u32 4294901760, %v5971_v59 }
 0x160   : > { %v10327_v20 = vpop.f32.mrf.mxu0  ;;  %8735 = vmatmul.mubr.f32.gmra.mxu0 %v5300_v53  ;;  %v10329_v54 = vpop.f32.mrf.mxu1  ;;  %8771 = vmatmul.mubr.f32.vlgmr.msra.gmra.mxu1 %v11208_v7 }
 0x161   : > { %8737 = vmatprep.mubr.f32.mxu0 %v5310_v51  ;;  %8797 = vmatpush3.msra.mxu1 %v9993_v44  ;;  %v5951_v44 = vld [vmem:[#allocation2 + $0x21] sm:$0xff] }
 0x162   : > { %v10334_v46 = vpop.f32.mrf.mxu0  ;;  %v10336_v5 = vpop.f32.mrf.mxu1  ;;  %8773 = vmatprep.mubr.f32.mxu1 %v11209_v31  ;;  %8824 = vmatprep.subr.mxu1 %v6169_v40 }
 0x164   : > { %v10340_v25 = vpop.f32.mrf.mxu0  ;;  %8738 = vmatmul.mubr.f32.gmra.mxu0 %v5320_v14  ;;  %v10342_v62 = vpop.f32.mrf.mxu1  ;;  %8774 = vmatmul.mubr.f32.gmra.mxu1 %v5278_v60  ;;  %v5965_v60 = vsel %vm248_vm1, %v5952_v34, 0  ;;  %v2172_v14 = vadd.f32 %v10237_v55, %v10288_v2  ;;  %v2166_v34 = vadd.f32 %v10251_v13, %v10303_v0  ;;  %v2184_v13 = vadd.f32 %v10267_v6, %v10312_v4 }
 0x165   : > { %8756 = vmatprep.mubr.f32.mxu0 %v10116_v3  ;;  %8776 = vmatprep.mubr.f32.mxu1 %v5288_v27  ;;  %v5962_v3 = vsel %vm248_vm1, %v5951_v44, 0 }
 0x166   : > { %v10349_v42 = vpop.f32.mrf.mxu0  ;;  %v10351_v48 = vpop.f32.mrf.mxu1 }
 0x168   : > { %v8422_v56 = vpop.f32.mrf.mxu0  ;;  %8757 = vmatmul.mubr.f32.vlgmr.msra.gmra.mxu0 %v10119_v12  ;;  %v10354_v49 = vpop.f32.mrf.mxu1  ;;  %8777 = vmatmul.mubr.f32.gmra.mxu1 %v5298_v22  ;;  %v5968_v12 = vsel %vm248_vm1, %v5953_v30, 0  ;;  %v10368_v22 = vand.u32 4294901760, %v5962_v3 }
 0x169   : > { %8783 = vmatpush3.msra.mxu0 %v10030_v57  ;;  %8759 = vmatprep.mubr.f32.mxu0 %v10125_v29  ;;  %v10375_v29 = vand.u32 4294901760, %v5965_v60  ;;  %v2289_v30 = vadd.f32 %v8422_v56, %v2172_v14  ;;  %v2178_v56 = vadd.f32 %v10281_v33, %v10323_v10  ;;  %v2196_v33 = vadd.f32 %v10290_v63, %v10327_v20 }
 0x16a   : > { %v2281_v27 = vpop.f32.mrf.mxu0  ;;  %v10362_v39 = vpop.f32.mrf.mxu1  ;;  %8779 = vmatprep.mubr.f32.mxu1 %v5308_v38  ;;  %8810 = vmatprep.subr.mxu0 %v10229_v21  ;;  %v10379_v38 = vand.u32 4294901760, %v5968_v12 }
 0x16b   : > { %v2282_v0 = vadd.f32 %v2281_v27, %v2166_v34  ;;  %v2413_v6 = vadd.f32 %v10329_v54, %v2289_v30  ;;  %v7727_v34 = vld [vmem:[%s11047_s1 + $0x20] sm:$0xf]  ;;  %v2190_v30 = vadd.f32 %v10305_v24, %v10334_v46  ;;  %v2208_v24 = vadd.f32 %v10314_v15, %v10340_v25 }
 0x16c   : > { %v8425_v45 = vpop.f32.mrf.mxu0  ;;  %8760 = vmatmul.mubr.f32.gmra.mxu0 %v10162_v47  ;;  %v10371_v57 = vpop.f32.mrf.mxu1  ;;  %8780 = vmatmul.mubr.f32.gmra.mxu1 %v5318_v18  ;;  %v10385_v47 = vsub.f32 %v5962_v3, %v10368_v22  ;;  %v10399_v7 = vsub.f32 %v5968_v12, %v10379_v38  ;;  %v10418_v3 = vsub.f32 %v5971_v59, %v10393_v17  ;;  %v5957_v59 = vld [vmem:[#allocation2 + $0x81] sm:$0xff] }
 0x16d   : > { %8762 = vmatprep.mubr.f32.mxu0 %v10195_v61  ;;  %8798 = vmatprep.mubr.f32.mxu1 %v10102_v36  ;;  %v10391_v61 = vsub.f32 %v5965_v60, %v10375_v29  ;;  %v5956_v60 = vld [vmem:[#allocation2 + $0x71] sm:$0xff]  ;;  %v2303_v4 = vadd.f32 %v8425_v45, %v2184_v13  ;;  %v2405_v63 = vadd.f32 %v10336_v5, %v2282_v0 }
 0x16e   : > { %v2295_v23 = vpop.f32.mrf.mxu0  ;;  %v10382_v53 = vpop.f32.mrf.mxu1  ;;  %v11109_v55 = vand.u32 4294901760, %v10385_v47  ;;  %v5977_v27 = vsel %vm248_vm1, %v5956_v60, 0  ;;  %v6086_v45 = vand.u32 4294901760, %v10418_v3  ;;  %v5958_v0 = vld [vmem:[#allocation2 + $0x91] sm:$0xff]  ;;  %v2202_v25 = vadd.f32 %v10325_v19, %v10349_v42 }
 0x16f   : > { %v2296_v10 = vadd.f32 %v2295_v23, %v2178_v56  ;;  %v5980_v23 = vsel %vm248_vm1, %v5957_v59, 0  ;;  %v10472_v5 = vand.u32 4294901760, %v5977_v27  ;;  %v5983_v15 = vsel %vm248_vm1, %v5958_v0, 0 }
 0x170   : > { %v8428_v18 = vpop.f32.mrf.mxu0  ;;  %8763 = vmatmul.mubr.f32.gmra.mxu0 %v10206_v28  ;;  %v8464_v51 = vpop.f32.mrf.mxu1  ;;  %8799 = vmatmul.mubr.f32.vlgmr.msra.gmra.mxu1 %v10104_v35  ;;  %v10405_v28 = vand.u32 4294901760, %v5974_v52 }
 0x171   : > { %8765 = vmatprep.mubr.f32.mxu0 %v10241_v8  ;;  %8825 = vmatpush3.msra.mxu1 %v6169_v40  ;;  %v11108_v40 = vand.u32 4294901760, %v10391_v61  ;;  %v2317_v60 = vadd.f32 %v8428_v18, %v2196_v33  ;;  %v2421_v46 = vadd.f32 %v10351_v48, %v2296_v10  ;;  %v2695_v33 = vld [vmem:[#allocation3 + $0x8] sm:$0xff]  ;;  %v2694_v48 = vld [vmem:[#allocation3] sm:$0xff] }
 0x172   : > { %v2309_v31 = vpop.f32.mrf.mxu0  ;;  %v10401_v44 = vpop.f32.mrf.mxu1  ;;  %8801 = vmatprep.mubr.f32.mxu1 %v10109_v11  ;;  %8852 = vmatprep.subr.mxu1 %v10229_v21  ;;  %v10432_v1 = vsub.f32 %v5974_v52, %v10405_v28 }
 0x173   : > { %v10450_v54 = vsub.f32 %v10391_v61, %v11108_v40  ;;  %v2310_v18 = vadd.f32 %v2309_v31, %v2190_v30 }
 0x174   : > { %v10410_v8 = vpop.f32.mrf.mxu0  ;;  %8766 = vmatmul.mubr.f32.gmra.mxu0 %v10275_v16  ;;  %v10413_v2 = vpop.f32.mrf.mxu1  ;;  %8802 = vmatmul.mubr.f32.gmra.mxu1 %v10135_v41  ;;  %v11107_v16 = vand.u32 4294901760, %v10399_v7 }
 0x175   : > { %8784 = vmatprep.mubr.f32.mxu0 %v10102_v36  ;;  %8804 = vmatprep.mubr.f32.mxu1 %v10153_v50  ;;  %v10438_v36 = vsub.f32 %v10385_v47, %v11109_v55  ;;  %v2437_v19 = vadd.f32 %v10362_v39, %v2310_v18 }
 0x176   : > { %v10427_v12 = vpop.f32.mrf.mxu0  ;;  %v10429_v58 = vpop.f32.mrf.mxu1 }
 0x177   : > { %v2324_v42 = vadd.f32 %v10427_v12, %v2202_v25  ;;  %v6058_v12 = vand.u32 4294901760, %v10438_v36  ;;  %v2698_v25 = vld [vmem:[#allocation3 + $0x20] sm:$0xff] }
 0x178   : > { %v8450_v14 = vpop.f32.mrf.mxu0  ;;  %8785 = vmatmul.mubr.f32.vlgmr.msra.gmra.mxu0 %v10104_v35  ;;  %v10444_v52 = vpop.f32.mrf.mxu1  ;;  %8805 = vmatmul.mubr.f32.gmra.mxu1 %v10164_v9  ;;  %v10462_v35 = vsub.f32 %v10399_v7, %v11107_v16  ;;  %v6794_v16 = vsel %vm342_vm0, %v7727_v34, 0  ;;  %v10495_v34 = vsub.f32 %v5977_v27, %v10472_v5 }
 0x179   : > { %v2541_v20 = vadd.f32 %v8450_v14, %v2413_v6  ;;  %8811 = vmatpush3.msra.mxu0 %v10229_v21  ;;  %8787 = vmatprep.mubr.f32.mxu0 %v10109_v11  ;;  %v2429_v6 = vadd.f32 %v10342_v62, %v2303_v4  ;;  %v10483_v11 = vand.u32 4294901760, %v5980_v23 }
 0x17a   : > { %v2534_v13 = vpop.f32.mrf.mxu0  ;;  %v10467_v56 = vpop.f32.mrf.mxu1  ;;  %8807 = vmatprep.mubr.f32.mxu1 %v10217_v32  ;;  %8838 = vmatprep.subr.mxu0 %v10260_v43 }
 0x17b   : > { %v2655_v14 = vadd.f32 %v8464_v51, %v2541_v20  ;;  %v2535_v59 = vadd.f32 %v2534_v13, %v2405_v63 }
 0x17c   : > { %v8453_v40 = vpop.f32.mrf.mxu0  ;;  %8788 = vmatmul.mubr.f32.gmra.mxu0 %v10135_v41  ;;  %v10480_v55 = vpop.f32.mrf.mxu1  ;;  %8808 = vmatmul.mubr.f32.gmra.mxu1 %v10243_v26  ;;  %v2445_v41 = vadd.f32 %v10354_v49, %v2317_v60  ;;  %v2697_v49 = vld [vmem:[#allocation3 + $0x18] sm:$0xff]  ;;  %v10511_v60 = vand.u32 4294901760, %v5983_v15 }
 0x17d   : > { %v2703_v62 = vadd.f32 %v2695_v33, %v2655_v14  ;;  %v2649_v51 = vadd.f32 %v10401_v44, %v2535_v59  ;;  %v2553_v4 = vadd.f32 %v8453_v40, %v2429_v6  ;;  %8790 = vmatprep.mubr.f32.mxu0 %v10153_v50  ;;  %8826 = vmatprep.mubr.f32.mxu1 %v10368_v22  ;;  %v10497_v44 = vand.u32 4294901760, %v6794_v16 }
 0x17e   : > { %v2546_v31 = vpop.f32.mrf.mxu0  ;;  %v10492_v10 = vpop.f32.mrf.mxu1  ;;  %v2331_v50 = vadd.f32 %v10410_v8, %v2208_v24  ;;  %v10509_v8 = vsub.f32 %v5980_v23, %v10483_v11  ;;  %v6068_v6 = vand.u32 4294901760, %v10450_v54  ;;  %v6078_v14 = vand.u32 4294901760, %v10462_v35 }
 0x17f   : > { %2711 = vst.msk [vmem:[#allocation3 + $0x8] sm:$0xff] %vm1093_vm4, %v2703_v62  ;;  %v2702_v40 = vadd.f32 %v2694_v48, %v2649_v51  ;;  %v2667_v63 = vadd.f32 %v10413_v2, %v2553_v4  ;;  %v2547_v20 = vadd.f32 %v2546_v31, %v2421_v46  ;;  %v2453_v35 = vadd.f32 %v10382_v53, %v2324_v42  ;;  %v2699_v46 = vld [vmem:[#allocation3 + $0x28] sm:$0xff] }
 0x180   : > { %v8456_v30 = vpop.f32.mrf.mxu0  ;;  %8791 = vmatmul.mubr.f32.gmra.mxu0 %v10164_v9  ;;  %v10505_v27 = vpop.f32.mrf.mxu1  ;;  %8827 = vmatmul.mubr.f32.vlgmr.msra.gmra.mxu1 %v10375_v29  ;;  %v2696_v9 = vld [vmem:[#allocation3 + $0x10] sm:$0xff]  ;;  %v2461_v36 = vadd.f32 %v10371_v57, %v2331_v50  ;;  %v6106_v62 = vand.u32 4294901760, %v10495_v34  ;;  %v10543_v51 = vsub.f32 %v5983_v15, %v10511_v60 }
 0x181   : > { %2710 = vst.msk [vmem:[#allocation3] sm:$0xff] %vm1093_vm4, %v2702_v40  ;;  %v2705_v2 = vadd.f32 %v2697_v49, %v2667_v63  ;;  %v2661_v39 = vadd.f32 %v10429_v58, %v2547_v20  ;;  %v2565_v13 = vadd.f32 %v8456_v30, %v2445_v41  ;;  %8793 = vmatprep.mubr.f32.mxu0 %v10217_v32 }
 0x182   : > { %8853 = vmatpush3.msra.mxu1 %v10229_v21  ;;  %v2558_v0 = vpop.f32.mrf.mxu0  ;;  %v10519_v23 = vpop.f32.mrf.mxu1  ;;  %8829 = vmatprep.mubr.f32.mxu1 %v10379_v38  ;;  %v6087_v58 = vsub.f32 %v10418_v3, %v6086_v45  ;;  %v10528_v32 = vsub.f32 %v6794_v16, %v10497_v44  ;;  %v11210_v16 = vand.u32 4294901760, %v10432_v1  ;;  %v6107_v42 = vsub.f32 %v10495_v34, %v6106_v62 }
 0x183   : > { %8880 = vmatprep.subr.mxu1 %v10229_v21  ;;  %2713 = vst.msk [vmem:[#allocation3 + $0x18] sm:$0xff] %vm1093_vm4, %v2705_v2  ;;  %v2704_v54 = vadd.f32 %v2696_v9, %v2661_v39  ;;  %v2679_v59 = vadd.f32 %v10444_v52, %v2565_v13  ;;  %v2559_v24 = vadd.f32 %v2558_v0, %v2437_v19  ;;  %v6126_v49 = vand.u32 4294901760, %v10543_v51  ;;  %v2700_v13 = vld [vmem:[#allocation3 + $0x30] sm:$0xff] }
 0x184   : > { %v8459_v18 = vpop.f32.mrf.mxu0  ;;  %8794 = vmatmul.mubr.f32.gmra.mxu0 %v10243_v26  ;;  %v10535_v33 = vpop.f32.mrf.mxu1  ;;  %8830 = vmatmul.mubr.f32.gmra.mxu1 %v10393_v17  ;;  %v6097_v57 = vsub.f32 %v10432_v1, %v11210_v16  ;;  %v6116_v26 = vand.u32 4294901760, %v10509_v8  ;;  %v10552_v31 = vand.u32 4294901760, %v10528_v32  ;;  %v6088_v20 = vand.u32 4294901760, %v6087_v58 }
 0x185   : > { %2712 = vst.msk [vmem:[#allocation3 + $0x10] sm:$0xff] %vm1093_vm4, %v2704_v54  ;;  %v2707_v53 = vadd.f32 %v2699_v46, %v2679_v59  ;;  %v2673_v52 = vadd.f32 %v10467_v56, %v2559_v24  ;;  %v2577_v4 = vadd.f32 %v8459_v18, %v2461_v36  ;;  %8812 = vmatprep.mubr.f32.mxu0 %v6058_v12  ;;  %v2701_v56 = vld [vmem:[#allocation3 + $0x38] sm:$0xff]  ;;  %v11211_v54 = vand.u32 4294901760, %v10385_v47 }
 0x186   : > { %8832 = vmatprep.mubr.f32.mxu1 %v10405_v28  ;;  %v2570_v41 = vpop.f32.mrf.mxu0  ;;  %v10549_v48 = vpop.f32.mrf.mxu1  ;;  %v6098_v2 = vand.u32 4294901760, %v6097_v57  ;;  %v6117_v39 = vsub.f32 %v10509_v8, %v6116_v26  ;;  %v6127_v58 = vsub.f32 %v10543_v51, %v6126_v49  ;;  %v11212_v57 = vand.u32 4294901760, %v10391_v61 }
 0x187   : > { %2715 = vst.msk [vmem:[#allocation3 + $0x28] sm:$0xff] %vm1093_vm4, %v2707_v53  ;;  %v2706_v15 = vadd.f32 %v2698_v25, %v2673_v52  ;;  %v2691_v50 = vadd.f32 %v10480_v55, %v2577_v4  ;;  %v2571_v40 = vadd.f32 %v2570_v41, %v2453_v35  ;;  %v11213_v4 = vand.u32 4294901760, %v10399_v7 }
 0x188   : > { %v10556_v63 = vpop.f32.mrf.mxu0  ;;  %8813 = vmatmul.mubr.f32.vlgmr.msra.gmra.mxu0 %v6068_v6  ;;  %v10558_v19 = vpop.f32.mrf.mxu1  ;;  %8833 = vmatmul.mubr.f32.gmra.mxu1 %v10472_v5  ;;  %v6108_v6 = vand.u32 4294901760, %v6107_v42  ;;  %v6118_v36 = vand.u32 4294901760, %v6117_v39  ;;  %v6128_v18 = vand.u32 4294901760, %v6127_v58  ;;  %v6762_v39 = vld [vmem:[#allocation2 + $0x52] sm:$0xff] }
 0x189   : > { %2714 = vst.msk [vmem:[#allocation3 + $0x20] sm:$0xff] %vm1093_vm4, %v2706_v15  ;;  %v2709_v30 = vadd.f32 %v2701_v56, %v2691_v50  ;;  %v2685_v55 = vadd.f32 %v10492_v10, %v2571_v40  ;;  %8839 = vmatpush3.msra.mxu0 %v10260_v43  ;;  %8815 = vmatprep.mubr.f32.mxu0 %v6078_v14  ;;  %v6759_v15 = vld [vmem:[#allocation2 + $0x22] sm:$0xff]  ;;  %v6760_v56 = vld [vmem:[#allocation2 + $0x32] sm:$0xff] }
 0x18a   : > { %v10571_v12 = vpop.f32.mrf.mxu0  ;;  %v10573_v9 = vpop.f32.mrf.mxu1  ;;  %8835 = vmatprep.mubr.f32.mxu1 %v10483_v11  ;;  %8866 = vmatprep.subr.mxu0 %v10284_v37  ;;  %v6976_v10 = vsub.f32 %v10528_v32, %v10552_v31 }
 0x18b   : > { %2717 = vst.msk [vmem:[#allocation3 + $0x38] sm:$0xff] %vm1093_vm4, %v2709_v30  ;;  %v2708_v43 = vadd.f32 %v2700_v13, %v2685_v55 }
 0x18c   : > { %v10580_v0 = vpop.f32.mrf.mxu0  ;;  %8816 = vmatmul.mubr.f32.gmra.mxu0 %v6088_v20  ;;  %v10582_v14 = vpop.f32.mrf.mxu1  ;;  %8836 = vmatmul.mubr.f32.gmra.mxu1 %v10511_v60  ;;  %v6977_v35 = vand.u32 4294901760, %v6976_v10  ;;  %v6770_v20 = vsel %vm248_vm1, %v6759_v15, 0  ;;  %v2974_v15 = vadd.f32 %v10519_v23, %v10571_v12 }
 0x18d   : > { %2716 = vst.msk [vmem:[#allocation3 + $0x30] sm:$0xff] %vm1093_vm4, %v2708_v43  ;;  %8818 = vmatprep.mubr.f32.mxu0 %v6098_v2  ;;  %8854 = vmatprep.mubr.f32.mxu1 %v11211_v54  ;;  %v2980_v54 = vadd.f32 %v10505_v27, %v10556_v63  ;;  %v2992_v23 = vadd.f32 %v10535_v33, %v10580_v0 }
 0x18e   : > { %v10591_v59 = vpop.f32.mrf.mxu0  ;;  %v10593_v24 = vpop.f32.mrf.mxu1 }
 0x190   : > { %v10595_v46 = vpop.f32.mrf.mxu0  ;;  %8819 = vmatmul.mubr.f32.gmra.mxu0 %v6108_v6  ;;  %v10597_v16 = vpop.f32.mrf.mxu1  ;;  %8855 = vmatmul.mubr.f32.vlgmr.msra.gmra.mxu1 %v11212_v57 }
 0x191   : > { %8821 = vmatprep.mubr.f32.mxu0 %v6118_v36  ;;  %8881 = vmatpush3.msra.mxu1 %v10229_v21  ;;  %v11214_v21 = vand.u32 4294901760, %v10432_v1  ;;  %v6763_v36 = vld [vmem:[#allocation2 + $0x62] sm:$0xff] }
 0x192   : > { %v10602_v53 = vpop.f32.mrf.mxu0  ;;  %v10604_v52 = vpop.f32.mrf.mxu1  ;;  %8857 = vmatprep.mubr.f32.mxu1 %v11213_v4  ;;  %8908 = vmatprep.subr.mxu1 %v6977_v35 }
 0x194   : > { %v10608_v25 = vpop.f32.mrf.mxu0  ;;  %8822 = vmatmul.mubr.f32.gmra.mxu0 %v6128_v18  ;;  %v10610_v41 = vpop.f32.mrf.mxu1  ;;  %8858 = vmatmul.mubr.f32.gmra.mxu1 %v6086_v45  ;;  %v6761_v45 = vld [vmem:[#allocation2 + $0x42] sm:$0xff] }
 0x195   : > { %8840 = vmatprep.mubr.f32.mxu0 %v10385_v47  ;;  %8860 = vmatprep.mubr.f32.mxu1 %v11214_v21  ;;  %v6773_v47 = vsel %vm248_vm1, %v6760_v56, 0 }
 0x196   : > { %v10617_v50 = vpop.f32.mrf.mxu0  ;;  %v10619_v40 = vpop.f32.mrf.mxu1 }
 0x198   : > { %v8506_v42 = vpop.f32.mrf.mxu0  ;;  %8841 = vmatmul.mubr.f32.vlgmr.msra.gmra.mxu0 %v10391_v61  ;;  %v10623_v30 = vpop.f32.mrf.mxu1  ;;  %8861 = vmatmul.mubr.f32.gmra.mxu1 %v6106_v62  ;;  %v10635_v61 = vand.u32 4294901760, %v6770_v20  ;;  %v6776_v62 = vsel %vm248_vm1, %v6761_v45, 0 }
 0x199   : > { %8867 = vmatpush3.msra.mxu0 %v10284_v37  ;;  %8843 = vmatprep.mubr.f32.mxu0 %v10399_v7  ;;  %v10642_v7 = vand.u32 4294901760, %v6773_v47  ;;  %v10653_v6 = vand.u32 4294901760, %v6776_v62  ;;  %v3097_v21 = vadd.f32 %v8506_v42, %v2980_v54 }
 0x19a   : > { %v3089_v55 = vpop.f32.mrf.mxu0  ;;  %v10630_v2 = vpop.f32.mrf.mxu1  ;;  %8863 = vmatprep.mubr.f32.mxu1 %v6116_v26  ;;  %8894 = vmatprep.subr.mxu0 %v10497_v44  ;;  %v10650_v43 = vsub.f32 %v6770_v20, %v10635_v61  ;;  %v6764_v20 = vld [vmem:[#allocation2 + $0x72] sm:$0xff] }
 0x19b   : > { %v10673_v27 = vsub.f32 %v6776_v62, %v10653_v6  ;;  %v3090_v12 = vadd.f32 %v3089_v55, %v2974_v15  ;;  %v3221_v0 = vadd.f32 %v10597_v16, %v3097_v21 }
 0x19c   : > { %v8509_v13 = vpop.f32.mrf.mxu0  ;;  %8844 = vmatmul.mubr.f32.gmra.mxu0 %v10418_v3  ;;  %v10638_v37 = vpop.f32.mrf.mxu1  ;;  %8864 = vmatmul.mubr.f32.gmra.mxu1 %v6126_v49  ;;  %v6779_v3 = vsel %vm248_vm1, %v6762_v39, 0 }
 0x19d   : > { %8846 = vmatprep.mubr.f32.mxu0 %v10432_v1  ;;  %8882 = vmatprep.mubr.f32.mxu1 %v10368_v22  ;;  %v10658_v1 = vsub.f32 %v6773_v47, %v10642_v7  ;;  %v10663_v18 = vand.u32 4294901760, %v6779_v3  ;;  %v3111_v55 = vadd.f32 %v8509_v13, %v2992_v23  ;;  %v6884_v62 = vand.u32 4294901760, %v10673_v27 }
 0x19e   : > { %v3103_v26 = vpop.f32.mrf.mxu0  ;;  %v10647_v10 = vpop.f32.mrf.mxu1  ;;  %v3213_v13 = vadd.f32 %v10604_v52, %v3090_v12 }
 0x19f   : > { %v6874_v56 = vand.u32 4294901760, %v10658_v1  ;;  %v10688_v42 = vsub.f32 %v6779_v3, %v10663_v18  ;;  %v6785_v3 = vsel %vm248_vm1, %v6764_v20, 0  ;;  %v3237_v12 = vadd.f32 %v10610_v41, %v3111_v55 }
 0x1a0   : > { %v8512_v58 = vpop.f32.mrf.mxu0  ;;  %8847 = vmatmul.mubr.f32.gmra.mxu0 %v10495_v34  ;;  %v8548_v49 = vpop.f32.mrf.mxu1  ;;  %8883 = vmatmul.mubr.f32.vlgmr.msra.gmra.mxu1 %v10375_v29  ;;  %v6864_v34 = vand.u32 4294901760, %v10650_v43  ;;  %v10731_v23 = vand.u32 4294901760, %v6785_v3 }
 0x1a1   : > { %8849 = vmatprep.mubr.f32.mxu0 %v10509_v8  ;;  %8909 = vmatpush3.msra.mxu1 %v6977_v35  ;;  %v6782_v8 = vsel %vm248_vm1, %v6763_v36, 0  ;;  %v10715_v16 = vsub.f32 %v10658_v1, %v6874_v56 }
 0x1a2   : > { %v3117_v57 = vpop.f32.mrf.mxu0  ;;  %v10665_v4 = vpop.f32.mrf.mxu1  ;;  %8885 = vmatprep.mubr.f32.mxu1 %v10379_v38  ;;  %8936 = vmatprep.subr.mxu1 %v10497_v44  ;;  %v10699_v39 = vsub.f32 %v10650_v43, %v6864_v34  ;;  %v10701_v33 = vand.u32 4294901760, %v6782_v8 }
 0x1a4   : > { %v10676_v63 = vpop.f32.mrf.mxu0  ;;  %8850 = vmatmul.mubr.f32.gmra.mxu0 %v10543_v51  ;;  %v10679_v35 = vpop.f32.mrf.mxu1  ;;  %8886 = vmatmul.mubr.f32.gmra.mxu1 %v10393_v17  ;;  %v2986_v51 = vadd.f32 %v10549_v48, %v10591_v59  ;;  %v3004_v48 = vadd.f32 %v10558_v19, %v10595_v46  ;;  %v6894_v19 = vand.u32 4294901760, %v10688_v42  ;;  %v2998_v46 = vadd.f32 %v10573_v9, %v10602_v53 }
 0x1a5   : > { %8868 = vmatprep.mubr.f32.mxu0 %v10368_v22  ;;  %8888 = vmatprep.mubr.f32.mxu1 %v10405_v28  ;;  %v6765_v22 = vld [vmem:[#allocation2 + $0x82] sm:$0xff]  ;;  %v10729_v52 = vsub.f32 %v6782_v8, %v10701_v33  ;;  %v10737_v9 = vsub.f32 %v10673_v27, %v6884_v62  ;;  %v3016_v53 = vadd.f32 %v10582_v14, %v10608_v25 }
 0x1a6   : > { %v10692_v47 = vpop.f32.mrf.mxu0  ;;  %v10694_v45 = vpop.f32.mrf.mxu1  ;;  %v3104_v59 = vadd.f32 %v3103_v26, %v2986_v51  ;;  %v3125_v26 = vadd.f32 %v8512_v58, %v3004_v48  ;;  %v3503_v8 = vld [vmem:[#allocation3 + $0x8] sm:$0xff]  ;;  %v3010_v25 = vadd.f32 %v10593_v24, %v10617_v50 }
 0x1a8   : > { %v8534_v36 = vpop.f32.mrf.mxu0  ;;  %8869 = vmatmul.mubr.f32.vlgmr.msra.gmra.mxu0 %v10375_v29  ;;  %v10709_v54 = vpop.f32.mrf.mxu1  ;;  %8889 = vmatmul.mubr.f32.gmra.mxu1 %v10472_v5  ;;  %v6788_v29 = vsel %vm248_vm1, %v6765_v22, 0  ;;  %v3229_v58 = vadd.f32 %v10619_v40, %v3104_v59  ;;  %v3502_v40 = vld [vmem:[#allocation3] sm:$0xff]  ;;  %v3132_v50 = vadd.f32 %v10692_v47, %v3010_v25  ;;  %v6866_v47 = vand.u32 4294901760, %v10699_v39 }
 0x1a9   : > { %v3349_v15 = vadd.f32 %v8534_v36, %v3221_v0  ;;  %8895 = vmatpush3.msra.mxu0 %v10497_v44  ;;  %8871 = vmatprep.mubr.f32.mxu0 %v10379_v38  ;;  %v6766_v38 = vld [vmem:[#allocation2 + $0x92] sm:$0xff]  ;;  %v3118_v0 = vadd.f32 %v3117_v57, %v2998_v46  ;;  %v10746_v41 = vand.u32 4294901760, %v6788_v29 }
 0x1aa   : > { %v3342_v21 = vpop.f32.mrf.mxu0  ;;  %v10724_v20 = vpop.f32.mrf.mxu1  ;;  %8891 = vmatprep.mubr.f32.mxu1 %v10483_v11  ;;  %8922 = vmatprep.subr.mxu0 %v10528_v32  ;;  %v6791_v14 = vsel %vm248_vm1, %v6766_v38, 0 }
 0x1ab   : > { %v3463_v51 = vadd.f32 %v8548_v49, %v3349_v15  ;;  %v3343_v22 = vadd.f32 %v3342_v21, %v3213_v13  ;;  %v6904_v15 = vand.u32 4294901760, %v10729_v52  ;;  %v3245_v24 = vadd.f32 %v10630_v2, %v3118_v0 }
 0x1ac   : > { %v8537_v48 = vpop.f32.mrf.mxu0  ;;  %8872 = vmatmul.mubr.f32.gmra.mxu0 %v10393_v17  ;;  %v10743_v36 = vpop.f32.mrf.mxu1  ;;  %8892 = vmatmul.mubr.f32.gmra.mxu1 %v10511_v60  ;;  %v3253_v17 = vadd.f32 %v10623_v30, %v3125_v26  ;;  %v3505_v30 = vld [vmem:[#allocation3 + $0x18] sm:$0xff] }
 0x1ad   : > { %v3511_v49 = vadd.f32 %v3503_v8, %v3463_v51  ;;  %v3457_v55 = vadd.f32 %v10665_v4, %v3343_v22  ;;  %v3361_v13 = vadd.f32 %v8537_v48, %v3237_v12  ;;  %8874 = vmatprep.mubr.f32.mxu0 %v10405_v28  ;;  %8910 = vmatprep.mubr.f32.mxu1 %v10635_v61  ;;  %v3507_v48 = vld [vmem:[#allocation3 + $0x28] sm:$0xff] }
 0x1ae   : > { %v3354_v57 = vpop.f32.mrf.mxu0  ;;  %v10755_v59 = vpop.f32.mrf.mxu1  ;;  %v10759_v4 = vsub.f32 %v6785_v3, %v10731_v23  ;;  %v3139_v28 = vadd.f32 %v10676_v63, %v3016_v53  ;;  %v10771_v63 = vsub.f32 %v6788_v29, %v10746_v41  ;;  %v10773_v3 = vand.u32 4294901760, %v6791_v14 }
 0x1af   : > { %3519 = vst.msk [vmem:[#allocation3 + $0x8] sm:$0xff] %vm1093_vm4, %v3511_v49  ;;  %v3510_v46 = vadd.f32 %v3502_v40, %v3457_v55  ;;  %v3475_v21 = vadd.f32 %v10679_v35, %v3361_v13  ;;  %v3355_v38 = vadd.f32 %v3354_v57, %v3229_v58  ;;  %v6876_v53 = vand.u32 4294901760, %v10715_v16 }
 0x1b0   : > { %v8540_v26 = vpop.f32.mrf.mxu0  ;;  %8875 = vmatmul.mubr.f32.gmra.mxu0 %v10472_v5  ;;  %v10767_v12 = vpop.f32.mrf.mxu1  ;;  %8911 = vmatmul.mubr.f32.vlgmr.msra.gmra.mxu1 %v10642_v7  ;;  %v3504_v5 = vld [vmem:[#allocation3 + $0x10] sm:$0xff]  ;;  %v6886_v58 = vand.u32 4294901760, %v10737_v9  ;;  %v3261_v8 = vadd.f32 %v10647_v10, %v3132_v50  ;;  %v6914_v55 = vand.u32 4294901760, %v10759_v4  ;;  %v10802_v13 = vsub.f32 %v6791_v14, %v10773_v3 }
 0x1b1   : > { %3518 = vst.msk [vmem:[#allocation3] sm:$0xff] %vm1093_vm4, %v3510_v46  ;;  %v3513_v35 = vadd.f32 %v3505_v30, %v3475_v21  ;;  %v3469_v2 = vadd.f32 %v10694_v45, %v3355_v38  ;;  %v3373_v51 = vadd.f32 %v8540_v26, %v3253_v17  ;;  %8877 = vmatprep.mubr.f32.mxu0 %v10483_v11  ;;  %v3506_v17 = vld [vmem:[#allocation3 + $0x20] sm:$0xff]  ;;  %v3509_v21 = vld [vmem:[#allocation3 + $0x38] sm:$0xff] }
 0x1b2   : > { %8937 = vmatpush3.msra.mxu1 %v10497_v44  ;;  %v3366_v22 = vpop.f32.mrf.mxu0  ;;  %v10781_v29 = vpop.f32.mrf.mxu1  ;;  %8913 = vmatprep.mubr.f32.mxu1 %v10653_v6  ;;  %v6895_v45 = vsub.f32 %v10688_v42, %v6894_v19  ;;  %v3269_v11 = vadd.f32 %v10638_v37, %v3139_v28  ;;  %v6905_v37 = vsub.f32 %v10729_v52, %v6904_v15  ;;  %v6934_v30 = vand.u32 4294901760, %v10802_v13 }
 0x1b3   : > { %8964 = vmatprep.subr.mxu1 %v10497_v44  ;;  %3521 = vst.msk [vmem:[#allocation3 + $0x18] sm:$0xff] %vm1093_vm4, %v3513_v35  ;;  %v3512_v39 = vadd.f32 %v3504_v5, %v3469_v2  ;;  %v3487_v0 = vadd.f32 %v10709_v54, %v3373_v51  ;;  %v3367_v16 = vadd.f32 %v3366_v22, %v3245_v24  ;;  %v3508_v51 = vld [vmem:[#allocation3 + $0x30] sm:$0xff] }
 0x1b4   : > { %v8543_v9 = vpop.f32.mrf.mxu0  ;;  %8878 = vmatmul.mubr.f32.gmra.mxu0 %v10511_v60  ;;  %v10794_v49 = vpop.f32.mrf.mxu1  ;;  %8914 = vmatmul.mubr.f32.gmra.mxu1 %v10663_v18  ;;  %v6924_v60 = vand.u32 4294901760, %v10771_v63  ;;  %v6915_v50 = vsub.f32 %v10759_v4, %v6914_v55  ;;  %v6906_v35 = vand.u32 4294901760, %v6905_v37 }
 0x1b5   : > { %3520 = vst.msk [vmem:[#allocation3 + $0x10] sm:$0xff] %vm1093_vm4, %v3512_v39  ;;  %v3515_v10 = vadd.f32 %v3507_v48, %v3487_v0  ;;  %v3481_v54 = vadd.f32 %v10724_v20, %v3367_v16  ;;  %v3385_v25 = vadd.f32 %v8543_v9, %v3269_v11  ;;  %8896 = vmatprep.mubr.f32.mxu0 %v6866_v47  ;;  %v6896_v20 = vand.u32 4294901760, %v6895_v45 }
 0x1b6   : > { %8916 = vmatprep.mubr.f32.mxu1 %v10701_v33  ;;  %v3378_v40 = vpop.f32.mrf.mxu0  ;;  %v10808_v57 = vpop.f32.mrf.mxu1  ;;  %v6925_v2 = vsub.f32 %v10771_v63, %v6924_v60 }
 0x1b7   : > { %3523 = vst.msk [vmem:[#allocation3 + $0x28] sm:$0xff] %vm1093_vm4, %v3515_v10  ;;  %v3514_v28 = vadd.f32 %v3506_v17, %v3481_v54  ;;  %v3499_v14 = vadd.f32 %v10743_v36, %v3385_v25  ;;  %v3379_v46 = vadd.f32 %v3378_v40, %v3261_v8 }
 0x1b8   : > { %v10812_v38 = vpop.f32.mrf.mxu0  ;;  %8897 = vmatmul.mubr.f32.vlgmr.msra.gmra.mxu0 %v6876_v53  ;;  %v10814_v24 = vpop.f32.mrf.mxu1  ;;  %8917 = vmatmul.mubr.f32.gmra.mxu1 %v10731_v23  ;;  %v6926_v45 = vand.u32 4294901760, %v6925_v2 }
 0x1b9   : > { %3522 = vst.msk [vmem:[#allocation3 + $0x20] sm:$0xff] %vm1093_vm4, %v3514_v28  ;;  %v3517_v26 = vadd.f32 %v3509_v21, %v3499_v14  ;;  %v3493_v36 = vadd.f32 %v10755_v59, %v3379_v46  ;;  %8923 = vmatpush3.msra.mxu0 %v10528_v32  ;;  %8899 = vmatprep.mubr.f32.mxu0 %v6886_v58  ;;  %v6916_v32 = vand.u32 4294901760, %v6915_v50 }
 0x1ba   : > { %v3635_v47 = vpop.f32.mrf.mxu0  ;;  %v10827_v5 = vpop.f32.mrf.mxu1  ;;  %8919 = vmatprep.mubr.f32.mxu1 %v10746_v41  ;;  %8950 = vmatprep.subr.mxu0 %v10552_v31  ;;  %v6935_v58 = vsub.f32 %v10802_v13, %v6934_v30  ;;  %v3788_v25 = vadd.f32 %v10767_v12, %v10812_v38 }
 0x1bb   : > { %3525 = vst.msk [vmem:[#allocation3 + $0x38] sm:$0xff] %vm1093_vm4, %v3517_v26  ;;  %v3516_v22 = vadd.f32 %v3508_v51, %v3493_v36 }
 0x1bc   : > { %v8565_v59 = vpop.f32.mrf.mxu0  ;;  %8900 = vmatmul.mubr.f32.gmra.mxu0 %v6896_v20  ;;  %v10832_v53 = vpop.f32.mrf.mxu1  ;;  %8920 = vmatmul.mubr.f32.gmra.mxu1 %v10773_v3  ;;  %v6936_v16 = vand.u32 4294901760, %v6935_v58 }
 0x1bd   : > { %3524 = vst.msk [vmem:[#allocation3 + $0x30] sm:$0xff] %vm1093_vm4, %v3516_v22  ;;  %8902 = vmatprep.mubr.f32.mxu0 %v6906_v35  ;;  %8938 = vmatprep.mubr.f32.mxu1 %v6864_v34 }
 0x1be   : > { %v3655_v11 = vpop.f32.mrf.mxu0  ;;  %v10839_v39 = vpop.f32.mrf.mxu1 }
 0x1bf   : > { %v3794_v46 = vadd.f32 %v10808_v57, %v3655_v11  ;;  %v4310_v11 = vld [vmem:[#allocation3] sm:$0xff] }
 0x1c0   : > { %v8568_v0 = vpop.f32.mrf.mxu0  ;;  %8903 = vmatmul.mubr.f32.gmra.mxu0 %v6916_v32  ;;  %v8604_v8 = vpop.f32.mrf.mxu1  ;;  %8939 = vmatmul.mubr.f32.vlgmr.msra.gmra.mxu1 %v6874_v56 }
 0x1c1   : > { %8905 = vmatprep.mubr.f32.mxu0 %v6926_v45  ;;  %8965 = vmatpush3.msra.mxu1 %v10497_v44  ;;  %v3812_v38 = vadd.f32 %v10814_v24, %v8568_v0 }
 0x1c2   : > { %v3675_v48 = vpop.f32.mrf.mxu0  ;;  %v4020_v9 = vpop.f32.mrf.mxu1  ;;  %8941 = vmatprep.mubr.f32.mxu1 %v6884_v62 }
 0x1c4   : > { %v10846_v37 = vpop.f32.mrf.mxu0  ;;  %8906 = vmatmul.mubr.f32.gmra.mxu0 %v6936_v16  ;;  %v8607_v34 = vpop.f32.mrf.mxu1  ;;  %8942 = vmatmul.mubr.f32.gmra.mxu1 %v6894_v19 }
 0x1c5   : > { %8924 = vmatprep.mubr.f32.mxu0 %v10650_v43  ;;  %8944 = vmatprep.mubr.f32.mxu1 %v6904_v15 }
 0x1c6   : > { %v10853_v56 = vpop.f32.mrf.mxu0  ;;  %v10855_v44 = vpop.f32.mrf.mxu1 }
 0x1c7   : > { %v3818_v45 = vadd.f32 %v10839_v39, %v10853_v56 }
 0x1c8   : > { %v8590_v10 = vpop.f32.mrf.mxu0  ;;  %8925 = vmatmul.mubr.f32.vlgmr.msra.gmra.mxu0 %v10658_v1  ;;  %v10858_v62 = vpop.f32.mrf.mxu1  ;;  %8945 = vmatmul.mubr.f32.gmra.mxu1 %v6914_v55 }
 0x1c9   : > { %8951 = vmatpush3.msra.mxu0 %v10552_v31  ;;  %8927 = vmatprep.mubr.f32.mxu0 %v10673_v27  ;;  %v3905_v17 = vadd.f32 %v8590_v10, %v3788_v25  ;;  %v4315_v25 = vld [vmem:[#allocation3 + $0x28] sm:$0xff] }
 0x1ca   : > { %v3897_v43 = vpop.f32.mrf.mxu0  ;;  %v10864_v19 = vpop.f32.mrf.mxu1  ;;  %8947 = vmatprep.mubr.f32.mxu1 %v6924_v60  ;;  %v3782_v60 = vadd.f32 %v10781_v29, %v3635_v47  ;;  %v4311_v47 = vld [vmem:[#allocation3 + $0x8] sm:$0xff] }
 0x1cb   : > { %v4029_v21 = vadd.f32 %v8604_v8, %v3905_v17 }
 0x1cc   : > { %v8593_v15 = vpop.f32.mrf.mxu0  ;;  %8928 = vmatmul.mubr.f32.gmra.mxu0 %v10688_v42  ;;  %v10869_v54 = vpop.f32.mrf.mxu1  ;;  %8948 = vmatmul.mubr.f32.gmra.mxu1 %v6934_v30  ;;  %v3898_v14 = vadd.f32 %v3897_v43, %v3782_v60  ;;  %v4312_v43 = vld [vmem:[#allocation3 + $0x10] sm:$0xff] }
 0x1cd   : > { %8930 = vmatprep.mubr.f32.mxu0 %v10729_v52  ;;  %8966 = vmatprep.mubr.f32.mxu1 %v10635_v61 }
 0x1ce   : > { %v3911_v1 = vpop.f32.mrf.mxu0  ;;  %v10873_v31 = vpop.f32.mrf.mxu1 }
 0x1cf   : > { %v3912_v50 = vadd.f32 %v3911_v1, %v3794_v46  ;;  %v4317_v46 = vld [vmem:[#allocation3 + $0x38] sm:$0xff] }
 0x1d0   : > { %v8596_v27 = vpop.f32.mrf.mxu0  ;;  %8931 = vmatmul.mubr.f32.gmra.mxu0 %v10759_v4  ;;  %v8632_v55 = vpop.f32.mrf.mxu1  ;;  %8967 = vmatmul.mubr.f32.vlgmr.msra.gmra.mxu1 %v10642_v7  ;;  %v3800_v4 = vadd.f32 %v10794_v49, %v8565_v59  ;;  %v4021_v49 = vadd.f32 %v4020_v9, %v3898_v14 }
 0x1d1   : > { %8933 = vmatprep.mubr.f32.mxu0 %v10771_v63  ;;  %8969 = vmatprep.mubr.f32.mxu1 %v10653_v6  ;;  %v3933_v57 = vadd.f32 %v8596_v27, %v3812_v38  ;;  %v4316_v38 = vld [vmem:[#allocation3 + $0x30] sm:$0xff] }
 0x1d2   : > { %v3925_v42 = vpop.f32.mrf.mxu0  ;;  %v4264_v52 = vpop.f32.mrf.mxu1  ;;  %v3919_v29 = vadd.f32 %v8593_v15, %v3800_v4 }
 0x1d4   : > { %v8599_v40 = vpop.f32.mrf.mxu0  ;;  %8934 = vmatmul.mubr.f32.gmra.mxu0 %v10802_v13  ;;  %v8635_v28 = vpop.f32.mrf.mxu1  ;;  %8970 = vmatmul.mubr.f32.gmra.mxu1 %v10663_v18  ;;  %v4045_v35 = vadd.f32 %v8607_v34, %v3919_v29  ;;  %v4313_v34 = vld [vmem:[#allocation3 + $0x18] sm:$0xff] }
 0x1d5   : > { %8952 = vmatprep.mubr.f32.mxu0 %v10635_v61  ;;  %8972 = vmatprep.mubr.f32.mxu1 %v10701_v33  ;;  %v3806_v61 = vadd.f32 %v10827_v5, %v3675_v48 }
 0x1d6   : > { %v3939_v12 = vpop.f32.mrf.mxu0  ;;  %v4276_v63 = vpop.f32.mrf.mxu1 }
 0x1d7   : > { %v3926_v51 = vadd.f32 %v3925_v42, %v3806_v61  ;;  %v3940_v39 = vadd.f32 %v3939_v12, %v3818_v45 }
 0x1d8   : > { %v8618_v20 = vpop.f32.mrf.mxu0  ;;  %8953 = vmatmul.mubr.f32.vlgmr.msra.gmra.mxu0 %v10642_v7  ;;  %v8638_v13 = vpop.f32.mrf.mxu1  ;;  %8973 = vmatmul.mubr.f32.gmra.mxu1 %v10731_v23  ;;  %v3824_v7 = vadd.f32 %v10832_v53, %v10846_v37  ;;  %v4061_v53 = vadd.f32 %v10858_v62, %v3933_v57 }
 0x1d9   : > { %v4157_v30 = vadd.f32 %v8618_v20, %v4029_v21  ;;  %8955 = vmatprep.mubr.f32.mxu0 %v10653_v6  ;;  %8975 = vmatprep.mubr.f32.mxu1 %v10746_v41  ;;  %v4037_v6 = vadd.f32 %v10855_v44, %v3912_v50  ;;  %v4053_v37 = vadd.f32 %v10864_v19, %v3926_v51 }
 0x1da   : > { %v4150_v26 = vpop.f32.mrf.mxu0  ;;  %v4288_v36 = vpop.f32.mrf.mxu1  ;;  %v3947_v8 = vadd.f32 %v8599_v40, %v3824_v7  ;;  %v4069_v60 = vadd.f32 %v10873_v31, %v3940_v39 }
 0x1db   : > { %v4271_v24 = vadd.f32 %v8632_v55, %v4157_v30  ;;  %v4151_v2 = vadd.f32 %v4150_v26, %v4021_v49 }
 0x1dc   : > { %v8621_v22 = vpop.f32.mrf.mxu0  ;;  %8956 = vmatmul.mubr.f32.gmra.mxu0 %v10663_v18  ;;  %v8641_v59 = vpop.f32.mrf.mxu1  ;;  %8976 = vmatmul.mubr.f32.gmra.mxu1 %v10773_v3  ;;  %v4077_v27 = vadd.f32 %v10869_v54, %v3947_v8 }
 0x1dd   : > { %v4319_v5 = vadd.f32 %v4311_v47, %v4271_v24  ;;  %v4265_v32 = vadd.f32 %v4264_v52, %v4151_v2  ;;  %v4169_v58 = vadd.f32 %v8621_v22, %v4045_v35  ;;  %8958 = vmatprep.mubr.f32.mxu0 %v10701_v33 }
 0x1de   : > { %v4162_v0 = vpop.f32.mrf.mxu0  ;;  %v4300_v16 = vpop.f32.mrf.mxu1 }
 0x1df   : > { %4327 = vst.msk [vmem:[#allocation3 + $0x8] sm:$0xff] %vm1093_vm4, %v4319_v5  ;;  %v4318_v18 = vadd.f32 %v4310_v11, %v4265_v32  ;;  %v4283_v48 = vadd.f32 %v8635_v28, %v4169_v58  ;;  %v4163_v9 = vadd.f32 %v4162_v0, %v4037_v6  ;;  %v4314_v28 = vld [vmem:[#allocation3 + $0x20] sm:$0xff] }
 0x1e0   : > { %v8624_v44 = vpop.f32.mrf.mxu0  ;;  %8959 = vmatmul.mubr.f32.gmra.mxu0 %v10731_v23  ;;  %v10906_v33 = vpop.f32.mrf.mxu1 }
 0x1e1   : > { %4326 = vst.msk [vmem:[#allocation3] sm:$0xff] %vm1093_vm4, %v4318_v18  ;;  %v4321_v56 = vadd.f32 %v4313_v34, %v4283_v48  ;;  %v4277_v10 = vadd.f32 %v4276_v63, %v4163_v9  ;;  %v4181_v62 = vadd.f32 %v8624_v44, %v4061_v53  ;;  %8961 = vmatprep.mubr.f32.mxu0 %v10746_v41 }
 0x1e2   : > { %v4174_v15 = vpop.f32.mrf.mxu0  ;;  %v4589_v1 = vpop.f32.mrf.mxu1 }
 0x1e3   : > { %4329 = vst.msk [vmem:[#allocation3 + $0x18] sm:$0xff] %vm1093_vm4, %v4321_v56  ;;  %v4320_v19 = vadd.f32 %v4312_v43, %v4277_v10  ;;  %v4295_v55 = vadd.f32 %v8638_v13, %v4181_v62  ;;  %v4175_v23 = vadd.f32 %v4174_v15, %v4053_v37 }
 0x1e4   : > { %v8627_v42 = vpop.f32.mrf.mxu0  ;;  %8962 = vmatmul.mubr.f32.gmra.mxu0 %v10773_v3  ;;  %v8663_v52 = vpop.f32.mrf.mxu1 }
 0x1e5   : > { %4328 = vst.msk [vmem:[#allocation3 + $0x10] sm:$0xff] %vm1093_vm4, %v4320_v19  ;;  %v4323_v41 = vadd.f32 %v4315_v25, %v4295_v55  ;;  %v4289_v17 = vadd.f32 %v4288_v36, %v4175_v23  ;;  %v4193_v40 = vadd.f32 %v8627_v42, %v4077_v27 }
 0x1e6   : > { %v4186_v4 = vpop.f32.mrf.mxu0  ;;  %v4601_v54 = vpop.f32.mrf.mxu1 }
 0x1e7   : > { %4331 = vst.msk [vmem:[#allocation3 + $0x28] sm:$0xff] %vm1093_vm4, %v4323_v41  ;;  %v4322_v14 = vadd.f32 %v4314_v28, %v4289_v17  ;;  %v4307_v12 = vadd.f32 %v8641_v59, %v4193_v40  ;;  %v4187_v63 = vadd.f32 %v4186_v4, %v4069_v60 }
 0x1e8   : > { %v8646_v21 = vpop.f32.mrf.mxu0  ;;  %v8666_v29 = vpop.f32.mrf.mxu1 }
 0x1e9   : > { %4330 = vst.msk [vmem:[#allocation3 + $0x20] sm:$0xff] %vm1093_vm4, %v4322_v14  ;;  %v4325_v3 = vadd.f32 %v4317_v46, %v4307_v12  ;;  %v4301_v31 = vadd.f32 %v4300_v16, %v4187_v63  ;;  %v4596_v16 = vadd.f32 %v10906_v33, %v8646_v21  ;;  %v5119_v14 = vld [vmem:[#allocation3 + $0x8] sm:$0xff] }
 0x1ea   : > { %v4443_v20 = vpop.f32.mrf.mxu0  ;;  %v4613_v13 = vpop.f32.mrf.mxu1 }
 0x1eb   : > { %4333 = vst.msk [vmem:[#allocation3 + $0x38] sm:$0xff] %vm1093_vm4, %v4325_v3  ;;  %v4324_v49 = vadd.f32 %v4316_v38, %v4301_v31  ;;  %v4590_v48 = vadd.f32 %v4589_v1, %v4443_v20  ;;  %v5118_v38 = vld [vmem:[#allocation3] sm:$0xff] }
 0x1ec   : > { %v8649_v50 = vpop.f32.mrf.mxu0  ;;  %v8669_v30 = vpop.f32.mrf.mxu1 }
 0x1ed   : > { %4332 = vst.msk [vmem:[#allocation3 + $0x30] sm:$0xff] %vm1093_vm4, %v4324_v49  ;;  %v4608_v44 = vadd.f32 %v8663_v52, %v8649_v50 }
 0x1ee   : > { %v4463_v61 = vpop.f32.mrf.mxu0  ;;  %v4625_v57 = vpop.f32.mrf.mxu1 }
 0x1ef   : > { %v4602_v62 = vadd.f32 %v4601_v54, %v4463_v61 }
 0x1f0   : > { %v8652_v26 = vpop.f32.mrf.mxu0  ;;  %v8688_v36 = vpop.f32.mrf.mxu1 }
 0x1f1   : > { %v4620_v27 = vadd.f32 %v8666_v29, %v8652_v26 }
 0x1f2   : > { %v4483_v35 = vpop.f32.mrf.mxu0  ;;  %v4828_v24 = vpop.f32.mrf.mxu1 }
 0x1f3   : > { %v4614_v33 = vadd.f32 %v4613_v13, %v4483_v35 }
 0x1f4   : > { %v8655_v2 = vpop.f32.mrf.mxu0  ;;  %v8691_v7 = vpop.f32.mrf.mxu1 }
 0x1f5   : > { %v4632_v52 = vadd.f32 %v8669_v30, %v8655_v2 }
 0x1f6   : > { %v4503_v51 = vpop.f32.mrf.mxu0  ;;  %v4844_v47 = vpop.f32.mrf.mxu1 }
 0x1f7   : > { %v4626_v3 = vadd.f32 %v4625_v57, %v4503_v51 }
 0x1f8   : > { %v8674_v22 = vpop.f32.mrf.mxu0  ;;  %v8694_v59 = vpop.f32.mrf.mxu1 }
 0x1f9   : > { %v4713_v9 = vadd.f32 %v8674_v22, %v4596_v16 }
 0x1fa   : > { %v4705_v6 = vpop.f32.mrf.mxu0  ;;  %v4860_v5 = vpop.f32.mrf.mxu1 }
 0x1fb   : > { %v4706_v39 = vadd.f32 %v4705_v6, %v4590_v48  ;;  %v4837_v43 = vadd.f32 %v8688_v36, %v4713_v9  ;;  %v5121_v36 = vld [vmem:[#allocation3 + $0x18] sm:$0xff] }
 0x1fc   : > { %v8677_v32 = vpop.f32.mrf.mxu0  ;;  %v10919_v58 = vpop.f32.mrf.mxu1 }
 0x1fd   : > { %v4727_v15 = vadd.f32 %v8677_v32, %v4608_v44  ;;  %v4829_v23 = vadd.f32 %v4828_v24, %v4706_v39 }
 0x1fe   : > { %v4719_v45 = vpop.f32.mrf.mxu0  ;;  %v10921_v53 = vpop.f32.mrf.mxu1 }
 0x1ff   : > { %v4720_v25 = vadd.f32 %v4719_v45, %v4602_v62  ;;  %v4853_v17 = vadd.f32 %v8691_v7, %v4727_v15 }
 0x200   : > { %v8680_v11 = vpop.f32.mrf.mxu0  ;;  %v8716_v0 = vpop.f32.mrf.mxu1 }
 0x201   : > { %v4741_v60 = vadd.f32 %v8680_v11, %v4620_v27  ;;  %v4845_v63 = vadd.f32 %v4844_v47, %v4720_v25  ;;  %v5120_v47 = vld [vmem:[#allocation3 + $0x10] sm:$0xff]  ;;  %v5123_v11 = vld [vmem:[#allocation3 + $0x28] sm:$0xff] }
 0x202   : > { %v4733_v8 = vpop.f32.mrf.mxu0  ;;  %v5072_v18 = vpop.f32.mrf.mxu1  ;;  %v5124_v27 = vld [vmem:[#allocation3 + $0x30] sm:$0xff] }
 0x203   : > { %v4734_v4 = vadd.f32 %v4733_v8, %v4614_v33  ;;  %v4869_v31 = vadd.f32 %v8694_v59, %v4741_v60 }
 0x204   : > { %v8683_v37 = vpop.f32.mrf.mxu0  ;;  %v8719_v34 = vpop.f32.mrf.mxu1 }
 0x205   : > { %v4755_v49 = vadd.f32 %v8683_v37, %v4632_v52  ;;  %v4861_v30 = vadd.f32 %v4860_v5, %v4734_v4  ;;  %v5122_v37 = vld [vmem:[#allocation3 + $0x20] sm:$0xff] }
 0x206   : > { %v4747_v56 = vpop.f32.mrf.mxu0  ;;  %v5084_v10 = vpop.f32.mrf.mxu1 }
 0x207   : > { %v4748_v2 = vadd.f32 %v4747_v56, %v4626_v3  ;;  %v4885_v6 = vadd.f32 %v10919_v58, %v4755_v49 }
 0x208   : > { %v8702_v19 = vpop.f32.mrf.mxu0  ;;  %v8722_v55 = vpop.f32.mrf.mxu1 }
 0x209   : > { %v4965_v42 = vadd.f32 %v8702_v19, %v4837_v43  ;;  %v4877_v8 = vadd.f32 %v10921_v53, %v4748_v2 }
 0x20a   : > { %v4958_v41 = vpop.f32.mrf.mxu0  ;;  %v5096_v1 = vpop.f32.mrf.mxu1 }
 0x20b   : > { %v5079_v40 = vadd.f32 %v8716_v0, %v4965_v42  ;;  %v4959_v28 = vadd.f32 %v4958_v41, %v4829_v23 }
 0x20c   : > { %v8705_v12 = vpop.f32.mrf.mxu0  ;;  %v8725_v54 = vpop.f32.mrf.mxu1 }
 0x20d   : > { %v5127_v46 = vadd.f32 %v5119_v14, %v5079_v40  ;;  %v5073_v21 = vadd.f32 %v5072_v18, %v4959_v28  ;;  %v4977_v29 = vadd.f32 %v8705_v12, %v4853_v17 }
 0x20e   : > { %v4970_v20 = vpop.f32.mrf.mxu0  ;;  %v5108_v13 = vpop.f32.mrf.mxu1 }
 0x20f   : > { %5135 = vst.msk [vmem:[#allocation3 + $0x8] sm:$0xff] %vm1093_vm4, %v5127_v46  ;;  %v5126_v50 = vadd.f32 %v5118_v38, %v5073_v21  ;;  %v5091_v61 = vadd.f32 %v8719_v34, %v4977_v29  ;;  %v4971_v26 = vadd.f32 %v4970_v20, %v4845_v63 }
 0x210   : > { %v8708_v35 = vpop.f32.mrf.mxu0  ;;  %v10925_v24 = vpop.f32.mrf.mxu1 }
 0x211   : > { %5134 = vst.msk [vmem:[#allocation3] sm:$0xff] %vm1093_vm4, %v5126_v50  ;;  %v5129_v7 = vadd.f32 %v5121_v36, %v5091_v61  ;;  %v5085_v57 = vadd.f32 %v5084_v10, %v4971_v26  ;;  %v4989_v51 = vadd.f32 %v8708_v35, %v4869_v31  ;;  %v5125_v10 = vld [vmem:[#allocation3 + $0x38] sm:$0xff] }
 0x212   : > { %v4982_v22 = vpop.f32.mrf.mxu0  ;;  %v5398_v59 = vpop.f32.mrf.mxu1 }
 0x213   : > { %5137 = vst.msk [vmem:[#allocation3 + $0x18] sm:$0xff] %vm1093_vm4, %v5129_v7  ;;  %v5128_v32 = vadd.f32 %v5120_v47, %v5085_v57  ;;  %v5103_v45 = vadd.f32 %v8722_v55, %v4989_v51  ;;  %v4983_v5 = vadd.f32 %v4982_v22, %v4861_v30 }
 0x214   : > { %v8711_v0 = vpop.f32.mrf.mxu0  ;;  %v8747_v16 = vpop.f32.mrf.mxu1 }
 0x215   : > { %5136 = vst.msk [vmem:[#allocation3 + $0x10] sm:$0xff] %vm1093_vm4, %v5128_v32  ;;  %v5131_v18 = vadd.f32 %v5123_v11, %v5103_v45  ;;  %v5097_v48 = vadd.f32 %v5096_v1, %v4983_v5  ;;  %v5001_v9 = vadd.f32 %v8711_v0, %v4885_v6 }
 0x216   : > { %v4994_v34 = vpop.f32.mrf.mxu0  ;;  %v5410_v44 = vpop.f32.mrf.mxu1 }
 0x217   : > { %5139 = vst.msk [vmem:[#allocation3 + $0x28] sm:$0xff] %vm1093_vm4, %v5131_v18  ;;  %v5130_v58 = vadd.f32 %v5122_v37, %v5097_v48  ;;  %v5115_v39 = vadd.f32 %v8725_v54, %v5001_v9  ;;  %v4995_v56 = vadd.f32 %v4994_v34, %v4877_v8 }
 0x218   : > { %v8730_v62 = vpop.f32.mrf.mxu0  ;;  %v8750_v43 = vpop.f32.mrf.mxu1 }
 0x219   : > { %5138 = vst.msk [vmem:[#allocation3 + $0x20] sm:$0xff] %vm1093_vm4, %v5130_v58  ;;  %v5133_v15 = vadd.f32 %v5125_v10, %v5115_v39  ;;  %v5109_v53 = vadd.f32 %v5108_v13, %v4995_v56  ;;  %v5405_v13 = vadd.f32 %v10925_v24, %v8730_v62  ;;  %v5928_v58 = vld [vmem:[#allocation3 + $0x8] sm:$0xff] }
 0x21a   : > { %v5252_v19 = vpop.f32.mrf.mxu0  ;;  %v5422_v55 = vpop.f32.mrf.mxu1 }
 0x21b   : > { %5141 = vst.msk [vmem:[#allocation3 + $0x38] sm:$0xff] %vm1093_vm4, %v5133_v15  ;;  %v5132_v23 = vadd.f32 %v5124_v27, %v5109_v53  ;;  %v5399_v61 = vadd.f32 %v5398_v59, %v5252_v19  ;;  %v5927_v27 = vld [vmem:[#allocation3] sm:$0xff] }
 0x21c   : > { %v8733_v25 = vpop.f32.mrf.mxu0  ;;  %v8753_v42 = vpop.f32.mrf.mxu1 }
 0x21d   : > { %5140 = vst.msk [vmem:[#allocation3 + $0x30] sm:$0xff] %vm1093_vm4, %v5132_v23  ;;  %v5417_v35 = vadd.f32 %v8747_v16, %v8733_v25 }
 0x21e   : > { %v5272_v33 = vpop.f32.mrf.mxu0  ;;  %v5434_v60 = vpop.f32.mrf.mxu1 }
 0x21f   : > { %v5411_v51 = vadd.f32 %v5410_v44, %v5272_v33 }
 0x220   : > { %v8736_v41 = vpop.f32.mrf.mxu0  ;;  %v8772_v1 = vpop.f32.mrf.mxu1 }
 0x221   : > { %v5429_v6 = vadd.f32 %v8750_v43, %v8736_v41 }
 0x222   : > { %v5292_v17 = vpop.f32.mrf.mxu0  ;;  %v5637_v40 = vpop.f32.mrf.mxu1 }
 0x223   : > { %v5423_v24 = vadd.f32 %v5422_v55, %v5292_v17 }
 0x224   : > { %v8739_v28 = vpop.f32.mrf.mxu0  ;;  %v8775_v52 = vpop.f32.mrf.mxu1 }
 0x225   : > { %v5441_v16 = vadd.f32 %v8753_v42, %v8739_v28 }
 0x226   : > { %v5312_v4 = vpop.f32.mrf.mxu0  ;;  %v5653_v14 = vpop.f32.mrf.mxu1 }
 0x227   : > { %v5435_v15 = vadd.f32 %v5434_v60, %v5312_v4 }
 0x228   : > { %v8758_v12 = vpop.f32.mrf.mxu0  ;;  %v8778_v54 = vpop.f32.mrf.mxu1 }
 0x229   : > { %v5522_v26 = vadd.f32 %v8758_v12, %v5405_v13 }
 0x22a   : > { %v5514_v63 = vpop.f32.mrf.mxu0  ;;  %v5669_v46 = vpop.f32.mrf.mxu1 }
 0x22b   : > { %v5515_v2 = vadd.f32 %v5514_v63, %v5399_v61  ;;  %v5646_v47 = vadd.f32 %v8772_v1, %v5522_v26  ;;  %v5930_v1 = vld [vmem:[#allocation3 + $0x18] sm:$0xff] }
 0x22c   : > { %v8761_v21 = vpop.f32.mrf.mxu0  ;;  %v10936_v29 = vpop.f32.mrf.mxu1 }
 0x22d   : > { %v5536_v22 = vadd.f32 %v8761_v21, %v5417_v35  ;;  %v5638_v5 = vadd.f32 %v5637_v40, %v5515_v2 }
 0x22e   : > { %v5528_v3 = vpop.f32.mrf.mxu0  ;;  %v10938_v31 = vpop.f32.mrf.mxu1 }
 0x22f   : > { %v5529_v11 = vadd.f32 %v5528_v3, %v5411_v51  ;;  %v5662_v48 = vadd.f32 %v8775_v52, %v5536_v22 }
 0x230   : > { %v8764_v38 = vpop.f32.mrf.mxu0  ;;  %v8800_v20 = vpop.f32.mrf.mxu1 }
 0x231   : > { %v5550_v8 = vadd.f32 %v8764_v38, %v5429_v6  ;;  %v5654_v56 = vadd.f32 %v5653_v14, %v5529_v11  ;;  %v5929_v14 = vld [vmem:[#allocation3 + $0x10] sm:$0xff]  ;;  %v5932_v38 = vld [vmem:[#allocation3 + $0x28] sm:$0xff] }
 0x232   : > { %v5542_v49 = vpop.f32.mrf.mxu0  ;;  %v5881_v50 = vpop.f32.mrf.mxu1  ;;  %v5933_v6 = vld [vmem:[#allocation3 + $0x30] sm:$0xff] }
 0x233   : > { %v5543_v34 = vadd.f32 %v5542_v49, %v5423_v24  ;;  %v5678_v53 = vadd.f32 %v8778_v54, %v5550_v8 }
 0x234   : > { %v8767_v30 = vpop.f32.mrf.mxu0  ;;  %v8803_v36 = vpop.f32.mrf.mxu1 }
 0x235   : > { %v5564_v23 = vadd.f32 %v8767_v30, %v5441_v16  ;;  %v5670_v42 = vadd.f32 %v5669_v46, %v5543_v34  ;;  %v5931_v30 = vld [vmem:[#allocation3 + $0x20] sm:$0xff] }
 0x236   : > { %v5556_v7 = vpop.f32.mrf.mxu0  ;;  %v5893_v57 = vpop.f32.mrf.mxu1 }
 0x237   : > { %v5557_v28 = vadd.f32 %v5556_v7, %v5435_v15  ;;  %v5694_v63 = vadd.f32 %v10936_v29, %v5564_v23 }
 0x238   : > { %v8786_v32 = vpop.f32.mrf.mxu0  ;;  %v8806_v45 = vpop.f32.mrf.mxu1 }
 0x239   : > { %v5774_v0 = vadd.f32 %v8786_v32, %v5646_v47  ;;  %v5686_v49 = vadd.f32 %v10938_v31, %v5557_v28 }
 0x23a   : > { %v5767_v18 = vpop.f32.mrf.mxu0  ;;  %v5905_v59 = vpop.f32.mrf.mxu1 }
 0x23b   : > { %v5888_v9 = vadd.f32 %v8800_v20, %v5774_v0  ;;  %v5768_v37 = vadd.f32 %v5767_v18, %v5638_v5 }
 0x23c   : > { %v8789_v39 = vpop.f32.mrf.mxu0  ;;  %v8809_v44 = vpop.f32.mrf.mxu1 }
 0x23d   : > { %v5936_v10 = vadd.f32 %v5928_v58, %v5888_v9  ;;  %v5882_v62 = vadd.f32 %v5881_v50, %v5768_v37  ;;  %v5786_v43 = vadd.f32 %v8789_v39, %v5662_v48 }
 0x23e   : > { %v5779_v19 = vpop.f32.mrf.mxu0  ;;  %v5917_v55 = vpop.f32.mrf.mxu1 }
 0x23f   : > { %5944 = vst.msk [vmem:[#allocation3 + $0x8] sm:$0xff] %vm1093_vm4, %v5936_v10  ;;  %v5935_v25 = vadd.f32 %v5927_v27, %v5882_v62  ;;  %v5900_v33 = vadd.f32 %v8803_v36, %v5786_v43  ;;  %v5780_v41 = vadd.f32 %v5779_v19, %v5654_v56 }
 0x240   : > { %v8792_v17 = vpop.f32.mrf.mxu0  ;;  %v10942_v40 = vpop.f32.mrf.mxu1 }
 0x241   : > { %5943 = vst.msk [vmem:[#allocation3] sm:$0xff] %vm1093_vm4, %v5935_v25  ;;  %v5938_v52 = vadd.f32 %v5930_v1, %v5900_v33  ;;  %v5894_v60 = vadd.f32 %v5893_v57, %v5780_v41  ;;  %v5798_v4 = vadd.f32 %v8792_v17, %v5678_v53  ;;  %v5934_v57 = vld [vmem:[#allocation3 + $0x38] sm:$0xff] }
 0x242   : > { %v5791_v12 = vpop.f32.mrf.mxu0  ;;  %v6206_v54 = vpop.f32.mrf.mxu1 }
 0x243   : > { %5946 = vst.msk [vmem:[#allocation3 + $0x18] sm:$0xff] %vm1093_vm4, %v5938_v52  ;;  %v5937_v21 = vadd.f32 %v5929_v14, %v5894_v60  ;;  %v5912_v3 = vadd.f32 %v8806_v45, %v5798_v4  ;;  %v5792_v46 = vadd.f32 %v5791_v12, %v5670_v42 }
 0x244   : > { %v8795_v20 = vpop.f32.mrf.mxu0  ;;  %v8831_v13 = vpop.f32.mrf.mxu1 }
 0x245   : > { %5945 = vst.msk [vmem:[#allocation3 + $0x10] sm:$0xff] %vm1093_vm4, %v5937_v21  ;;  %v5940_v50 = vadd.f32 %v5932_v38, %v5912_v3  ;;  %v5906_v61 = vadd.f32 %v5905_v59, %v5792_v46  ;;  %v5810_v26 = vadd.f32 %v8795_v20, %v5694_v63 }
 0x246   : > { %v5803_v36 = vpop.f32.mrf.mxu0  ;;  %v6218_v35 = vpop.f32.mrf.mxu1 }
 0x247   : > { %5948 = vst.msk [vmem:[#allocation3 + $0x28] sm:$0xff] %vm1093_vm4, %v5940_v50  ;;  %v5939_v29 = vadd.f32 %v5931_v30, %v5906_v61  ;;  %v5924_v2 = vadd.f32 %v8809_v44, %v5810_v26  ;;  %v5804_v7 = vadd.f32 %v5803_v36, %v5686_v49 }
 0x248   : > { %v8814_v51 = vpop.f32.mrf.mxu0  ;;  %v8834_v47 = vpop.f32.mrf.mxu1 }
 0x249   : > { %5947 = vst.msk [vmem:[#allocation3 + $0x20] sm:$0xff] %vm1093_vm4, %v5939_v29  ;;  %v5942_v22 = vadd.f32 %v5934_v57, %v5924_v2  ;;  %v5918_v31 = vadd.f32 %v5917_v55, %v5804_v7  ;;  %v6213_v55 = vadd.f32 %v10942_v40, %v8814_v51  ;;  %v6736_v29 = vld [vmem:[#allocation3 + $0x8] sm:$0xff] }
 0x24a   : > { %v6060_v32 = vpop.f32.mrf.mxu0  ;;  %v6230_v45 = vpop.f32.mrf.mxu1 }
 0x24b   : > { %5950 = vst.msk [vmem:[#allocation3 + $0x38] sm:$0xff] %vm1093_vm4, %v5942_v22  ;;  %v5941_v5 = vadd.f32 %v5933_v6, %v5918_v31  ;;  %v6207_v33 = vadd.f32 %v6206_v54, %v6060_v32  ;;  %v6735_v6 = vld [vmem:[#allocation3] sm:$0xff] }
 0x24c   : > { %v8817_v11 = vpop.f32.mrf.mxu0  ;;  %v8837_v0 = vpop.f32.mrf.mxu1 }
 0x24d   : > { %5949 = vst.msk [vmem:[#allocation3 + $0x30] sm:$0xff] %vm1093_vm4, %v5941_v5  ;;  %v6225_v17 = vadd.f32 %v8831_v13, %v8817_v11 }
 0x24e   : > { %v6080_v24 = vpop.f32.mrf.mxu0  ;;  %v6242_v8 = vpop.f32.mrf.mxu1 }
 0x24f   : > { %v6219_v4 = vadd.f32 %v6218_v35, %v6080_v24 }
 0x250   : > { %v8820_v18 = vpop.f32.mrf.mxu0  ;;  %v8856_v59 = vpop.f32.mrf.mxu1 }
 0x251   : > { %v6237_v63 = vadd.f32 %v8834_v47, %v8820_v18 }
 0x252   : > { %v6100_v48 = vpop.f32.mrf.mxu0  ;;  %v6445_v9 = vpop.f32.mrf.mxu1 }
 0x253   : > { %v6231_v40 = vadd.f32 %v6230_v45, %v6100_v48 }
 0x254   : > { %v8823_v37 = vpop.f32.mrf.mxu0  ;;  %v8859_v16 = vpop.f32.mrf.mxu1 }
 0x255   : > { %v6249_v13 = vadd.f32 %v8837_v0, %v8823_v37 }
 0x256   : > { %v6120_v34 = vpop.f32.mrf.mxu0  ;;  %v6461_v58 = vpop.f32.mrf.mxu1 }
 0x257   : > { %v6243_v22 = vadd.f32 %v6242_v8, %v6120_v34 }
 0x258   : > { %v8842_v39 = vpop.f32.mrf.mxu0  ;;  %v8862_v44 = vpop.f32.mrf.mxu1 }
 0x259   : > { %v6330_v41 = vadd.f32 %v8842_v39, %v6213_v55 }
 0x25a   : > { %v6322_v56 = vpop.f32.mrf.mxu0  ;;  %v6477_v10 = vpop.f32.mrf.mxu1 }
 0x25b   : > { %v6323_v28 = vadd.f32 %v6322_v56, %v6207_v33  ;;  %v6454_v14 = vadd.f32 %v8856_v59, %v6330_v41  ;;  %v6738_v59 = vld [vmem:[#allocation3 + $0x18] sm:$0xff] }
 0x25c   : > { %v8845_v62 = vpop.f32.mrf.mxu0  ;;  %v10953_v43 = vpop.f32.mrf.mxu1 }
 0x25d   : > { %v6344_v12 = vadd.f32 %v8845_v62, %v6225_v17  ;;  %v6446_v46 = vadd.f32 %v6445_v9, %v6323_v28 }
 0x25e   : > { %v6336_v15 = vpop.f32.mrf.mxu0  ;;  %v10955_v53 = vpop.f32.mrf.mxu1 }
 0x25f   : > { %v6337_v38 = vadd.f32 %v6336_v15, %v6219_v4  ;;  %v6470_v61 = vadd.f32 %v8859_v16, %v6344_v12 }
 0x260   : > { %v8848_v27 = vpop.f32.mrf.mxu0  ;;  %v8884_v19 = vpop.f32.mrf.mxu1 }
 0x261   : > { %v6358_v49 = vadd.f32 %v8848_v27, %v6237_v63  ;;  %v6462_v7 = vadd.f32 %v6461_v58, %v6337_v38  ;;  %v6737_v58 = vld [vmem:[#allocation3 + $0x10] sm:$0xff]  ;;  %v6740_v27 = vld [vmem:[#allocation3 + $0x28] sm:$0xff] }
 0x262   : > { %v6350_v23 = vpop.f32.mrf.mxu0  ;;  %v6689_v25 = vpop.f32.mrf.mxu1  ;;  %v6741_v63 = vld [vmem:[#allocation3 + $0x30] sm:$0xff] }
 0x263   : > { %v6351_v36 = vadd.f32 %v6350_v23, %v6231_v40  ;;  %v6486_v31 = vadd.f32 %v8862_v44, %v6358_v49 }
 0x264   : > { %v8851_v42 = vpop.f32.mrf.mxu0  ;;  %v8887_v1 = vpop.f32.mrf.mxu1 }
 0x265   : > { %v6372_v5 = vadd.f32 %v8851_v42, %v6249_v13  ;;  %v6478_v0 = vadd.f32 %v6477_v10, %v6351_v36  ;;  %v6739_v42 = vld [vmem:[#allocation3 + $0x20] sm:$0xff] }
 0x266   : > { %v6364_v52 = vpop.f32.mrf.mxu0  ;;  %v6701_v60 = vpop.f32.mrf.mxu1 }
 0x267   : > { %v6365_v37 = vadd.f32 %v6364_v52, %v6243_v22  ;;  %v6502_v56 = vadd.f32 %v10953_v43, %v6372_v5 }
 0x268   : > { %v8870_v21 = vpop.f32.mrf.mxu0  ;;  %v8890_v3 = vpop.f32.mrf.mxu1 }
 0x269   : > { %v6582_v20 = vadd.f32 %v8870_v21, %v6454_v14  ;;  %v6494_v23 = vadd.f32 %v10955_v53, %v6365_v37 }
 0x26a   : > { %v6575_v50 = vpop.f32.mrf.mxu0  ;;  %v6713_v54 = vpop.f32.mrf.mxu1 }
 0x26b   : > { %v6696_v26 = vadd.f32 %v8884_v19, %v6582_v20  ;;  %v6576_v30 = vadd.f32 %v6575_v50, %v6446_v46 }
 0x26c   : > { %v8873_v2 = vpop.f32.mrf.mxu0  ;;  %v8893_v35 = vpop.f32.mrf.mxu1 }
 0x26d   : > { %v6744_v57 = vadd.f32 %v6736_v29, %v6696_v26  ;;  %v6690_v51 = vadd.f32 %v6689_v25, %v6576_v30  ;;  %v6594_v47 = vadd.f32 %v8873_v2, %v6470_v61 }
 0x26e   : > { %v6587_v32 = vpop.f32.mrf.mxu0  ;;  %v6725_v45 = vpop.f32.mrf.mxu1 }
 0x26f   : > { %6752 = vst.msk [vmem:[#allocation3 + $0x8] sm:$0xff] %vm1093_vm4, %v6744_v57  ;;  %v6743_v11 = vadd.f32 %v6735_v6, %v6690_v51  ;;  %v6708_v24 = vadd.f32 %v8887_v1, %v6594_v47  ;;  %v6588_v18 = vadd.f32 %v6587_v32, %v6462_v7 }
 0x270   : > { %v8876_v48 = vpop.f32.mrf.mxu0  ;;  %v10959_v9 = vpop.f32.mrf.mxu1 }
 0x271   : > { %6751 = vst.msk [vmem:[#allocation3] sm:$0xff] %vm1093_vm4, %v6743_v11  ;;  %v6746_v16 = vadd.f32 %v6738_v59, %v6708_v24  ;;  %v6702_v8 = vadd.f32 %v6701_v60, %v6588_v18  ;;  %v6606_v34 = vadd.f32 %v8876_v48, %v6486_v31  ;;  %v6742_v60 = vld [vmem:[#allocation3 + $0x38] sm:$0xff] }
 0x272   : > { %v6599_v39 = vpop.f32.mrf.mxu0  ;;  %v7014_v44 = vpop.f32.mrf.mxu1 }
 0x273   : > { %6754 = vst.msk [vmem:[#allocation3 + $0x18] sm:$0xff] %vm1093_vm4, %v6746_v16  ;;  %v6745_v62 = vadd.f32 %v6737_v58, %v6702_v8  ;;  %v6720_v15 = vadd.f32 %v8890_v3, %v6606_v34  ;;  %v6600_v10 = vadd.f32 %v6599_v39, %v6478_v0 }
 0x274   : > { %v8879_v19 = vpop.f32.mrf.mxu0  ;;  %v8915_v55 = vpop.f32.mrf.mxu1 }
 0x275   : > { %6753 = vst.msk [vmem:[#allocation3 + $0x10] sm:$0xff] %vm1093_vm4, %v6745_v62  ;;  %v6748_v25 = vadd.f32 %v6740_v27, %v6720_v15  ;;  %v6714_v33 = vadd.f32 %v6713_v54, %v6600_v10  ;;  %v6618_v41 = vadd.f32 %v8879_v19, %v6502_v56 }
 0x276   : > { %v6611_v1 = vpop.f32.mrf.mxu0  ;;  %v7026_v17 = vpop.f32.mrf.mxu1 }
 0x277   : > { %6756 = vst.msk [vmem:[#allocation3 + $0x28] sm:$0xff] %vm1093_vm4, %v6748_v25  ;;  %v6747_v43 = vadd.f32 %v6739_v42, %v6714_v33  ;;  %v6732_v28 = vadd.f32 %v8893_v35, %v6618_v41  ;;  %v6612_v52 = vadd.f32 %v6611_v1, %v6494_v23 }
 0x278   : > { %v8898_v4 = vpop.f32.mrf.mxu0  ;;  %v8918_v14 = vpop.f32.mrf.mxu1 }
 0x279   : > { %6755 = vst.msk [vmem:[#allocation3 + $0x20] sm:$0xff] %vm1093_vm4, %v6747_v43  ;;  %v6750_v12 = vadd.f32 %v6742_v60, %v6732_v28  ;;  %v6726_v53 = vadd.f32 %v6725_v45, %v6612_v52  ;;  %v7021_v45 = vadd.f32 %v10959_v9, %v8898_v4 }
 0x27a   : > { %v6868_v21 = vpop.f32.mrf.mxu0  ;;  %v7038_v3 = vpop.f32.mrf.mxu1 }
 0x27b   : > { %6758 = vst.msk [vmem:[#allocation3 + $0x38] sm:$0xff] %vm1093_vm4, %v6750_v12  ;;  %v6749_v46 = vadd.f32 %v6741_v63, %v6726_v53  ;;  %v7015_v24 = vadd.f32 %v7014_v44, %v6868_v21  ;;  %v7543_v12 = vld [vmem:[#allocation3] sm:$0xff] }
 0x27c   : > { %v8901_v38 = vpop.f32.mrf.mxu0  ;;  %v8921_v20 = vpop.f32.mrf.mxu1 }
 0x27d   : > { %6757 = vst.msk [vmem:[#allocation3 + $0x30] sm:$0xff] %vm1093_vm4, %v6749_v46  ;;  %v7033_v48 = vadd.f32 %v8915_v55, %v8901_v38  ;;  %v7544_v55 = vld [vmem:[#allocation3 + $0x8] sm:$0xff] }
 0x27e   : > { %v6888_v40 = vpop.f32.mrf.mxu0  ;;  %v7050_v49 = vpop.f32.mrf.mxu1 }
 0x27f   : > { %v7027_v8 = vadd.f32 %v7026_v17, %v6888_v40 }
 0x280   : > { %v8904_v50 = vpop.f32.mrf.mxu0  ;;  %v8940_v54 = vpop.f32.mrf.mxu1 }
 0x281   : > { %v7045_v39 = vadd.f32 %v8918_v14, %v8904_v50 }
 0x282   : > { %v6908_v61 = vpop.f32.mrf.mxu0  ;;  %v7253_v26 = vpop.f32.mrf.mxu1 }
 0x283   : > { %v7039_v19 = vadd.f32 %v7038_v3, %v6908_v61 }
 0x284   : > { %v8907_v30 = vpop.f32.mrf.mxu0  ;;  %v8943_v13 = vpop.f32.mrf.mxu1 }
 0x285   : > { %v7057_v41 = vadd.f32 %v8921_v20, %v8907_v30  ;;  %v7546_v20 = vld [vmem:[#allocation3 + $0x18] sm:$0xff]  ;;  %v7545_v30 = vld [vmem:[#allocation3 + $0x10] sm:$0xff] }
 0x286   : > { %v6928_v36 = vpop.f32.mrf.mxu0  ;;  %v7269_v29 = vpop.f32.mrf.mxu1 }
 0x287   : > { %v7051_v4 = vadd.f32 %v7050_v49, %v6928_v36 }
 0x288   : > { %v8926_v2 = vpop.f32.mrf.mxu0  ;;  %v8946_v35 = vpop.f32.mrf.mxu1 }
 0x289   : > { %v7138_v18 = vadd.f32 %v8926_v2, %v7021_v45 }
 0x28a   : > { %v7130_v7 = vpop.f32.mrf.mxu0  ;;  %v7285_v57 = vpop.f32.mrf.mxu1 }
 0x28b   : > { %v7131_v37 = vadd.f32 %v7130_v7, %v7015_v24  ;;  %v7262_v34 = vadd.f32 %v8940_v54, %v7138_v18  ;;  %v7728_v7 = vld [vmem:[%s11048_s2] ss:$0 sm:$0xff] }
 0x28c   : > { %v8929_v51 = vpop.f32.mrf.mxu0  ;;  %v8949_v47 = vpop.f32.mrf.mxu1 }
 0x28d   : > { %v7152_v58 = vadd.f32 %v8929_v51, %v7033_v48  ;;  %v7254_v15 = vadd.f32 %v7253_v26, %v7131_v37 }
 0x28e   : > { %v7144_v22 = vpop.f32.mrf.mxu0  ;;  %v10970_v31 = vpop.f32.mrf.mxu1 }
 0x28f   : > { %v7145_v10 = vadd.f32 %v7144_v22, %v7027_v8  ;;  %v7278_v25 = vadd.f32 %v8943_v13, %v7152_v58 }
 0x290   : > { %v8932_v6 = vpop.f32.mrf.mxu0  ;;  %v8968_v32 = vpop.f32.mrf.mxu1 }
 0x291   : > { %v7166_v9 = vadd.f32 %v8932_v6, %v7045_v39  ;;  %v7270_v17 = vadd.f32 %v7269_v29, %v7145_v10 }
 0x292   : > { %v7158_v5 = vpop.f32.mrf.mxu0  ;;  %v7497_v11 = vpop.f32.mrf.mxu1 }
 0x293   : > { %v7159_v42 = vadd.f32 %v7158_v5, %v7039_v19  ;;  %v7294_v14 = vadd.f32 %v8946_v35, %v7166_v9 }
 0x294   : > { %v8935_v0 = vpop.f32.mrf.mxu0  ;;  %v8971_v59 = vpop.f32.mrf.mxu1 }
 0x295   : > { %v7180_v63 = vadd.f32 %v8935_v0, %v7057_v41  ;;  %v7286_v38 = vadd.f32 %v7285_v57, %v7159_v42  ;;  %v7548_v57 = vld [vmem:[#allocation3 + $0x28] sm:$0xff] }
 0x296   : > { %v7172_v16 = vpop.f32.mrf.mxu0  ;;  %v7509_v62 = vpop.f32.mrf.mxu1 }
 0x297   : > { %v7173_v54 = vadd.f32 %v7172_v16, %v7051_v4  ;;  %v7310_v36 = vadd.f32 %v8949_v47, %v7180_v63  ;;  %v7550_v16 = vld [vmem:[#allocation3 + $0x38] sm:$0xff] }
 0x298   : > { %v8954_v56 = vpop.f32.mrf.mxu0  ;;  %v8974_v43 = vpop.f32.mrf.mxu1 }
 0x299   : > { %v7390_v27 = vadd.f32 %v8954_v56, %v7262_v34  ;;  %v7302_v6 = vadd.f32 %v10970_v31, %v7173_v54 }
 0x29a   : > { %v7383_v23 = vpop.f32.mrf.mxu0  ;;  %v7521_v50 = vpop.f32.mrf.mxu1 }
 0x29b   : > { %v7504_v44 = vadd.f32 %v8968_v32, %v7390_v27  ;;  %v7384_v33 = vadd.f32 %v7383_v23, %v7254_v15 }
 0x29c   : > { %v8957_v1 = vpop.f32.mrf.mxu0  ;;  %v8977_v22 = vpop.f32.mrf.mxu1 }
 0x29d   : > { %v7552_v28 = vadd.f32 %v7544_v55, %v7504_v44  ;;  %v7498_v52 = vadd.f32 %v7497_v11, %v7384_v33  ;;  %v7402_v60 = vadd.f32 %v8957_v1, %v7278_v25  ;;  %v7547_v11 = vld [vmem:[#allocation3 + $0x20] sm:$0xff] }
 0x29e   : > { %v7395_v53 = vpop.f32.mrf.mxu0  ;;  %v7533_v8 = vpop.f32.mrf.mxu1 }
 0x29f   : > { %7560 = vst.msk [vmem:[#allocation3 + $0x8] sm:$0xff] %vm1093_vm4, %v7552_v28  ;;  %v7551_v21 = vadd.f32 %v7543_v12, %v7498_v52  ;;  %v7516_v3 = vadd.f32 %v8971_v59, %v7402_v60  ;;  %v7396_v46 = vadd.f32 %v7395_v53, %v7270_v17 }
 0x2a0   : > { %v8960_v40 = vpop.f32.mrf.mxu0 }
 0x2a1   : > { %7559 = vst.msk [vmem:[#allocation3] sm:$0xff] %vm1093_vm4, %v7551_v21  ;;  %v7554_v61 = vadd.f32 %v7546_v20, %v7516_v3  ;;  %v7510_v26 = vadd.f32 %v7509_v62, %v7396_v46  ;;  %v7414_v49 = vadd.f32 %v8960_v40, %v7294_v14  ;;  %v7549_v62 = vld [vmem:[#allocation3 + $0x30] sm:$0xff] }
 0x2a2   : > { %v7407_v13 = vpop.f32.mrf.mxu0 }
 0x2a3   : > { %7562 = vst.msk [vmem:[#allocation3 + $0x18] sm:$0xff] %vm1093_vm4, %v7554_v61  ;;  %v7553_v29 = vadd.f32 %v7545_v30, %v7510_v26  ;;  %v7528_v2 = vadd.f32 %v8974_v43, %v7414_v49  ;;  %v7408_v35 = vadd.f32 %v7407_v13, %v7286_v38 }
 0x2a4   : > { %v8963_v51 = vpop.f32.mrf.mxu0 }
 0x2a5   : > { %7561 = vst.msk [vmem:[#allocation3 + $0x10] sm:$0xff] %vm1093_vm4, %v7553_v29  ;;  %v7556_v32 = vadd.f32 %v7548_v57, %v7528_v2  ;;  %v7522_v45 = vadd.f32 %v7521_v50, %v7408_v35  ;;  %v7426_v5 = vadd.f32 %v8963_v51, %v7310_v36 }
 0x2a6   : > { %v7568_v47 = vld [vmem:[#allocation3 + $0x8] sm:$0xff]  ;;  %v7419_v24 = vpop.f32.mrf.mxu0 }
 0x2a7   : > { %v7583_v18 = vadd.f32 %v7728_v7, %v7568_v47  ;;  %7564 = vst.msk [vmem:[#allocation3 + $0x28] sm:$0xff] %vm1093_vm4, %v7556_v32  ;;  %v7555_v0 = vadd.f32 %v7547_v11, %v7522_v45  ;;  %v7540_v59 = vadd.f32 %v8977_v22, %v7426_v5  ;;  %v7420_v48 = vadd.f32 %v7419_v24, %v7302_v6 }
 0x2a8   : > { %v7567_v37 = vld [vmem:[#allocation3] sm:$0xff] }
 0x2a9   : > { %v7591_v31 = vmax.f32 %v7583_v18, 0.0  ;;  %v7582_v34 = vadd.f32 %v7728_v7, %v7567_v37  ;;  %7563 = vst.msk [vmem:[#allocation3 + $0x20] sm:$0xff] %vm1093_vm4, %v7555_v0  ;;  %v7558_v58 = vadd.f32 %v7550_v16, %v7540_v59  ;;  %v7534_v39 = vadd.f32 %v7533_v8, %v7420_v48 }
 0x2aa   : > { %v7570_v56 = vld [vmem:[#allocation3 + $0x18] sm:$0xff] }
 0x2ab   : > { %v7590_v15 = vmax.f32 %v7582_v34, 0.0  ;;  %v7585_v10 = vadd.f32 %v7728_v7, %v7570_v56  ;;  %7566 = vst.msk [vmem:[#allocation3 + $0x38] sm:$0xff] %vm1093_vm4, %v7558_v58  ;;  %v7557_v27 = vadd.f32 %v7549_v62, %v7534_v39  ;;  %7599 = vst.msk [vmem:[%s163_s6 + $0x8] sm:$0xff] %vm1093_vm4, %v7591_v31 }
 0x2ac   : > { %v7569_v19 = vld [vmem:[#allocation3 + $0x10] sm:$0xff] }
 0x2ad   : > { %v7593_v9 = vmax.f32 %v7585_v10, 0.0  ;;  %v7584_v23 = vadd.f32 %v7728_v7, %v7569_v19  ;;  %7565 = vst.msk [vmem:[#allocation3 + $0x30] sm:$0xff] %vm1093_vm4, %v7557_v27  ;;  %7598 = vst.msk [vmem:[%s163_s6] sm:$0xff] %vm1093_vm4, %v7590_v15 }
 0x2ae   : > { %v7572_v25 = vld [vmem:[#allocation3 + $0x28] sm:$0xff] }
 0x2af   : > { %v7592_v44 = vmax.f32 %v7584_v23, 0.0  ;;  %v7587_v33 = vadd.f32 %v7728_v7, %v7572_v25  ;;  %7601 = vst.msk [vmem:[%s163_s6 + $0x18] sm:$0xff] %vm1093_vm4, %v7593_v9 }
 0x2b0   : > { %v7571_v41 = vld [vmem:[#allocation3 + $0x20] sm:$0xff] }
 0x2b1   : > { %v7595_v42 = vmax.f32 %v7587_v33, 0.0  ;;  %v7586_v55 = vadd.f32 %v7728_v7, %v7571_v41  ;;  %7600 = vst.msk [vmem:[%s163_s6 + $0x10] sm:$0xff] %vm1093_vm4, %v7592_v44 }
 0x2b2   : > { %v7574_v1 = vld [vmem:[#allocation3 + $0x38] sm:$0xff] }
 0x2b3   : > { %v7594_v43 = vmax.f32 %v7586_v55, 0.0  ;;  %v7589_v17 = vadd.f32 %v7728_v7, %v7574_v1  ;;  %7603 = vst.msk [vmem:[%s163_s6 + $0x28] sm:$0xff] %vm1093_vm4, %v7595_v42 }
 0x2b4   : > { %v7573_v28 = vld [vmem:[#allocation3 + $0x30] sm:$0xff] }
 0x2b5   : > { %v7597_v52 = vmax.f32 %v7589_v17, 0.0  ;;  %v7588_v60 = vadd.f32 %v7728_v7, %v7573_v28  ;;  %7602 = vst.msk [vmem:[%s163_s6 + $0x20] sm:$0xff] %vm1093_vm4, %v7594_v43 }
 0x2b7   : > { %v7596_v4 = vmax.f32 %v7588_v60, 0.0  ;;  %7605 = vst.msk [vmem:[%s163_s6 + $0x38] sm:$0xff] %vm1093_vm4, %v7597_v52 }
 0x2b9   : > { %7604 = vst.msk [vmem:[%s163_s6 + $0x30] sm:$0xff] %vm1093_vm4, %v7596_v4 }
 0x2ba   : > { %9033 = shalt.err (!%p9030_p3)
}
 0x2bb   : > { %s9034_s25 = scalar_lea.hbm %s10998_s11, 1024  ;;  %s9038_s28 = scalar_lea.hbm %s11049_s3, 2048 }
 0x2bc   : > { %p9035_p4 = scmp.ne.s32.totalorder %s10998_s11, %s9034_s25  ;;  %p9039_p9 = scmp.lt.s32.totalorder %s10998_s11, %s11049_s3 }
 0x2bd   : > { %p9040_p10 = scmp.lt.s32.totalorder %s9038_s28, %s9034_s25 }
 0x2be   : > { %p9036_p7 = pnand %p9035_p4, %p9144_p5 }
 0x2bf   : > { %p9041_p11 = por %p9040_p10, %p9039_p9 }
 0x2c0   : > { %p9037_p8 = pneg %p9036_p7 }
 0x2c2   : > { %p9042_p12 = pnand %p9041_p11, %p9037_p8 }
 0x2c4   : > { %9045 = shalt.err (!%p9042_p12)
}
 0x2c5   : > { %s9084_s4 = smov 128   ;;  %s9085_s5 = smov 8  }
 0x2c6   : > { %8978 = dma.vmem_to_hbm [thread:$0]  (%p9144_p5), %s11000_s8, 1024, %s10998_s11, %s11006_s16, %s9084_s4, %s9084_s4, %s9085_s5  }
 0x2c7 PF: > { %p8984_p13 = scmp.ge.s32.totalorder %s9080_s15, 2  ;;  %s7635_s6 = sand.u32 1, %s9068_s12  }
 0x2c8   : > { %s7636_s7 = scalar_lea.sflag [#allocation5], %s7635_s6 }
 0x2c9   : > { %p8981_p0 = pnand %p8984_p13, %p9148_p6 }
 0x2cb   : > { %p8982_p1 = pneg %p8981_p0 }
 0x2cd   : > { %9063 = dma.done.wait (%p8982_p1), %s7636_s7, 1024  }
 0x2ce   : > { %9065 = vsyncadd (%p8982_p1), %s7636_s7, 4294966272  ;;  %p13_p2 = scmp.ge.s32.totalorder %s9131_s18, 4   ;;  %s11215_s12 = smov %s9072_s13 }
 0x2cf   : > { %s11216_s13 = smov %s9076_s14  ;;  %s11217_s14 = smov %s9142_s21 }
 0x2d0   : > { %s11218_s15 = smov %s9131_s18  ;;  %15 = sbr.rel (!%p13_p2) target bundleno = 3 (0x3), region = 109 }
 0x2d5   :  { %7641 = vsyncpa [#allocation5], 1 }
 0x2d6   :  { %7643 = vsyncpa [#allocation5 + $0x1], 1 }

</bundles_post_ra>
